<compile_context>
chip_gen: v5e
topology: v5e:2x2
jax: 0.10.0
libtpu: 0.0.40
codegen_flags: <defaults>
</compile_context>

<pallas_src>
import functools

import jax
import jax.numpy as jnp
from jax.experimental import pallas as pl
from jax.experimental.pallas import tpu as pltpu


def _round_up(v, m):
    return ((v + m - 1) // m) * m


def _pick_th(hout, wout, tcout, target_rows=1024, max_out_tile_bytes=4 << 20):
    """Largest divisor of Hout such that the (th*Wout, tcout) f32 tile stays small enough,
    stopping once th*Wout reaches ~target_rows (big M tiles amortize per-step overhead)."""
    best = 1
    for t in range(1, hout + 1):
        if hout % t:
            continue
        if t * wout * tcout * 4 > max_out_tile_bytes:
            break
        best = t
        if t * wout >= target_rows:
            break
    return best


def _conv_bn_relu_kernel(x_ref, w_ref, shift_ref, o_ref, *, k, s, d, use_relu):
    # x_ref:     (1, Hp, Wp, Cin_pad)      padded NHWC image for batch index n (bf16)
    # w_ref:     (k*k, Cin_pad, tcout)     conv weight with BN scale folded in (bf16)
    # shift_ref: (1, tcout)                folded BN shift (f32)
    # o_ref:     (1, th, Wout, tcout)      f32 output tile (lane-dense: tcout % 128 == 0)
    _, th, wout, tcout = o_ref.shape
    cin_pad = x_ref.shape[-1]
    hb = pl.program_id(2)

    acc = jnp.zeros((th * wout, tcout), jnp.float32)
    nrows = (th - 1) * s + 1
    for kh in range(k):
        # Padded-input rows feeding output rows [hb*th, hb*th + th) at kernel tap kh.
        h_start = hb * (th * s) + kh * d
        rows = x_ref[0, pl.ds(h_start, nrows), :, :]          # (nrows, Wp, Cin_pad)
        if s > 1:
            rows = rows[::s]                                   # (th, Wp, Cin_pad)
        for kw in range(k):
            w0 = kw * d
            if s > 1:
                win = rows[:, w0:w0 + (wout - 1) * s + 1:s, :]
            else:
                win = rows[:, w0:w0 + wout, :]                 # (th, Wout, Cin_pad)
            lhs = win.reshape(th * wout, cin_pad)              # (M, K) bf16
            acc = acc + jnp.dot(lhs, w_ref[kh * k + kw],
                                preferred_element_type=jnp.float32)

    y = acc + shift_ref[...]                                   # per-channel BN shift
    if use_relu:
        y = jnp.maximum(y, 0.0)
    o_ref[...] = y.reshape(1, th, wout, tcout).astype(o_ref.dtype)


def convbnrelu_double_forward(x, params, depth_path=False, use_relu=True,
                              k=3, s=1, p=1, d=1, eps=1e-5):
    """x: (N, Cin, H, W) NCHW float32.  Returns (N, Cout, Hout, Wout) NCHW float32."""
    N, Cin, H, W = x.shape
    w = params["conv_weight"]                                  # (Cout, Cin, k, k)
    Cout = w.shape[0]
    Hout = (H + 2 * p - d * (k - 1) - 1) // s + 1
    Wout = (W + 2 * p - d * (k - 1) - 1) // s + 1

    idx = 1 if depth_path else 0
    gamma = params["bn_gamma"][idx]
    beta = params["bn_beta"][idx]
    rmean = params["bn_running_mean"][idx]
    rvar = params["bn_running_var"][idx]

    # Fold eval-mode BN into per-channel scale/shift; scale is folded into the weight.
    scale = gamma / jnp.sqrt(rvar + eps)                       # (Cout,)
    shift = beta - rmean * scale                               # (Cout,)

    TCOUT = 128                                                # lane-dense output channels
    cout_pad = _round_up(Cout, TCOUT)
    cin_pad = _round_up(Cin, 8)                                # sublane-friendly contraction

    # ---- wrapper-side glue (layout only) -------------------------------------------
    x_nhwc = jnp.transpose(x, (0, 2, 3, 1)).astype(jnp.float32)
    x_pad = jnp.pad(x_nhwc, ((0, 0), (p, p), (p, p), (0, cin_pad - Cin)))
    x_pad = x_pad.astype(jnp.bfloat16)                         # halve HBM/VMEM traffic
    Hp, Wp = H + 2 * p, W + 2 * p

    w_scaled = w.astype(jnp.float32) * scale[:, None, None, None]
    w_r = jnp.transpose(w_scaled, (2, 3, 1, 0)).reshape(k * k, Cin, Cout)
    w_r = jnp.pad(w_r, ((0, 0), (0, cin_pad - Cin), (0, cout_pad - Cout)))
    w_r = w_r.astype(jnp.bfloat16)                             # (k*k, Cin_pad, Cout_pad)
    shift_p = jnp.pad(shift.astype(jnp.float32),
                      (0, cout_pad - Cout)).reshape(1, cout_pad)

    # ---- tiling --------------------------------------------------------------------
    th = _pick_th(Hout, Wout, TCOUT)
    num_hb = Hout // th
    num_cb = cout_pad // TCOUT

    # Explicit VMEM budget (double-buffered blocks + headroom), kept under v7x 64 MiB/TC.
    bytes_x = Hp * Wp * cin_pad * 2
    bytes_w = k * k * cin_pad * TCOUT * 2
    bytes_o = th * Wout * TCOUT * 4
    est = 2 * (bytes_x + bytes_w + bytes_o + TCOUT * 4)
    vmem_limit = min(48 << 20, max(32 << 20, 2 * est))

    kernel = functools.partial(_conv_bn_relu_kernel, k=k, s=s, d=d, use_relu=use_relu)

    out = pl.pallas_call(
        kernel,
        out_shape=jax.ShapeDtypeStruct((N, Hout, Wout, cout_pad), jnp.float32),
        grid_spec=pltpu.PrefetchScalarGridSpec(
            num_scalar_prefetch=0,
            grid=(N, num_cb, num_hb),       # hb fastest: image & weight blocks reused
            in_specs=[
                # whole padded image per batch sample; re-DMA'd only when n changes
                pl.BlockSpec((1, Hp, Wp, cin_pad), lambda n, cb, hb: (n, 0, 0, 0)),
                # BN-scaled weight tile for this output-channel block
                pl.BlockSpec((k * k, cin_pad, TCOUT), lambda n, cb, hb: (0, 0, cb)),
                # BN shift for this output-channel block
                pl.BlockSpec((1, TCOUT), lambda n, cb, hb: (0, cb)),
            ],
            out_specs=pl.BlockSpec((1, th, Wout, TCOUT),
                                   lambda n, cb, hb: (n, hb, 0, cb)),
        ),
        compiler_params=pltpu.CompilerParams(
            dimension_semantics=("parallel", "parallel", "parallel"),
            vmem_limit_bytes=vmem_limit),
    )(x_pad, w_r, shift_p)

    out = out[:, :, :, :Cout]                                  # drop Cout padding
    # TODO(synk): emit NHWC directly for NHWC consumers; transpose kept for NCHW parity.
    return jnp.transpose(out, (0, 3, 1, 2))


def _make_params(key, in_channel, out_channel, k):
    kw, kg0, kb0, km0, kv0, kg1, kb1, km1, kv1 = jax.random.split(key, 9)
    fan_in = in_channel * k * k
    bound = 1.0 / (fan_in ** 0.5)
    conv_weight = jax.random.uniform(
        kw, (out_channel, in_channel, k, k), jnp.float32, -bound, bound)
    params = {
        "conv_weight": conv_weight,
        "bn_gamma": jnp.stack([
            1.0 + 0.1 * jax.random.normal(kg0, (out_channel,), jnp.float32),
            1.0 + 0.1 * jax.random.normal(kg1, (out_channel,), jnp.float32)]),
        "bn_beta": jnp.stack([
            0.1 * jax.random.normal(kb0, (out_channel,), jnp.float32),
            0.1 * jax.random.normal(kb1, (out_channel,), jnp.float32)]),
        "bn_running_mean": jnp.stack([
            0.1 * jax.random.normal(km0, (out_channel,), jnp.float32),
            0.1 * jax.random.normal(km1, (out_channel,), jnp.float32)]),
        "bn_running_var": jnp.stack([
            1.0 + 0.1 * jax.random.uniform(kv0, (out_channel,), jnp.float32),
            1.0 + 0.1 * jax.random.uniform(kv1, (out_channel,), jnp.float32)]),
    }
    return params


def _reference(x, params, depth_path, use_relu, k, s, p, d, eps=1e-5):
    # Pure-JAX f32 reference for the correctness check.
    w = params["conv_weight"]
    y = jax.lax.conv_general_dilated(
        x, w, window_strides=(s, s), padding=((p, p), (p, p)),
        rhs_dilation=(d, d), dimension_numbers=("NCHW", "OIHW", "NCHW"))
    idx = 1 if depth_path else 0
    gamma = params["bn_gamma"][idx][None, :, None, None]
    beta = params["bn_beta"][idx][None, :, None, None]
    rmean = params["bn_running_mean"][idx][None, :, None, None]
    rvar = params["bn_running_var"][idx][None, :, None, None]
    y = (y - rmean) / jnp.sqrt(rvar + eps) * gamma + beta
    if use_relu:
        y = jnp.maximum(y, 0.0)
    return y


if __name__ == "__main__":
    key = jax.random.PRNGKey(0)
    kx, kp = jax.random.split(key)

    N, Cin, H, W = 2, 4, 16, 16
    Cout, k, s, p, d = 8, 3, 1, 1, 1

    x = jax.random.normal(kx, (N, Cin, H, W), jnp.float32)
    params = _make_params(kp, Cin, Cout, k)

    for depth_path in (False, True):
        out = convbnrelu_double_forward(x, params, depth_path=depth_path,
                                        use_relu=True, k=k, s=s, p=p, d=d)
        out = jax.block_until_ready(out)
        ref = _reference(x, params, depth_path, True, k, s, p, d)
        assert out.shape == ref.shape
        # bf16 matmul operands (f32 accumulate) -> loosened tolerance vs pure-f32.
        assert jnp.max(jnp.abs(out - ref)) < 5e-2

    print("KERNEL_OK")
</pallas_src>

<mosaic_0001>
module attributes {stable_mosaic.version = 11 : i64} {
  func.func @_conv_bn_relu_kernel(%arg0: i32, %arg1: i32, %arg2: i32, %arg3: memref<1x18x18x8xbf16, #tpu.memory_space<vmem>>, %arg4: memref<9x8x128xbf16, #tpu.memory_space<vmem>>, %arg5: memref<1x128xf32, #tpu.memory_space<vmem>>, %arg6: memref<1x16x16x128xf32, #tpu.memory_space<vmem>>) attributes {dimension_semantics = [#tpu.dimension_semantics<parallel>, #tpu.dimension_semantics<parallel>, #tpu.dimension_semantics<parallel>], iteration_bounds = array<i64: 2, 1, 1>, scalar_prefetch = 0 : i64, scratch_operands = 0 : i64, tpu.core_type = #tpu.core_type<tc>, window_params = [{transform_indices = @transform_0, window_bounds = array<i64: 1, 18, 18, 8>}, {transform_indices = @transform_1, window_bounds = array<i64: 9, 8, 128>}, {transform_indices = @transform_2, window_bounds = array<i64: 1, 128>}, {transform_indices = @transform_3, window_bounds = array<i64: 1, 16, 16, 128>}]} {
    %cst = arith.constant 0.000000e+00 : f32
    %0 = vector.broadcast %cst : f32 to vector<256x128xf32>
    %c16_i32 = arith.constant 16 : i32
    %1 = arith.muli %arg2, %c16_i32 : i32
    %c0_i32 = arith.constant 0 : i32
    %2 = arith.addi %1, %c0_i32 : i32
    %c0 = arith.constant 0 : index
    %3 = arith.index_cast %2 : i32 to index
    %c0_0 = arith.constant 0 : index
    %c0_1 = arith.constant 0 : index
    %4 = vector.load %arg3[%c0, %3, %c0_0, %c0_1] : memref<1x18x18x8xbf16, #tpu.memory_space<vmem>>, vector<1x16x18x8xbf16>
    %5 = vector.shape_cast %4 : vector<1x16x18x8xbf16> to vector<16x18x8xbf16>
    %6 = vector.extract_strided_slice %5 {offsets = [0, 0, 0], sizes = [16, 16, 8], strides = [1, 1, 1]} : vector<16x18x8xbf16> to vector<16x16x8xbf16>
    %7 = vector.shape_cast %6 : vector<16x16x8xbf16> to vector<256x8xbf16>
    %c0_2 = arith.constant 0 : index
    %c0_3 = arith.constant 0 : index
    %c0_4 = arith.constant 0 : index
    %8 = vector.load %arg4[%c0_2, %c0_3, %c0_4] : memref<9x8x128xbf16, #tpu.memory_space<vmem>>, vector<1x8x128xbf16>
    %9 = vector.shape_cast %8 : vector<1x8x128xbf16> to vector<8x128xbf16>
    %cst_5 = arith.constant dense<0.000000e+00> : vector<256x128xf32>
    %10 = tpu.matmul %7, %9, %cst_5 {dimension_numbers = #tpu.dot_dimension_numbers<[1], [0], [0], [1], [0, 0, 1, 1], [], []>} : vector<256x8xbf16>, vector<8x128xbf16>, vector<256x128xf32> -> vector<256x128xf32>
    %11 = arith.addf %0, %10 : vector<256x128xf32>
    %12 = vector.extract_strided_slice %5 {offsets = [0, 1, 0], sizes = [16, 16, 8], strides = [1, 1, 1]} : vector<16x18x8xbf16> to vector<16x16x8xbf16>
    %13 = vector.shape_cast %12 : vector<16x16x8xbf16> to vector<256x8xbf16>
    %c1 = arith.constant 1 : index
    %c0_6 = arith.constant 0 : index
    %c0_7 = arith.constant 0 : index
    %14 = vector.load %arg4[%c1, %c0_6, %c0_7] : memref<9x8x128xbf16, #tpu.memory_space<vmem>>, vector<1x8x128xbf16>
    %15 = vector.shape_cast %14 : vector<1x8x128xbf16> to vector<8x128xbf16>
    %cst_8 = arith.constant dense<0.000000e+00> : vector<256x128xf32>
    %16 = tpu.matmul %13, %15, %cst_8 {dimension_numbers = #tpu.dot_dimension_numbers<[1], [0], [0], [1], [0, 0, 1, 1], [], []>} : vector<256x8xbf16>, vector<8x128xbf16>, vector<256x128xf32> -> vector<256x128xf32>
    %17 = arith.addf %11, %16 : vector<256x128xf32>
    %18 = vector.extract_strided_slice %5 {offsets = [0, 2, 0], sizes = [16, 16, 8], strides = [1, 1, 1]} : vector<16x18x8xbf16> to vector<16x16x8xbf16>
    %19 = vector.shape_cast %18 : vector<16x16x8xbf16> to vector<256x8xbf16>
    %c2 = arith.constant 2 : index
    %c0_9 = arith.constant 0 : index
    %c0_10 = arith.constant 0 : index
    %20 = vector.load %arg4[%c2, %c0_9, %c0_10] : memref<9x8x128xbf16, #tpu.memory_space<vmem>>, vector<1x8x128xbf16>
    %21 = vector.shape_cast %20 : vector<1x8x128xbf16> to vector<8x128xbf16>
    %cst_11 = arith.constant dense<0.000000e+00> : vector<256x128xf32>
    %22 = tpu.matmul %19, %21, %cst_11 {dimension_numbers = #tpu.dot_dimension_numbers<[1], [0], [0], [1], [0, 0, 1, 1], [], []>} : vector<256x8xbf16>, vector<8x128xbf16>, vector<256x128xf32> -> vector<256x128xf32>
    %23 = arith.addf %17, %22 : vector<256x128xf32>
    %c16_i32_12 = arith.constant 16 : i32
    %24 = arith.muli %arg2, %c16_i32_12 : i32
    %c1_i32 = arith.constant 1 : i32
    %25 = arith.addi %24, %c1_i32 : i32
    %c0_13 = arith.constant 0 : index
    %26 = arith.index_cast %25 : i32 to index
    %c0_14 = arith.constant 0 : index
    %c0_15 = arith.constant 0 : index
    %27 = vector.load %arg3[%c0_13, %26, %c0_14, %c0_15] : memref<1x18x18x8xbf16, #tpu.memory_space<vmem>>, vector<1x16x18x8xbf16>
    %28 = vector.shape_cast %27 : vector<1x16x18x8xbf16> to vector<16x18x8xbf16>
    %29 = vector.extract_strided_slice %28 {offsets = [0, 0, 0], sizes = [16, 16, 8], strides = [1, 1, 1]} : vector<16x18x8xbf16> to vector<16x16x8xbf16>
    %30 = vector.shape_cast %29 : vector<16x16x8xbf16> to vector<256x8xbf16>
    %c3 = arith.constant 3 : index
    %c0_16 = arith.constant 0 : index
    %c0_17 = arith.constant 0 : index
    %31 = vector.load %arg4[%c3, %c0_16, %c0_17] : memref<9x8x128xbf16, #tpu.memory_space<vmem>>, vector<1x8x128xbf16>
    %32 = vector.shape_cast %31 : vector<1x8x128xbf16> to vector<8x128xbf16>
    %cst_18 = arith.constant dense<0.000000e+00> : vector<256x128xf32>
    %33 = tpu.matmul %30, %32, %cst_18 {dimension_numbers = #tpu.dot_dimension_numbers<[1], [0], [0], [1], [0, 0, 1, 1], [], []>} : vector<256x8xbf16>, vector<8x128xbf16>, vector<256x128xf32> -> vector<256x128xf32>
    %34 = arith.addf %23, %33 : vector<256x128xf32>
    %35 = vector.extract_strided_slice %28 {offsets = [0, 1, 0], sizes = [16, 16, 8], strides = [1, 1, 1]} : vector<16x18x8xbf16> to vector<16x16x8xbf16>
    %36 = vector.shape_cast %35 : vector<16x16x8xbf16> to vector<256x8xbf16>
    %c4 = arith.constant 4 : index
    %c0_19 = arith.constant 0 : index
    %c0_20 = arith.constant 0 : index
    %37 = vector.load %arg4[%c4, %c0_19, %c0_20] : memref<9x8x128xbf16, #tpu.memory_space<vmem>>, vector<1x8x128xbf16>
    %38 = vector.shape_cast %37 : vector<1x8x128xbf16> to vector<8x128xbf16>
    %cst_21 = arith.constant dense<0.000000e+00> : vector<256x128xf32>
    %39 = tpu.matmul %36, %38, %cst_21 {dimension_numbers = #tpu.dot_dimension_numbers<[1], [0], [0], [1], [0, 0, 1, 1], [], []>} : vector<256x8xbf16>, vector<8x128xbf16>, vector<256x128xf32> -> vector<256x128xf32>
    %40 = arith.addf %34, %39 : vector<256x128xf32>
    %41 = vector.extract_strided_slice %28 {offsets = [0, 2, 0], sizes = [16, 16, 8], strides = [1, 1, 1]} : vector<16x18x8xbf16> to vector<16x16x8xbf16>
    %42 = vector.shape_cast %41 : vector<16x16x8xbf16> to vector<256x8xbf16>
    %c5 = arith.constant 5 : index
    %c0_22 = arith.constant 0 : index
    %c0_23 = arith.constant 0 : index
    %43 = vector.load %arg4[%c5, %c0_22, %c0_23] : memref<9x8x128xbf16, #tpu.memory_space<vmem>>, vector<1x8x128xbf16>
    %44 = vector.shape_cast %43 : vector<1x8x128xbf16> to vector<8x128xbf16>
    %cst_24 = arith.constant dense<0.000000e+00> : vector<256x128xf32>
    %45 = tpu.matmul %42, %44, %cst_24 {dimension_numbers = #tpu.dot_dimension_numbers<[1], [0], [0], [1], [0, 0, 1, 1], [], []>} : vector<256x8xbf16>, vector<8x128xbf16>, vector<256x128xf32> -> vector<256x128xf32>
    %46 = arith.addf %40, %45 : vector<256x128xf32>
    %c16_i32_25 = arith.constant 16 : i32
    %47 = arith.muli %arg2, %c16_i32_25 : i32
    %c2_i32 = arith.constant 2 : i32
    %48 = arith.addi %47, %c2_i32 : i32
    %c0_26 = arith.constant 0 : index
    %49 = arith.index_cast %48 : i32 to index
    %c0_27 = arith.constant 0 : index
    %c0_28 = arith.constant 0 : index
    %50 = vector.load %arg3[%c0_26, %49, %c0_27, %c0_28] : memref<1x18x18x8xbf16, #tpu.memory_space<vmem>>, vector<1x16x18x8xbf16>
    %51 = vector.shape_cast %50 : vector<1x16x18x8xbf16> to vector<16x18x8xbf16>
    %52 = vector.extract_strided_slice %51 {offsets = [0, 0, 0], sizes = [16, 16, 8], strides = [1, 1, 1]} : vector<16x18x8xbf16> to vector<16x16x8xbf16>
    %53 = vector.shape_cast %52 : vector<16x16x8xbf16> to vector<256x8xbf16>
    %c6 = arith.constant 6 : index
    %c0_29 = arith.constant 0 : index
    %c0_30 = arith.constant 0 : index
    %54 = vector.load %arg4[%c6, %c0_29, %c0_30] : memref<9x8x128xbf16, #tpu.memory_space<vmem>>, vector<1x8x128xbf16>
    %55 = vector.shape_cast %54 : vector<1x8x128xbf16> to vector<8x128xbf16>
    %cst_31 = arith.constant dense<0.000000e+00> : vector<256x128xf32>
    %56 = tpu.matmul %53, %55, %cst_31 {dimension_numbers = #tpu.dot_dimension_numbers<[1], [0], [0], [1], [0, 0, 1, 1], [], []>} : vector<256x8xbf16>, vector<8x128xbf16>, vector<256x128xf32> -> vector<256x128xf32>
    %57 = arith.addf %46, %56 : vector<256x128xf32>
    %58 = vector.extract_strided_slice %51 {offsets = [0, 1, 0], sizes = [16, 16, 8], strides = [1, 1, 1]} : vector<16x18x8xbf16> to vector<16x16x8xbf16>
    %59 = vector.shape_cast %58 : vector<16x16x8xbf16> to vector<256x8xbf16>
    %c7 = arith.constant 7 : index
    %c0_32 = arith.constant 0 : index
    %c0_33 = arith.constant 0 : index
    %60 = vector.load %arg4[%c7, %c0_32, %c0_33] : memref<9x8x128xbf16, #tpu.memory_space<vmem>>, vector<1x8x128xbf16>
    %61 = vector.shape_cast %60 : vector<1x8x128xbf16> to vector<8x128xbf16>
    %cst_34 = arith.constant dense<0.000000e+00> : vector<256x128xf32>
    %62 = tpu.matmul %59, %61, %cst_34 {dimension_numbers = #tpu.dot_dimension_numbers<[1], [0], [0], [1], [0, 0, 1, 1], [], []>} : vector<256x8xbf16>, vector<8x128xbf16>, vector<256x128xf32> -> vector<256x128xf32>
    %63 = arith.addf %57, %62 : vector<256x128xf32>
    %64 = vector.extract_strided_slice %51 {offsets = [0, 2, 0], sizes = [16, 16, 8], strides = [1, 1, 1]} : vector<16x18x8xbf16> to vector<16x16x8xbf16>
    %65 = vector.shape_cast %64 : vector<16x16x8xbf16> to vector<256x8xbf16>
    %c8 = arith.constant 8 : index
    %c0_35 = arith.constant 0 : index
    %c0_36 = arith.constant 0 : index
    %66 = vector.load %arg4[%c8, %c0_35, %c0_36] : memref<9x8x128xbf16, #tpu.memory_space<vmem>>, vector<1x8x128xbf16>
    %67 = vector.shape_cast %66 : vector<1x8x128xbf16> to vector<8x128xbf16>
    %cst_37 = arith.constant dense<0.000000e+00> : vector<256x128xf32>
    %68 = tpu.matmul %65, %67, %cst_37 {dimension_numbers = #tpu.dot_dimension_numbers<[1], [0], [0], [1], [0, 0, 1, 1], [], []>} : vector<256x8xbf16>, vector<8x128xbf16>, vector<256x128xf32> -> vector<256x128xf32>
    %69 = arith.addf %63, %68 : vector<256x128xf32>
    %c0_38 = arith.constant 0 : index
    %c0_39 = arith.constant 0 : index
    %70 = vector.load %arg5[%c0_38, %c0_39] : memref<1x128xf32, #tpu.memory_space<vmem>>, vector<1x128xf32>
    %71 = vector.broadcast %70 : vector<1x128xf32> to vector<256x128xf32>
    %72 = arith.addf %69, %71 : vector<256x128xf32>
    %cst_40 = arith.constant 0.000000e+00 : f32
    %73 = vector.broadcast %cst_40 : f32 to vector<256x128xf32>
    %74 = arith.maximumf %72, %73 : vector<256x128xf32>
    %75 = vector.shape_cast %74 : vector<256x128xf32> to vector<1x16x16x128xf32>
    %c0_41 = arith.constant 0 : index
    %c0_42 = arith.constant 0 : index
    %c0_43 = arith.constant 0 : index
    %c0_44 = arith.constant 0 : index
    %76 = vector.load %arg6[%c0_41, %c0_42, %c0_43, %c0_44] : memref<1x16x16x128xf32, #tpu.memory_space<vmem>>, vector<1x16x16x128xf32>
    tpu.vector_store %arg6[%c0_41, %c0_42, %c0_43, %c0_44], %75 {strides = array<i32>} : memref<1x16x16x128xf32, #tpu.memory_space<vmem>>, vector<1x16x16x128xf32>,
    return
  }
  func.func @transform_0(%arg0: i32, %arg1: i32, %arg2: i32) -> (i32, i32, i32, i32) {
    %c0_i32 = arith.constant 0 : i32
    %c0_i32_0 = arith.constant 0 : i32
    %c0_i32_1 = arith.constant 0 : i32
    %c0_i32_2 = arith.constant 0 : i32
    return %arg0, %c0_i32, %c0_i32_0, %c0_i32_1 : i32, i32, i32, i32
  }
  func.func @transform_1(%arg0: i32, %arg1: i32, %arg2: i32) -> (i32, i32, i32) {
    %c0_i32 = arith.constant 0 : i32
    %c0_i32_0 = arith.constant 0 : i32
    %c0_i32_1 = arith.constant 0 : i32
    return %c0_i32, %c0_i32_0, %arg1 : i32, i32, i32
  }
  func.func @transform_2(%arg0: i32, %arg1: i32, %arg2: i32) -> (i32, i32) {
    %c0_i32 = arith.constant 0 : i32
    %c0_i32_0 = arith.constant 0 : i32
    return %c0_i32, %arg1 : i32, i32
  }
  func.func @transform_3(%arg0: i32, %arg1: i32, %arg2: i32) -> (i32, i32, i32, i32) {
    %c0_i32 = arith.constant 0 : i32
    %c0_i32_0 = arith.constant 0 : i32
    return %arg0, %arg2, %c0_i32, %arg1 : i32, i32, i32, i32
  }
}

</mosaic_0001>

<bundles_post_ra>
// kernel: tpu_custom_call.1
= control target key start
LH: loop header
LB: loop body
LE: loop exit
PB: predicated region body
PF: predicated region fallthrough
CT: control target
= control target key end

     0   :  { %8 = vsyncpa [#allocation3], 0  ;;  %s6533_s0 = inlined_call_operand.vmem [shape: bf16[2,18,18,8], index: 0, kind: input, shape index: {}]   ;;  %s6534_s1 = inlined_call_operand.vmem [shape: bf16[9,8,128], index: 1, kind: input, shape index: {}]   ;;  %s6535_s2 = inlined_call_operand.vmem [shape: f32[1,128], index: 2, kind: input, shape index: {}]   ;;  %s6536_s3 = inlined_call_operand.hbm [shape: f32[2,16,16,128], index: 3, kind: output, shape index: {}]  }
   0x1   :  { %10 = vsyncpa [#allocation3 + $0x1], 0  ;;  %s4979_s12 = smov 0   ;;  %s4981_s13 = smov 0  }
   0x2   :  { %s4983_s14 = smov 0   ;;  %s4985_s15 = smov 0  }
   0x3   :  { %s4987_s16 = smov 0   ;;  %s4989_s17 = smov 0  }
   0x4 LB: > { %s4188_s18 = sadd.s32 4294967295, %s4955_s17   ;;  %s4189_s19 = sadd.s32 4294967294, %s4955_s17   ;;  %s4955_s17 = sphi %s4989_s17, %s16_s17   ;;  %s4951_s16 = sphi %s4987_s16, %s6553_s16   ;;  %s4947_s15 = sphi %s4985_s15, %s6552_s15   ;;  %s4943_s14 = sphi %s4983_s14, %s6551_s14   ;;  %s4939_s13 = sphi %s4981_s13, %s6550_s13   ;;  %s4935_s12 = sphi %s4979_s12, %s6549_s12  }
   0x5   : > { %s35_s20 = sadd.s32 1, %s4951_s16  ;;  %s124_s21 = sadd.s32 1, %s4943_s14 }
   0x6   : > { %p37_p0 = scmp.ge.s32.totalorder %s35_s20, 2  ;;  %p134_p1 = scmp.ne.s32.totalorder %s4943_s14, %s4939_s13 }
   0x7   : > { %p135_p2 = scmp.eq.s32.totalorder %s4188_s18, 1  ;;  %p140_p3 = scmp.ne.s32.totalorder %s4939_s13, %s4935_s12 }
   0x8   : > { %s6555_s20 = smov (%p37_p0, %s35_s20), 0  ;;  %p141_p5 = scmp.eq.s32.totalorder %s4189_s19, 1 }
   0x9   : > { %p5019_p4 = por %p135_p2, %p134_p1  ;;  %s117_s23 = ssub.s32 %s4951_s16, %s6555_s20 }
   0xa   : > { %p4194_p6 = scmp.ge.s32.totalorder %s4955_s17, 1  ;;  %p122_p7 = scmp.eq.s32.totalorder %s117_s23, 0 }
   0xb   : > { %p5026_p8 = por %p141_p5, %p140_p3  ;;  %p180_p9 = scmp.lt.s32.totalorder %s4955_s17, 3 }
   0xc   : > { %s5032_s25 = scalar_select %p122_p7, %s4943_s14, %s124_s21  }
   0xd   : > { %p181_p10 = pnand %p4194_p6, %p180_p9 }
   0xf   : > { %184 = sbr.rel (%p181_p10) target bundleno = 771 (0x303), region = 32 }
  0x14   : > { %v4197_v0 = vld [vmem:[%s6534_s1 + $0x4] sm:$0xf]  ;;  %vm764_vm0 = vcmask 1043456   ;;  %p211_p11 = scmp.lt.s32.totalorder %s4947_s15, 1  ;;  %v4310_v2 = vld [vmem:[%s6534_s1 + $0x8] sm:$0xf] }
  0x15   : > { %v766_v1 = vsel %vm764_vm0, %v4197_v0, 0  ;;  %v1307_v3 = vsel %vm764_vm0, %v4310_v2, 0  ;;  %v4375_v4 = vld [vmem:[%s6534_s1 + $0xc] sm:$0xf]  ;;  %v277_v5 = vld [vmem:[%s6534_s1] sm:$0xf] }
  0x16   : > { %4739 = vmatpush.bf16.msra.mxu1 %v766_v1  ;;  %4740 = vmatpush.bf16.msra.mxu2 %v766_v1  ;;  %s212_s30 = scalar_select %p211_p11, %s4947_s15, 1  ;;  %v4456_v6 = vld [vmem:[%s6534_s1 + $0x10] sm:$0xf]  ;;  %v1613_v7 = vsel %vm764_vm0, %v4375_v4, 0  ;;  %v986_v8 = vsel %vm764_vm0, %v277_v5, 0  ;;  %vm715_vm4 = vcmask 64512  }
  0x17   : > { %4741 = vmatpush.bf16.msra.mxu3 %v766_v1  ;;  %775 = vmatpush.bf16.msra.mxu0 %v766_v1  ;;  %v2219_v9 = vsel %vm764_vm0, %v4456_v6, 0  ;;  %vm278_vm1 = vsmask.f32 3328  ;;  %vm279_vm2 = vsmask.f32 7440  ;;  %vm1093_vm5 = vcmask 1042432  }
  0x18   : > { %s4742_s10 = smul.u32 216, %s212_s30  ;;  %vm5071_vm3 = vmor %vm278_vm1, %vm279_vm2  ;;  %vm1094_vm6 = vcmask 1046532   ;;  %s208_s5 = sand.u32 1, %s4939_s13  }
  0x19   : > { %vm5273_vm7 = vmor %vm1093_vm5, %vm1094_vm6  ;;  %s4195_s8 = sshll.u32 %s208_s5, 8  ;;  %s4738_s18 = sshll.u32 %s4947_s15, 8 }
  0x1a   : > { %1316 = vmatpush.bf16.msrb.mxu2 %v1307_v3  ;;  %995 = vmatpush.bf16.msrb.mxu1 %v986_v8  ;;  %s5059_s19 = scalar_lea.vmem %s6533_s0, %s4742_s10  ;;  %s6181_s9 = scalar_lea.vmem [#allocation2], %s4195_s8 }
  0x1b   : > { %1622 = vmatpush.bf16.msrb.mxu3 %v1613_v7  ;;  %2228 = vmatpush.bf16.msrb.mxu0 %v2219_v9  ;;  %v241_v10 = vld [vmem:[%s5059_s19 + $0x30] sm:$0xf]  ;;  %v242_v11 = vld [vmem:[%s5059_s19 + $0x34] sm:$0xf]  ;;  %v243_v12 = vld [vmem:[%s5059_s19 + $0x38] sm:$0x1]  ;;  %s4070_s23 = scalar_lea.hbm %s6536_s3, %s4738_s18 }
  0x1c   : > { %v378_v13 = vshrl.u32 %v241_v10, 16  ;;  %v381_v14 = vshll.u32 %v241_v10, 16  ;;  %v387_v15 = vshll.u32 %v242_v11, 16  ;;  %v391_v16 = vshrl.u32 %v242_v11, 16  ;;  %v253_v17 = vld [vmem:[%s5059_s19 + $0x60] sm:$0xf] }
  0x1d   : > { %v397_v18 = vshll.u32 %v243_v12, 16  ;;  %v254_v19 = vld [vmem:[%s5059_s19 + $0x64] sm:$0xf]  ;;  %v255_v20 = vld [vmem:[%s5059_s19 + $0x68] sm:$0x1]  ;;  %v474_v21 = vshrl.u32 %v253_v17, 16 }
  0x1e   : > { %v380_v22 = vrot.slane %v378_v13, 4  ;;  %v383_v23 = vrot.slane %v381_v14, 5  ;;  %v389_v24 = vrot.slane %v387_v15, 5  ;;  %v393_v25 = vrot.slane %v391_v16, 4  ;;  %v265_v26 = vld [vmem:[%s5059_s19 + $0x90] sm:$0xf] }
  0x1f   : > { %v399_v27 = vrot.slane %v397_v18, 5  ;;  %v476_v28 = vrot.slane %v474_v21, 4  ;;  %v477_v29 = vshll.u32 %v253_v17, 16  ;;  %v483_v30 = vshll.u32 %v254_v19, 16  ;;  %v266_v35 = vld [vmem:[%s5059_s19 + $0x94] sm:$0xf] }
  0x20   : > { %v384_v31 = vor.u32 %v383_v23, %v380_v22  ;;  %v394_v32 = vor.u32 %v393_v25, %v389_v24  ;;  %v487_v33 = vshrl.u32 %v254_v19, 16  ;;  %v493_v34 = vshll.u32 %v255_v20, 16  ;;  %v267_v45 = vld [vmem:[%s5059_s19 + $0x98] sm:$0x1]  ;;  %v5081_v61 = vld [vmem:[%s5059_s19] sm:$0xf] }
  0x21   : > { %v479_v37 = vrot.slane %v477_v29, 5  ;;  %v485_v38 = vrot.slane %v483_v30, 5  ;;  %v570_v39 = vshrl.u32 %v265_v26, 16  ;;  %v573_v47 = vshll.u32 %v265_v26, 16  ;;  %v5086_v1 = vld [vmem:[%s5059_s19 + $0x4] sm:$0xf] }
  0x22   : > { %v385_v40 = vrot.slane %v384_v31, 4  ;;  %v395_v41 = vrot.slane %v394_v32, 4  ;;  %v489_v42 = vrot.slane %v487_v33, 4  ;;  %v495_v43 = vrot.slane %v493_v34, 5  ;;  %v5089_v2 = vld [vmem:[%s5059_s19 + $0x8] sm:$0x1] }
  0x23   : > { %v480_v44 = vor.u32 %v479_v37, %v476_v28  ;;  %v572_v46 = vrot.slane %v570_v39, 4  ;;  %v579_v48 = vshll.u32 %v266_v35, 16  ;;  %v583_v52 = vshrl.u32 %v266_v35, 16  ;;  %v5102_v19 = vld [vmem:[%s5059_s19 + $0x3c] sm:$0xf]  ;;  %s4071_s26 = sshll.u32 %s6181_s9, 4  ;;  %s4072_s26 = int_to_ptr.vmem [resolvable:$true] %s4071_s26 }
  0x24   : > { %v390_v49 = vsel %vm5071_vm3, %v385_v40, %v389_v24  ;;  %v400_v50 = vsel %vm5071_vm3, %v395_v41, %v399_v27  ;;  %v490_v51 = vor.u32 %v489_v42, %v485_v38  ;;  %v575_v56 = vrot.slane %v573_v47, 5  ;;  %v5105_v20 = vld [vmem:[%s5059_s19 + $0x40] sm:$0xf]  ;;  %v5110_v25 = vld [vmem:[%s5059_s19 + $0x44] sm:$0x1]  ;;  %s4073_s27 = sshll.u32 %s4070_s23, 4  ;;  %s4074_s27 = int_to_ptr.hbm [resolvable:$true] %s4073_s27 }
  0x25   : > { %v675_v53 = vunpack.c.l.b16 %v390_v49  ;;  %v676_v54 = vunpack.c.l.b16 %v400_v50  ;;  %v481_v55 = vrot.slane %v480_v44, 4  ;;  %v581_v58 = vrot.slane %v579_v48, 5  ;;  %v256_v33 = vld [vmem:[%s5059_s19 + $0x6c] sm:$0xf]  ;;  %v258_v47 = vld [vmem:[%s5059_s19 + $0x74] sm:$0x1] }
  0x26   : > { %v491_v57 = vrot.slane %v490_v51, 4  ;;  %v585_v59 = vrot.slane %v583_v52, 4  ;;  %v589_v60 = vshll.u32 %v267_v45, 16  ;;  %v576_v0 = vor.u32 %v575_v56, %v572_v46  ;;  %s4055_s15 = scalar_lea.sflag [#allocation3], %s208_s5  ;;  %s4891_s28 = sshra.s32 %s4074_s27, 4  ;;  %s4892_s28 = int_to_ptr.hbm [resolvable:$true] %s4891_s28 }
  0x27   : > { %v703_v62 = vpack.c.b16 %v676_v54, %v675_v53  ;;  %v486_v63 = vsel %vm5071_vm3, %v481_v55, %v485_v38  ;;  %v282_v9 = vshrl.u32 %v5081_v61, 16  ;;  %v285_v10 = vshll.u32 %v5081_v61, 16  ;;  %s4893_s29 = scalar_lea.hbm %s4892_s28, 256  ;;  %s4897_s6 = scalar_lea.hbm %s6536_s3, 512 }
  0x28   : > { %v496_v3 = vsel %vm5071_vm3, %v491_v57, %v495_v43  ;;  %v683_v4 = vunpack.c.l.b16 %v486_v63  ;;  %v586_v5 = vor.u32 %v585_v59, %v581_v58  ;;  %v591_v6 = vrot.slane %v589_v60, 5  ;;  %v257_v43 = vld [vmem:[%s5059_s19 + $0x70] sm:$0xf]  ;;  %p4894_p12 = scmp.ne.s32.totalorder %s4892_s28, %s4893_s29  ;;  %p4898_p1 = scmp.lt.s32.totalorder %s4892_s28, %s6536_s3 }
  0x29   : > { %4202 = vmatmul.msk.bf16.vlgmr.msra.gmra.mxu1 %vm715_vm4, %v703_v62  ;;  %v684_v7 = vunpack.c.l.b16 %v496_v3  ;;  %v577_v8 = vrot.slane %v576_v0, 4  ;;  %v291_v12 = vshll.u32 %v5086_v1, 16  ;;  %v295_v13 = vshrl.u32 %v5086_v1, 16  ;;  %v268_v62 = vld [vmem:[%s5059_s19 + $0x9c] sm:$0xf]  ;;  %p4899_p2 = scmp.lt.s32.totalorder %s4897_s6, %s4893_s29 }
  0x2a   : > { %v587_v11 = vrot.slane %v586_v5, 4  ;;  %v301_v14 = vshll.u32 %v5089_v2, 16  ;;  %v284_v17 = vrot.slane %v282_v9, 4  ;;  %v287_v18 = vrot.slane %v285_v10, 5  ;;  %v270_v9 = vld [vmem:[%s5059_s19 + $0xa4] sm:$0x1]  ;;  %p4895_p13 = pnand %p4894_p12, %p5019_p4 }
  0x2b   : > { %v707_v15 = vpack.c.b16 %v684_v7, %v683_v4  ;;  %v582_v16 = vsel %vm5071_vm3, %v577_v8, %v581_v58  ;;  %v293_v23 = vrot.slane %v291_v12, 5  ;;  %v297_v24 = vrot.slane %v295_v13, 4  ;;  %v269_v4 = vld [vmem:[%s5059_s19 + $0xa0] sm:$0xf]  ;;  %p4900_p3 = por %p4899_p2, %p4898_p1 }
  0x2c   : > { %v592_v21 = vsel %vm5071_vm3, %v587_v11, %v591_v6  ;;  %v691_v22 = vunpack.c.l.b16 %v582_v16  ;;  %v288_v27 = vor.u32 %v287_v18, %v284_v17  ;;  %v303_v28 = vrot.slane %v301_v14, 5  ;;  %p4896_p0 = pneg %p4895_p13 }
  0x2d   : > { %4206 = vmatmul.msk.bf16.vlgmr.msra.gmra.mxu2 %vm715_vm4, %v707_v15  ;;  %v692_v26 = vunpack.c.l.b16 %v592_v21  ;;  %v298_v29 = vor.u32 %v297_v24, %v293_v23  ;;  %v402_v30 = vshrl.u32 %v5102_v19, 16  ;;  %v405_v31 = vshll.u32 %v5102_v19, 16  ;;  %v5135_v24 = vld [vmem:[%s5059_s19 + $0xc] sm:$0xf] }
  0x2e   : > { %v411_v32 = vshll.u32 %v5105_v20, 16  ;;  %v289_v35 = vrot.slane %v288_v27, 4  ;;  %v415_v37 = vshrl.u32 %v5105_v20, 16  ;;  %v421_v38 = vshll.u32 %v5110_v25, 16  ;;  %p4901_p5 = pnand %p4900_p3, %p4896_p0 }
  0x2f   : > { %v711_v34 = vpack.c.b16 %v692_v26, %v691_v22  ;;  %v299_v39 = vrot.slane %v298_v29, 4  ;;  %v404_v40 = vrot.slane %v402_v30, 4  ;;  %v407_v41 = vrot.slane %v405_v31, 5  ;;  %v5140_v30 = vld [vmem:[%s5059_s19 + $0x10] sm:$0xf] }
  0x30   : > { %v413_v42 = vrot.slane %v411_v32, 5  ;;  %v294_v44 = vsel %vm5071_vm3, %v289_v35, %v293_v23  ;;  %v417_v45 = vrot.slane %v415_v37, 4  ;;  %v423_v46 = vrot.slane %v421_v38, 5 }
  0x31   : > { %4210 = vmatmul.msk.bf16.vlgmr.msra.gmra.mxu3 %vm715_vm4, %v711_v34  ;;  %v498_v48 = vshrl.u32 %v256_v33, 16  ;;  %v304_v49 = vsel %vm5071_vm3, %v299_v39, %v303_v28  ;;  %v667_v50 = vunpack.c.l.b16 %v294_v44  ;;  %v408_v51 = vor.u32 %v407_v41, %v404_v40  ;;  %v5143_v34 = vld [vmem:[%s5059_s19 + $0x14] sm:$0x1]  ;;  %v5152_v44 = vld [vmem:[%s5059_s19 + $0x48] sm:$0xf] }
  0x32   : > { %v501_v52 = vshll.u32 %v256_v33, 16  ;;  %v668_v53 = vunpack.c.l.b16 %v304_v49  ;;  %v418_v54 = vor.u32 %v417_v45, %v413_v42  ;;  %v507_v56 = vshll.u32 %v257_v43, 16  ;;  %v5157_v49 = vld [vmem:[%s5059_s19 + $0x4c] sm:$0xf] }
  0x33   : > { %v500_v55 = vrot.slane %v498_v48, 4  ;;  %v409_v57 = vrot.slane %v408_v51, 4  ;;  %v511_v59 = vshrl.u32 %v257_v43, 16  ;;  %v517_v60 = vshll.u32 %v258_v47, 16 }
  0x34   : > { %v503_v58 = vrot.slane %v501_v52, 5  ;;  %v699_v63 = vpack.c.b16 %v668_v53, %v667_v50  ;;  %v419_v0 = vrot.slane %v418_v54, 4  ;;  %v509_v3 = vrot.slane %v507_v56, 5 }
  0x35   : > { %v414_v5 = vsel %vm5071_vm3, %v409_v57, %v413_v42  ;;  %v513_v7 = vrot.slane %v511_v59, 4  ;;  %v519_v8 = vrot.slane %v517_v60, 5  ;;  %v594_v12 = vshrl.u32 %v268_v62, 16 }
  0x36   : > { %v504_v6 = vor.u32 %v503_v58, %v500_v55  ;;  %4198 = vmatmul.msk.bf16.vlgmr.msra.gmra.mxu0 %vm715_vm4, %v699_v63  ;;  %v424_v10 = vsel %vm5071_vm3, %v419_v0, %v423_v46  ;;  %v677_v11 = vunpack.c.l.b16 %v414_v5  ;;  %v597_v13 = vshll.u32 %v268_v62, 16  ;;  %v5162_v58 = vld [vmem:[%s5059_s19 + $0x50] sm:$0x1] }
  0x37   : > { %v678_v14 = vunpack.c.l.b16 %v424_v10  ;;  %v514_v16 = vor.u32 %v513_v7, %v509_v3  ;;  %v603_v17 = vshll.u32 %v269_v4, 16  ;;  %v596_v18 = vrot.slane %v594_v12, 4 }
  0x38   : > { %v505_v15 = vrot.slane %v504_v6, 4  ;;  %v599_v21 = vrot.slane %v597_v13, 5  ;;  %v607_v22 = vshrl.u32 %v269_v4, 16  ;;  %v613_v23 = vshll.u32 %v270_v9, 16  ;;  %v259_v6 = vld [vmem:[%s5059_s19 + $0x78] sm:$0xf] }
  0x39   : > { %v704_v26 = vpack.c.b16 %v678_v14, %v677_v11  ;;  %v515_v28 = vrot.slane %v514_v16, 4  ;;  %v605_v29 = vrot.slane %v603_v17, 5  ;;  %v306_v38 = vshrl.u32 %v5135_v24, 16  ;;  %v260_v11 = vld [vmem:[%s5059_s19 + $0x7c] sm:$0xf] }
  0x3a   : > { %v510_v27 = vsel %vm5071_vm3, %v505_v15, %v509_v3  ;;  %v600_v32 = vor.u32 %v599_v21, %v596_v18  ;;  %v609_v33 = vrot.slane %v607_v22, 4  ;;  %v615_v37 = vrot.slane %v613_v23, 5  ;;  %v261_v21 = vld [vmem:[%s5059_s19 + $0x80] sm:$0x1] }
  0x3b   : > { %v685_v31 = vunpack.c.l.b16 %v510_v27  ;;  %4203 = vmatmul.msk.bf16.gmra.mxu1 %vm715_vm4, %v704_v26  ;;  %v520_v35 = vsel %vm5071_vm3, %v515_v28, %v519_v8  ;;  %v309_v39 = vshll.u32 %v5135_v24, 16  ;;  %v315_v43 = vshll.u32 %v5140_v30, 16 }
  0x3c   : > { %v686_v40 = vunpack.c.l.b16 %v520_v35  ;;  %v601_v41 = vrot.slane %v600_v32, 4  ;;  %v610_v42 = vor.u32 %v609_v33, %v605_v29  ;;  %v308_v45 = vrot.slane %v306_v38, 4 }
  0x3d   : > { %v311_v46 = vrot.slane %v309_v39, 5  ;;  %v319_v47 = vshrl.u32 %v5140_v30, 16  ;;  %v325_v48 = vshll.u32 %v5143_v34, 16  ;;  %v317_v53 = vrot.slane %v315_v43, 5 }
  0x3e   : > { %v708_v50 = vpack.c.b16 %v686_v40, %v685_v31  ;;  %v606_v51 = vsel %vm5071_vm3, %v601_v41, %v605_v29  ;;  %v611_v52 = vrot.slane %v610_v42, 4  ;;  %v426_v60 = vshrl.u32 %v5152_v44, 16  ;;  %v271_v40 = vld [vmem:[%s5059_s19 + $0xa8] sm:$0xf] }
  0x3f   : > { %v693_v54 = vunpack.c.l.b16 %v606_v51  ;;  %v312_v55 = vor.u32 %v311_v46, %v308_v45  ;;  %v321_v56 = vrot.slane %v319_v47, 4  ;;  %v327_v57 = vrot.slane %v325_v48, 5  ;;  %v272_v45 = vld [vmem:[%s5059_s19 + $0xac] sm:$0xf]  ;;  %v273_v46 = vld [vmem:[%s5059_s19 + $0xb0] sm:$0x1] }
  0x40   : > { %4207 = vmatmul.msk.bf16.gmra.mxu2 %vm715_vm4, %v708_v50  ;;  %v616_v59 = vsel %vm5071_vm3, %v611_v52, %v615_v37  ;;  %v429_v62 = vshll.u32 %v5152_v44, 16  ;;  %v435_v63 = vshll.u32 %v5157_v49, 16  ;;  %v439_v5 = vshrl.u32 %v5157_v49, 16 }
  0x41   : > { %v694_v0 = vunpack.c.l.b16 %v616_v59  ;;  %v313_v3 = vrot.slane %v312_v55, 4  ;;  %v322_v4 = vor.u32 %v321_v56, %v317_v53  ;;  %v428_v7 = vrot.slane %v426_v60, 4 }
  0x42   : > { %v431_v8 = vrot.slane %v429_v62, 5  ;;  %v437_v9 = vrot.slane %v435_v63, 5  ;;  %v445_v10 = vshll.u32 %v5162_v58, 16  ;;  %v441_v15 = vrot.slane %v439_v5, 4 }
  0x43   : > { %v712_v12 = vpack.c.b16 %v694_v0, %v693_v54  ;;  %v318_v13 = vsel %vm5071_vm3, %v313_v3, %v317_v53  ;;  %v323_v14 = vrot.slane %v322_v4, 4  ;;  %v522_v22 = vshrl.u32 %v259_v6, 16  ;;  %v5189_v4 = vld [vmem:[%s5059_s19 + $0x18] sm:$0xf] }
  0x44   : > { %v669_v16 = vunpack.c.l.b16 %v318_v13  ;;  %v432_v17 = vor.u32 %v431_v8, %v428_v7  ;;  %v447_v18 = vrot.slane %v445_v10, 5  ;;  %v442_v26 = vor.u32 %v441_v15, %v437_v9  ;;  %v5194_v8 = vld [vmem:[%s5059_s19 + $0x1c] sm:$0xf] }
  0x45   : > { %4211 = vmatmul.msk.bf16.gmra.mxu3 %vm715_vm4, %v712_v12  ;;  %v328_v23 = vsel %vm5071_vm3, %v323_v14, %v327_v57  ;;  %v525_v27 = vshll.u32 %v259_v6, 16  ;;  %v531_v28 = vshll.u32 %v260_v11, 16  ;;  %v524_v32 = vrot.slane %v522_v22, 4 }
  0x46   : > { %v670_v29 = vunpack.c.l.b16 %v328_v23  ;;  %v433_v31 = vrot.slane %v432_v17, 4  ;;  %v535_v33 = vshrl.u32 %v260_v11, 16  ;;  %v443_v35 = vrot.slane %v442_v26, 4  ;;  %v5208_v26 = vld [vmem:[%s5059_s19 + $0x54] sm:$0xf] }
  0x47   : > { %v527_v37 = vrot.slane %v525_v27, 5  ;;  %v533_v38 = vrot.slane %v531_v28, 5  ;;  %v541_v39 = vshll.u32 %v261_v21, 16  ;;  %v618_v54 = vshrl.u32 %v271_v40, 16 }
  0x48   : > { %v700_v41 = vpack.c.b16 %v670_v29, %v669_v16  ;;  %v438_v42 = vsel %vm5071_vm3, %v433_v31, %v437_v9  ;;  %v537_v43 = vrot.slane %v535_v33, 4  ;;  %v448_v47 = vsel %vm5071_vm3, %v443_v35, %v447_v18  ;;  %v5197_v9 = vld [vmem:[%s5059_s19 + $0x20] sm:$0x1] }
  0x49   : > { %v679_v48 = vunpack.c.l.b16 %v438_v42  ;;  %v528_v50 = vor.u32 %v527_v37, %v524_v32  ;;  %v543_v51 = vrot.slane %v541_v39, 5  ;;  %v680_v52 = vunpack.c.l.b16 %v448_v47  ;;  %v5211_v32 = vld [vmem:[%s5059_s19 + $0x58] sm:$0xf]  ;;  %v5216_v39 = vld [vmem:[%s5059_s19 + $0x5c] sm:$0x1] }
  0x4a   : > { %4199 = vmatmul.msk.bf16.gmra.mxu0 %vm715_vm4, %v700_v41  ;;  %v538_v53 = vor.u32 %v537_v43, %v533_v38  ;;  %v621_v55 = vshll.u32 %v271_v40, 16  ;;  %v627_v57 = vshll.u32 %v272_v45, 16  ;;  %v631_v59 = vshrl.u32 %v272_v45, 16 }
  0x4b   : > { %v529_v56 = vrot.slane %v528_v50, 4  ;;  %v637_v60 = vshll.u32 %v273_v46, 16  ;;  %v705_v62 = vpack.c.b16 %v680_v52, %v679_v48  ;;  %v620_v0 = vrot.slane %v618_v54, 4  ;;  %v262_v50 = vld [vmem:[%s5059_s19 + $0x84] sm:$0xf] }
  0x4c   : > { %v539_v63 = vrot.slane %v538_v53, 4  ;;  %v623_v3 = vrot.slane %v621_v55, 5  ;;  %v629_v6 = vrot.slane %v627_v57, 5  ;;  %v633_v7 = vrot.slane %v631_v59, 4 }
  0x4d   : > { %v534_v5 = vsel %vm5071_vm3, %v529_v56, %v533_v38  ;;  %4204 = vmatmul.msk.bf16.gmra.mxu1 %vm715_vm4, %v705_v62  ;;  %v639_v13 = vrot.slane %v637_v60, 5  ;;  %v330_v16 = vshrl.u32 %v5189_v4, 16  ;;  %v333_v17 = vshll.u32 %v5189_v4, 16  ;;  %v263_v60 = vld [vmem:[%s5059_s19 + $0x88] sm:$0xf] }
  0x4e   : > { %v544_v10 = vsel %vm5071_vm3, %v539_v63, %v543_v51  ;;  %v687_v11 = vunpack.c.l.b16 %v534_v5  ;;  %v624_v12 = vor.u32 %v623_v3, %v620_v0  ;;  %v634_v15 = vor.u32 %v633_v7, %v629_v6  ;;  %v264_v3 = vld [vmem:[%s5059_s19 + $0x8c] sm:$0x1] }
  0x4f   : > { %v688_v14 = vunpack.c.l.b16 %v544_v10  ;;  %v339_v21 = vshll.u32 %v5194_v8, 16  ;;  %v343_v22 = vshrl.u32 %v5194_v8, 16  ;;  %v349_v23 = vshll.u32 %v5197_v9, 16 }
  0x50   : > { %v625_v18 = vrot.slane %v624_v12, 4  ;;  %v635_v28 = vrot.slane %v634_v15, 4  ;;  %v332_v29 = vrot.slane %v330_v16, 4  ;;  %v335_v31 = vrot.slane %v333_v17, 5 }
  0x51   : > { %v709_v27 = vpack.c.b16 %v688_v14, %v687_v11  ;;  %v341_v35 = vrot.slane %v339_v21, 5  ;;  %v345_v37 = vrot.slane %v343_v22, 4  ;;  %v351_v38 = vrot.slane %v349_v23, 5  ;;  %v274_v22 = vld [vmem:[%s5059_s19 + $0xb4] sm:$0xf] }
  0x52   : > { %v630_v33 = vsel %vm5071_vm3, %v625_v18, %v629_v6  ;;  %v640_v40 = vsel %vm5071_vm3, %v635_v28, %v639_v13  ;;  %v336_v42 = vor.u32 %v335_v31, %v332_v29  ;;  %v450_v43 = vshrl.u32 %v5208_v26, 16  ;;  %v275_v29 = vld [vmem:[%s5059_s19 + $0xb8] sm:$0xf] }
  0x53   : > { %4208 = vmatmul.msk.bf16.gmra.mxu2 %vm715_vm4, %v709_v27  ;;  %v695_v41 = vunpack.c.l.b16 %v630_v33  ;;  %v696_v45 = vunpack.c.l.b16 %v640_v40  ;;  %v346_v46 = vor.u32 %v345_v37, %v341_v35  ;;  %v453_v47 = vshll.u32 %v5208_v26, 16 }
  0x54   : > { %v459_v48 = vshll.u32 %v5211_v32, 16  ;;  %v337_v51 = vrot.slane %v336_v42, 4  ;;  %v452_v52 = vrot.slane %v450_v43, 4  ;;  %v463_v53 = vshrl.u32 %v5211_v32, 16 }
  0x55   : > { %v469_v54 = vshll.u32 %v5216_v39, 16  ;;  %v713_v55 = vpack.c.b16 %v696_v45, %v695_v41  ;;  %v347_v56 = vrot.slane %v346_v46, 4  ;;  %v455_v57 = vrot.slane %v453_v47, 5 }
  0x56   : > { %v461_v59 = vrot.slane %v459_v48, 5  ;;  %v342_v62 = vsel %vm5071_vm3, %v337_v51, %v341_v35  ;;  %v465_v63 = vrot.slane %v463_v53, 4  ;;  %v546_v5 = vshrl.u32 %v262_v50, 16 }
  0x57   : > { %v471_v0 = vrot.slane %v469_v54, 5  ;;  %4212 = vmatmul.msk.bf16.gmra.mxu3 %vm715_vm4, %v713_v55  ;;  %v352_v6 = vsel %vm5071_vm3, %v347_v56, %v351_v38  ;;  %v671_v7 = vunpack.c.l.b16 %v342_v62  ;;  %v456_v10 = vor.u32 %v455_v57, %v452_v52  ;;  %v276_v38 = vld [vmem:[%s5059_s19 + $0xbc] sm:$0x1]  ;;  %v5243_v54 = vld [vmem:[%s5059_s19 + $0x24] sm:$0xf] }
  0x58   : > { %v549_v11 = vshll.u32 %v262_v50, 16  ;;  %v672_v12 = vunpack.c.l.b16 %v352_v6  ;;  %v466_v13 = vor.u32 %v465_v63, %v461_v59  ;;  %v548_v14 = vrot.slane %v546_v5, 4  ;;  %v5252_v5 = vld [vmem:[%s5059_s19 + $0x2c] sm:$0x1] }
  0x59   : > { %v555_v15 = vshll.u32 %v263_v60, 16  ;;  %v457_v16 = vrot.slane %v456_v10, 4  ;;  %v559_v18 = vshrl.u32 %v263_v60, 16  ;;  %v565_v21 = vshll.u32 %v264_v3, 16  ;;  %v5248_v60 = vld [vmem:[%s5059_s19 + $0x28] sm:$0xf] }
  0x5a   : > { %v551_v17 = vrot.slane %v549_v11, 5  ;;  %v701_v23 = vpack.c.b16 %v672_v12, %v671_v7  ;;  %v467_v27 = vrot.slane %v466_v13, 4  ;;  %v642_v42 = vshrl.u32 %v274_v22, 16 }
  0x5b   : > { %v557_v28 = vrot.slane %v555_v15, 5  ;;  %v462_v31 = vsel %vm5071_vm3, %v457_v16, %v461_v59  ;;  %v561_v35 = vrot.slane %v559_v18, 4  ;;  %v567_v37 = vrot.slane %v565_v21, 5 }
  0x5c   : > { %v552_v33 = vor.u32 %v551_v17, %v548_v14  ;;  %4200 = vmatmul.msk.bf16.gmra.mxu0 %vm715_vm4, %v701_v23  ;;  %v472_v40 = vsel %vm5071_vm3, %v467_v27, %v471_v0  ;;  %v681_v41 = vunpack.c.l.b16 %v462_v31  ;;  %v645_v43 = vshll.u32 %v274_v22, 16 }
  0x5d   : > { %v682_v45 = vunpack.c.l.b16 %v472_v40  ;;  %v562_v47 = vor.u32 %v561_v35, %v557_v28  ;;  %v651_v48 = vshll.u32 %v275_v29, 16  ;;  %v644_v50 = vrot.slane %v642_v42, 4 }
  0x5e   : > { %v553_v46 = vrot.slane %v552_v33, 4  ;;  %v647_v51 = vrot.slane %v645_v43, 5  ;;  %v655_v52 = vshrl.u32 %v275_v29, 16  ;;  %v661_v53 = vshll.u32 %v276_v38, 16  ;;  %v4328_v38 = vld [vmem:[%s5059_s19 + $0x10] sm:$0xf] }
  0x5f   : > { %v706_v55 = vpack.c.b16 %v682_v45, %v681_v41  ;;  %v563_v57 = vrot.slane %v562_v47, 4  ;;  %v653_v59 = vrot.slane %v651_v48, 5  ;;  %v1101_v62 = vrot.slane %v5089_v2, 5 }
  0x60   : > { %v558_v56 = vsel %vm5071_vm3, %v553_v46, %v557_v28  ;;  %v648_v0 = vor.u32 %v647_v51, %v644_v50  ;;  %v657_v3 = vrot.slane %v655_v52, 4  ;;  %v663_v7 = vrot.slane %v661_v53, 5  ;;  %v4327_v28 = vld [vmem:[%s5059_s19 + $0xc] sm:$0xf] }
  0x61   : > { %v689_v63 = vunpack.c.l.b16 %v558_v56  ;;  %4205 = vmatmul.msk.bf16.gmra.mxu1 %vm715_vm4, %v706_v55  ;;  %v568_v6 = vsel %vm5071_vm3, %v563_v57, %v567_v37  ;;  %v354_v10 = vshrl.u32 %v5243_v54, 16  ;;  %v357_v11 = vshll.u32 %v5243_v54, 16  ;;  %v4554_v37 = vld [vmem:[%s6534_s1 + $0x18] sm:$0xf] }
  0x62   : > { %v690_v12 = vunpack.c.l.b16 %v568_v6  ;;  %v649_v13 = vrot.slane %v648_v0, 4  ;;  %v658_v14 = vor.u32 %v657_v3, %v653_v59  ;;  %v363_v2 = vshll.u32 %v5248_v60, 16  ;;  %v4329_v0 = vld [vmem:[%s5059_s19 + $0x14] sm:$0x1] }
  0x63   : > { %v356_v15 = vrot.slane %v354_v10, 4  ;;  %v359_v16 = vrot.slane %v357_v11, 5  ;;  %v367_v17 = vshrl.u32 %v5248_v60, 16  ;;  %v373_v18 = vshll.u32 %v5252_v5, 16  ;;  %v4635_v11 = vld [vmem:[%s6534_s1 + $0x1c] sm:$0xf] }
  0x64   : > { %v710_v21 = vpack.c.b16 %v690_v12, %v689_v63  ;;  %v654_v22 = vsel %vm5071_vm3, %v649_v13, %v653_v59  ;;  %v659_v23 = vrot.slane %v658_v14, 4  ;;  %v365_v27 = vrot.slane %v363_v2, 5  ;;  %v4690_v13 = vld [vmem:[%s5059_s19] sm:$0xff] }
  0x65   : > { %v697_v29 = vunpack.c.l.b16 %v654_v22  ;;  %v360_v31 = vor.u32 %v359_v16, %v356_v15  ;;  %v369_v33 = vrot.slane %v367_v17, 4  ;;  %v375_v35 = vrot.slane %v373_v18, 5  ;;  %v4489_v18 = vld [vmem:[%s6534_s1 + $0x14] sm:$0xf] }
  0x66   : > { %4209 = vmatmul.msk.bf16.gmra.mxu2 %vm715_vm4, %v710_v21  ;;  %v664_v40 = vsel %vm5071_vm3, %v659_v23, %v663_v7  ;;  %v4294_v41 = vrot.slane %v5081_v61, 9  ;;  %v1098_v47 = vrot.slane %v5086_v1, 5  ;;  %v2875_v48 = vsel %vm764_vm0, %v4554_v37, 0  ;;  %v4668_v21 = vld [vmem:[%s6534_s1 + $0x20] sm:$0xf] }
  0x67   : > { %v698_v42 = vunpack.c.l.b16 %v664_v40  ;;  %v361_v43 = vrot.slane %v360_v31, 4  ;;  %v370_v45 = vor.u32 %v369_v33, %v365_v27  ;;  %v1737_v50 = vshrl.u32 %v4327_v28, 16  ;;  %2884 = vmatpush.bf16.msra.mxu2 %v2875_v48 }
  0x68   : > { %v1740_v51 = vshll.u32 %v4327_v28, 16  ;;  %v1746_v52 = vshll.u32 %v4328_v38, 16  ;;  %v1099_v56 = vsel %vm5273_vm7, %v4294_v41, %v1098_v47  ;;  %v1100_v59 = vrot.slane %v1098_v47, 4  ;;  %v4330_v41 = vld [vmem:[%s5059_s19 + $0x18] sm:$0xf] }
  0x69   : > { %v714_v53 = vpack.c.b16 %v698_v42, %v697_v29  ;;  %v366_v55 = vsel %vm5071_vm3, %v361_v43, %v365_v27  ;;  %v371_v61 = vrot.slane %v370_v45, 4  ;;  %v1210_v63 = vunpack.c.l.b16 %v1099_v56  ;;  %v4331_v45 = vld [vmem:[%s5059_s19 + $0x1c] sm:$0xf] }
  0x6a   : > { %v673_v57 = vunpack.c.l.b16 %v366_v55  ;;  %v1739_v1 = vrot.slane %v1737_v50, 4  ;;  %v1742_v6 = vrot.slane %v1740_v51, 5  ;;  %v1748_v7 = vrot.slane %v1746_v52, 5  ;;  %v4706_v55 = vld [vmem:[%s5059_s19 + $0xc] sm:$0xff] }
  0x6b   : > { %4213 = vmatmul.msk.bf16.gmra.mxu3 %vm715_vm4, %v714_v53  ;;  %v376_v3 = vsel %vm5071_vm3, %v371_v61, %v375_v35  ;;  %v1750_v10 = vshrl.u32 %v4328_v38, 16  ;;  %v1102_v14 = vsel %vm5273_vm7, %v1100_v59, %v1101_v62  ;;  %v1756_v17 = vshll.u32 %v4329_v0, 16 }
  0x6c   : > { %v674_v12 = vunpack.c.l.b16 %v376_v3  ;;  %v1211_v2 = vunpack.c.l.b16 %v1102_v14  ;;  %v1743_v15 = vor.u32 %v1742_v6, %v1739_v1  ;;  %v3481_v23 = vsel %vm764_vm0, %v4635_v11, 0  ;;  %v4332_v3 = vld [vmem:[%s5059_s19 + $0x20] sm:$0x1] }
  0x6d   : > { %v1752_v16 = vrot.slane %v1750_v10, 4  ;;  %3490 = vmatpush.bf16.msra.mxu3 %v3481_v23  ;;  %v2569_v62 = vsel %vm764_vm0, %v4489_v18, 0  ;;  %v3831_v31 = vsel %vm764_vm0, %v4668_v21, 0  ;;  %v4295_v33 = vrot.slane %v5135_v24, 9 }
  0x6e   : > { %v702_v22 = vpack.c.b16 %v674_v12, %v673_v57  ;;  %v1242_v27 = vpack.c.b16 %v1211_v2, %v1210_v63  ;;  %v1744_v28 = vrot.slane %v1743_v15, 4  ;;  %v1105_v35 = vrot.slane %v5140_v30, 5  ;;  %3840 = vmatpush.bf16.msra.mxu0 %v3831_v31  ;;  %2578 = vmatpush.bf16.msra.mxu1 %v2569_v62  ;;  %v4333_v15 = vld [vmem:[%s5059_s19 + $0x24] sm:$0xf] }
  0x6f   : > { %v1753_v29 = vor.u32 %v1752_v16, %v1748_v7  ;;  %v1758_v38 = vrot.slane %v1756_v17, 5  ;;  %v1108_v40 = vrot.slane %v5143_v34, 5  ;;  %v1761_v48 = vshrl.u32 %v4330_v41, 16  ;;  %v4334_v16 = vld [vmem:[%s5059_s19 + $0x28] sm:$0xf] }
  0x70   : > { %4201 = vmatmul.msk.bf16.gmra.mxu0 %vm715_vm4, %v702_v22  ;;  %v1106_v42 = vsel %vm5273_vm7, %v4295_v33, %v1105_v35  ;;  %v1107_v43 = vrot.slane %v1105_v35, 4  ;;  %v1749_v24 = vsel %vm5071_vm3, %v1744_v28, %v1748_v7  ;;  %v1764_v50 = vshll.u32 %v4330_v41, 16  ;;  %v4691_v7 = vld [vmem:[%s5059_s19 + $0xc] sm:$0xff] }
  0x71   : > { %4278 = vmatmul.msk.bf16.vlgmr.msrb.gmra.mxu1 %vm715_vm4, %v4690_v13  ;;  %v1754_v37 = vrot.slane %v1753_v29, 4  ;;  %v1212_v47 = vunpack.c.l.b16 %v1106_v42  ;;  %v1770_v52 = vshll.u32 %v4331_v45, 16  ;;  %v1774_v53 = vshrl.u32 %v4331_v45, 16  ;;  %v4707_v29 = vld [vmem:[%s5059_s19 + $0x18] sm:$0xff]  ;;  %v4335_v42 = vld [vmem:[%s5059_s19 + $0x2c] sm:$0x1] }
  0x72   : > { %v1109_v30 = vsel %vm5273_vm7, %v1107_v43, %v1108_v40  ;;  %v2122_v56 = vunpack.c.l.b16 %v1749_v24  ;;  %v1763_v59 = vrot.slane %v1761_v48, 4  ;;  %v1766_v63 = vrot.slane %v1764_v50, 5 }
  0x73   : > { %v1759_v34 = vsel %vm5071_vm3, %v1754_v37, %v1758_v38  ;;  %v1213_v51 = vunpack.c.l.b16 %v1109_v30  ;;  %v1772_v0 = vrot.slane %v1770_v52, 5  ;;  %v1776_v1 = vrot.slane %v1774_v53, 4 }
  0x74   : > { %v2123_v57 = vunpack.c.l.b16 %v1759_v34  ;;  %v1767_v10 = vor.u32 %v1766_v63, %v1763_v59  ;;  %v1780_v12 = vshll.u32 %v4332_v3, 16  ;;  %v1112_v17 = vrot.slane %v5194_v8, 5  ;;  %v4336_v34 = vld [vmem:[%s5059_s19 + $0x30] sm:$0xf] }
  0x75   : > { %v1243_v61 = vpack.c.b16 %v1213_v51, %v1212_v47  ;;  %v1777_v11 = vor.u32 %v1776_v1, %v1772_v0  ;;  %v1785_v18 = vshrl.u32 %v4333_v15, 16  ;;  %v1788_v21 = vshll.u32 %v4333_v15, 16  ;;  %v4692_v47 = vld [vmem:[%s5059_s19 + $0x18] sm:$0xff]  ;;  %v4337_v51 = vld [vmem:[%s5059_s19 + $0x34] sm:$0xf] }
  0x76   : > { %4311 = vmatmul.msk.bf16.vlgmr.msrb.gmra.mxu2 %vm715_vm4, %v1242_v27  ;;  %v2154_v6 = vpack.c.b16 %v2123_v57, %v2122_v56  ;;  %v1768_v13 = vrot.slane %v1767_v10, 4  ;;  %v1782_v2 = vrot.slane %v1780_v12, 5  ;;  %v1794_v27 = vshll.u32 %v4334_v16, 16 }
  0x77   : > { %v1778_v14 = vrot.slane %v1777_v11, 4  ;;  %v1798_v28 = vshrl.u32 %v4334_v16, 16  ;;  %v4296_v62 = vrot.slane %v5189_v4, 9  ;;  %v1114_v31 = vrot.slane %v1112_v17, 4  ;;  %v4338_v16 = vld [vmem:[%s5059_s19 + $0x38] sm:$0x1] }
  0x78   : > { %v1773_v22 = vsel %vm5071_vm3, %v1768_v13, %v1772_v0  ;;  %v1115_v8 = vrot.slane %v5197_v9, 5  ;;  %v1787_v37 = vrot.slane %v1785_v18, 4  ;;  %v1790_v38 = vrot.slane %v1788_v21, 5 }
  0x79   : > { %v1783_v23 = vsel %vm5071_vm3, %v1778_v14, %v1782_v2  ;;  %v2124_v33 = vunpack.c.l.b16 %v1773_v22  ;;  %v1796_v40 = vrot.slane %v1794_v27, 5  ;;  %v1800_v41 = vrot.slane %v1798_v28, 4 }
  0x7a   : > { %v2125_v35 = vunpack.c.l.b16 %v1783_v23  ;;  %v1113_v43 = vsel %vm5273_vm7, %v4296_v62, %v1112_v17  ;;  %v1116_v4 = vsel %vm5273_vm7, %v1114_v31, %v1115_v8  ;;  %v1791_v9 = vor.u32 %v1790_v38, %v1787_v37  ;;  %v4693_v23 = vld [vmem:[%s5059_s19 + $0x24] sm:$0xff]  ;;  %v4339_v8 = vld [vmem:[%s5059_s19 + $0x3c] sm:$0xf] }
  0x7b   : > { %4440 = vmatmul.msk.bf16.vlgmr.msrb.gmra.mxu3 %vm715_vm4, %v4706_v55  ;;  %v1801_v24 = vor.u32 %v1800_v41, %v1796_v40  ;;  %v1804_v30 = vshll.u32 %v4335_v42, 16  ;;  %v1214_v48 = vunpack.c.l.b16 %v1113_v43  ;;  %v1215_v50 = vunpack.c.l.b16 %v1116_v4 }
  0x7c   : > { %v2155_v45 = vpack.c.b16 %v2125_v35, %v2124_v33  ;;  %v1792_v52 = vrot.slane %v1791_v9, 4  ;;  %v1119_v56 = vrot.slane %v5248_v60, 5  ;;  %v1809_v57 = vshrl.u32 %v4336_v34, 16  ;;  %v4708_v60 = vld [vmem:[%s5059_s19 + $0x24] sm:$0xff]  ;;  %v4340_v33 = vld [vmem:[%s5059_s19 + $0x40] sm:$0xf] }
  0x7d   : > { %v1802_v53 = vrot.slane %v1801_v24, 4  ;;  %v1806_v55 = vrot.slane %v1804_v30, 5  ;;  %v1812_v59 = vshll.u32 %v4336_v34, 16  ;;  %v1818_v63 = vshll.u32 %v4337_v51, 16  ;;  %v4709_v24 = vld [vmem:[%s5059_s19 + $0x30] sm:$0xff] }
  0x7e   : > { %v1822_v0 = vshrl.u32 %v4337_v51, 16  ;;  %v1797_v1 = vsel %vm5071_vm3, %v1792_v52, %v1796_v40  ;;  %v1122_v10 = vrot.slane %v5252_v5, 5  ;;  %v1811_v11 = vrot.slane %v1809_v57, 4  ;;  %v4801_v40 = vld [vmem:[%s5059_s19 + $0x34] sm:$0xf] }
  0x7f   : > { %v1807_v3 = vsel %vm5071_vm3, %v1802_v53, %v1806_v55  ;;  %v1814_v12 = vrot.slane %v1812_v59, 5  ;;  %v1820_v13 = vrot.slane %v1818_v63, 5  ;;  %v2126_v2 = vunpack.c.l.b16 %v1797_v1  ;;  %v4803_v51 = vld [vmem:[%s5059_s19 + $0x38] sm:$0x1]  ;;  %v4341_v57 = vld [vmem:[%s5059_s19 + $0x44] sm:$0x1] }
  0x80   : > { %4457 = vmatmul.msk.bf16.vlgmr.msrb.gmra.mxu0 %vm715_vm4, %v2154_v6  ;;  %v4297_v6 = vrot.slane %v5243_v54, 9  ;;  %v1824_v14 = vrot.slane %v1822_v0, 4  ;;  %v2127_v15 = vunpack.c.l.b16 %v1807_v3  ;;  %v1828_v21 = vshll.u32 %v4338_v16, 16 }
  0x81   : > { %4279 = vmatmul.msk.bf16.gmra.mxu1 %vm715_vm4, %v4691_v7  ;;  %v1121_v7 = vrot.slane %v1119_v56, 4  ;;  %v1815_v5 = vor.u32 %v1814_v12, %v1811_v11  ;;  %v1126_v41 = vrot.slane %v4801_v40, 5  ;;  %v1833_v43 = vshrl.u32 %v4339_v8, 16 }
  0x82   : > { %v1120_v17 = vsel %vm5273_vm7, %v4297_v6, %v1119_v56  ;;  %v1825_v18 = vor.u32 %v1824_v14, %v1820_v13  ;;  %v2156_v22 = vpack.c.b16 %v2127_v15, %v2126_v2  ;;  %v1830_v31 = vrot.slane %v1828_v21, 5 }
  0x83   : > { %v1123_v54 = vsel %vm5273_vm7, %v1121_v7, %v1122_v10  ;;  %v1216_v27 = vunpack.c.l.b16 %v1120_v17  ;;  %v1836_v4 = vshll.u32 %v4339_v8, 16  ;;  %v1128_v34 = vrot.slane %v1126_v41, 4  ;;  %v4694_v7 = vld [vmem:[%s5059_s19 + $0x30] sm:$0xff]  ;;  %v4342_v17 = vld [vmem:[%s5059_s19 + $0x48] sm:$0xf] }
  0x84   : > { %v1217_v28 = vunpack.c.l.b16 %v1123_v54  ;;  %v1826_v62 = vrot.slane %v1825_v18, 4  ;;  %v1129_v52 = vrot.slane %v4803_v51, 5  ;;  %v1835_v53 = vrot.slane %v1833_v43, 4  ;;  %v4343_v54 = vld [vmem:[%s5059_s19 + $0x4c] sm:$0xf] }
  0x85   : > { %v1838_v55 = vrot.slane %v1836_v4, 5  ;;  %v1852_v6 = vshll.u32 %v4341_v57, 16  ;;  %v1133_v18 = vrot.slane %v5105_v20, 5  ;;  %v4299_v8 = vrot.slane %v5102_v19, 9 }
  0x86   : > { %4312 = vmatmul.msk.bf16.gmra.mxu2 %vm715_vm4, %v1243_v61  ;;  %v1244_v61 = vpack.c.b16 %v1215_v50, %v1214_v48  ;;  %v1245_v35 = vpack.c.b16 %v1217_v28, %v1216_v27  ;;  %v1831_v38 = vsel %vm5071_vm3, %v1826_v62, %v1830_v31  ;;  %v4802_v48 = vld [vmem:[%s5059_s19 + $0x30] sm:$0xf]  ;;  %v1130_v63 = vsel %vm5273_vm7, %v1128_v34, %v1129_v52  ;;  %v4710_v62 = vld [vmem:[%s5059_s19 + $0x3c] sm:$0xff] }
  0x87   : > { %v2129_v30 = vunpack.c.l.b16 %v1831_v38  ;;  %v4298_v50 = vrot.slane %v4802_v48, 9  ;;  %v1839_v1 = vor.u32 %v1838_v55, %v1835_v53  ;;  %v1219_v11 = vunpack.c.l.b16 %v1130_v63  ;;  %v4345_v53 = vld [vmem:[%s5059_s19 + $0x54] sm:$0xf]  ;;  %v4346_v55 = vld [vmem:[%s5059_s19 + $0x58] sm:$0xf] }
  0x88   : > { %v1854_v2 = vrot.slane %v1852_v6, 5  ;;  %v1860_v27 = vshll.u32 %v4342_v17, 16  ;;  %v1866_v28 = vshll.u32 %v4343_v54, 16  ;;  %v1136_v20 = vrot.slane %v5110_v25, 5 }
  0x89   : > { %v1127_v59 = vsel %vm5273_vm7, %v4298_v50, %v1126_v41  ;;  %v1134_v19 = vsel %vm5273_vm7, %v4299_v8, %v1133_v18  ;;  %v1890_v6 = vshll.u32 %v4346_v55, 16 }
  0x8a   : > { %v1862_v41 = vrot.slane %v1860_v27, 5  ;;  %v1868_v43 = vrot.slane %v1866_v28, 5  ;;  %v1220_v51 = vunpack.c.l.b16 %v1134_v19 }
  0x8b   : > { %4441 = vmatmul.msk.bf16.gmra.mxu3 %vm715_vm4, %v4707_v29  ;;  %v1816_v29 = vrot.slane %v1815_v5, 4 }
  0x8d   : > { %v1821_v37 = vsel %vm5071_vm3, %v1816_v29, %v1820_v13  ;;  %v1840_v13 = vrot.slane %v1839_v1, 4  ;;  %v1870_v29 = vshrl.u32 %v4343_v54, 16  ;;  %v1881_v1 = vshrl.u32 %v4345_v53, 16  ;;  %v4711_v54 = vld [vmem:[%s5059_s19 + $0x48] sm:$0xff] }
  0x8e   : > { %v2128_v9 = vunpack.c.l.b16 %v1821_v37 }
  0x8f   : > { %v1872_v4 = vrot.slane %v1870_v29, 4  ;;  %v4347_v29 = vld [vmem:[%s5059_s19 + $0x5c] sm:$0x1] }
  0x90   : > { %4458 = vmatmul.msk.bf16.gmra.mxu0 %vm715_vm4, %v2155_v45  ;;  %v1842_v45 = vshll.u32 %v4340_v33, 16  ;;  %v2157_v0 = vpack.c.b16 %v2129_v30, %v2128_v9  ;;  %v4695_v30 = vld [vmem:[%s5059_s19 + $0x3c] sm:$0xff] }
  0x91   : > { %4280 = vmatmul.msk.bf16.gmra.mxu1 %vm715_vm4, %v4692_v47  ;;  %v1846_v47 = vshrl.u32 %v4340_v33, 16  ;;  %v1135_v33 = vrot.slane %v1133_v18, 4  ;;  %v1873_v50 = vor.u32 %v1872_v4, %v1868_v43 }
  0x93   : > { %v1848_v56 = vrot.slane %v1846_v47, 4  ;;  %v1137_v47 = vsel %vm5273_vm7, %v1135_v33, %v1136_v20  ;;  %v1874_v57 = vrot.slane %v1873_v50, 4 }
  0x94   : > { %v1221_v52 = vunpack.c.l.b16 %v1137_v47 }
  0x96   : > { %4313 = vmatmul.msk.bf16.gmra.mxu2 %vm715_vm4, %v1244_v61  ;;  %v1844_v61 = vrot.slane %v1842_v45, 5  ;;  %v4344_v45 = vld [vmem:[%s5059_s19 + $0x50] sm:$0x1]  ;;  %v1247_v63 = vpack.c.b16 %v1221_v52, %v1220_v51  ;;  %v1147_v52 = vrot.slane %v5211_v32, 5  ;;  %v1150_v32 = vrot.slane %v5216_v39, 5 }
  0x97   : > { %v1876_v34 = vshll.u32 %v4344_v45, 16 }
  0x98   : > { %v1849_v3 = vor.u32 %v1848_v56, %v1844_v61  ;;  %v1845_v21 = vsel %vm5071_vm3, %v1840_v13, %v1844_v61 }
  0x9a   : > { %v1850_v14 = vrot.slane %v1849_v3, 4  ;;  %v1884_v3 = vshll.u32 %v4345_v53, 16 }
  0x9b   : > { %4442 = vmatmul.msk.bf16.gmra.mxu3 %vm715_vm4, %v4708_v60  ;;  %v1218_v60 = vunpack.c.l.b16 %v1127_v59  ;;  %v1878_v59 = vrot.slane %v1876_v34, 5 }
  0x9d   : > { %v1246_v16 = vpack.c.b16 %v1219_v11, %v1218_v60  ;;  %v1894_v60 = vshrl.u32 %v4346_v55, 16  ;;  %v1879_v13 = vsel %vm5071_vm3, %v1874_v57, %v1878_v59 }
  0x9e   : > { %v2133_v28 = vunpack.c.l.b16 %v1879_v13 }
  0xa0   : > { %4459 = vmatmul.msk.bf16.gmra.mxu0 %vm715_vm4, %v2156_v22  ;;  %v1855_v22 = vsel %vm5071_vm3, %v1850_v14, %v1854_v2  ;;  %v1883_v2 = vrot.slane %v1881_v1, 4 }
  0xa1   : > { %4281 = vmatmul.msk.bf16.gmra.mxu1 %vm715_vm4, %v4693_v23  ;;  %v1857_v23 = vshrl.u32 %v4342_v17, 16  ;;  %v2131_v37 = vunpack.c.l.b16 %v1855_v22  ;;  %v1892_v17 = vrot.slane %v1890_v6, 5  ;;  %v1143_v22 = vrot.slane %v5162_v58, 5 }
  0xa3   : > { %v1859_v40 = vrot.slane %v1857_v23, 4  ;;  %v1896_v23 = vrot.slane %v1894_v60, 4  ;;  %v1149_v60 = vrot.slane %v1147_v52, 4 }
  0xa5   : > { %v1863_v48 = vor.u32 %v1862_v41, %v1859_v40  ;;  %v1897_v58 = vor.u32 %v1896_v23, %v1892_v17  ;;  %v4696_v40 = vld [vmem:[%s5059_s19 + $0x48] sm:$0xff] }
  0xa6   : > { %v5371_v42 = vpop.f32.mrf.mxu1  ;;  %4314 = vmatmul.msk.bf16.gmra.mxu2 %vm715_vm4, %v1245_v35  ;;  %v2130_v35 = vunpack.c.l.b16 %v1845_v21 }
  0xa7   : > { %v1864_v56 = vrot.slane %v1863_v48, 4  ;;  %v1898_v19 = vrot.slane %v1897_v58, 4  ;;  %v4349_v48 = vld [vmem:[%s5059_s19 + $0x64] sm:$0xf] }
  0xa8   : > { %v2158_v25 = vpack.c.b16 %v2131_v37, %v2130_v35  ;;  %v1900_v35 = vshll.u32 %v4347_v29, 16  ;;  %v1914_v57 = vshll.u32 %v4349_v48, 16  ;;  %v1918_v59 = vshrl.u32 %v4349_v48, 16 }
  0xa9   : > { %v1869_v11 = vsel %vm5071_vm3, %v1864_v56, %v1868_v43 }
  0xaa   : > { %v2132_v27 = vunpack.c.l.b16 %v1869_v11  ;;  %v1902_v47 = vrot.slane %v1900_v35, 5 }
  0xab   : > { %4443 = vmatmul.msk.bf16.gmra.mxu3 %vm715_vm4, %v4709_v24 }
  0xac   : > { %v2159_v37 = vpack.c.b16 %v2133_v28, %v2132_v27  ;;  %v1903_v51 = vsel %vm5071_vm3, %v1898_v19, %v1902_v47  ;;  %v4697_v28 = vld [vmem:[%s5059_s19 + $0x54] sm:$0xff]  ;;  %v4804_v19 = vld [vmem:[%s5059_s19 + $0x64] sm:$0xf] }
  0xad   : > { %v2135_v6 = vunpack.c.l.b16 %v1903_v51  ;;  %v1154_v47 = vrot.slane %v4804_v19, 5 }
  0xae   : > { %v5384_v10 = vpop.f32.mrf.mxu1 }
  0xb0   : > { %v5386_v12 = vpop.f32.mrf.mxu2  ;;  %4460 = vmatmul.msk.bf16.gmra.mxu0 %vm715_vm4, %v2157_v0 }
  0xb1   : > { %4282 = vmatmul.msk.bf16.gmra.mxu1 %vm715_vm4, %v4694_v7  ;;  %v1140_v7 = vrot.slane %v5157_v49, 5  ;;  %v4300_v49 = vrot.slane %v5152_v44, 9 }
  0xb3   : > { %v5390_v15 = vpop.f32.mrf.mxu0  ;;  %v1142_v21 = vrot.slane %v1140_v7, 4  ;;  %v1141_v20 = vsel %vm5273_vm7, %v4300_v49, %v1140_v7  ;;  %v4301_v7 = vrot.slane %v5208_v26, 9  ;;  %v1151_v26 = vsel %vm5273_vm7, %v1149_v60, %v1150_v32 }
  0xb4   : > { %v5394_v5 = vpop.f32.mrf.mxu3  ;;  %v1222_v41 = vunpack.c.l.b16 %v1141_v20  ;;  %v1225_v20 = vunpack.c.l.b16 %v1151_v26 }
  0xb5   : > { %v1144_v44 = vsel %vm5273_vm7, %v1142_v21, %v1143_v22  ;;  %v1148_v21 = vsel %vm5273_vm7, %v4301_v7, %v1147_v52  ;;  %v1156_v7 = vrot.slane %v1154_v47, 4 }
  0xb6   : > { %4315 = vmatmul.msk.bf16.gmra.mxu2 %vm715_vm4, %v1246_v16  ;;  %v1886_v16 = vrot.slane %v1884_v3, 5  ;;  %v1223_v43 = vunpack.c.l.b16 %v1144_v44  ;;  %v4712_v3 = vld [vmem:[%s5059_s19 + $0x54] sm:$0xff] }
  0xb8   : > { %v5403_v31 = vpop.f32.mrf.mxu1  ;;  %v5407_v38 = vpop.f32.mrf.mxu2  ;;  %v1887_v8 = vor.u32 %v1886_v16, %v1883_v2  ;;  %v1248_v50 = vpack.c.b16 %v1223_v43, %v1222_v41  ;;  %v1916_v2 = vrot.slane %v1914_v57, 5  ;;  %v1920_v16 = vrot.slane %v1918_v59, 4  ;;  %v4351_v41 = vld [vmem:[%s5059_s19 + $0x6c] sm:$0xf]  ;;  %v4352_v43 = vld [vmem:[%s5059_s19 + $0x70] sm:$0xf] }
  0xb9   : > { %v1932_v51 = vshll.u32 %v4351_v41, 16  ;;  %v1938_v52 = vshll.u32 %v4352_v43, 16  ;;  %v4805_v57 = vld [vmem:[%s5059_s19 + $0x68] sm:$0x1] }
  0xba   : > { %v1888_v45 = vrot.slane %v1887_v8, 4  ;;  %v1921_v23 = vor.u32 %v1920_v16, %v1916_v2  ;;  %v1224_v8 = vunpack.c.l.b16 %v1148_v21  ;;  %v1157_v59 = vrot.slane %v4805_v57, 5  ;;  %v4353_v21 = vld [vmem:[%s5059_s19 + $0x74] sm:$0x1] }
  0xbb   : > { %4444 = vmatmul.msk.bf16.gmra.mxu3 %vm715_vm4, %v4710_v62  ;;  %v5415_v9 = vpop.f32.mrf.mxu0  ;;  %v1940_v16 = vrot.slane %v1938_v52, 5  ;;  %v4807_v52 = vld [vmem:[%s5059_s19 + $0x70] sm:$0xf] }
  0xbc   : > { %v5417_v24 = vpop.f32.mrf.mxu3  ;;  %v1893_v34 = vsel %vm5071_vm3, %v1888_v45, %v1892_v17  ;;  %v1922_v35 = vrot.slane %v1921_v23, 4 }
  0xbd   : > { %v2134_v1 = vunpack.c.l.b16 %v1893_v34  ;;  %v1929_v34 = vshrl.u32 %v4351_v41, 16 }
  0xbf   : > { %v2160_v22 = vpack.c.b16 %v2135_v6, %v2134_v1  ;;  %v4713_v1 = vld [vmem:[%s5059_s19 + $0x60] sm:$0xff] }
  0xc0   : > { %4461 = vmatmul.msk.bf16.gmra.mxu0 %vm715_vm4, %v2158_v25  ;;  %v5423_v61 = vpop.f32.mrf.mxu1 }
  0xc1   : > { %4283 = vmatmul.msk.bf16.gmra.mxu1 %vm715_vm4, %v4695_v30  ;;  %v4348_v30 = vld [vmem:[%s5059_s19 + $0x60] sm:$0xf] }
  0xc2   : > { %v1905_v55 = vshrl.u32 %v4348_v30, 16  ;;  %v1908_v56 = vshll.u32 %v4348_v30, 16 }
  0xc3   : > { %v5426_v0 = vpop.f32.mrf.mxu2 }
  0xc4   : > { %v1907_v11 = vrot.slane %v1905_v55, 4  ;;  %v1910_v13 = vrot.slane %v1908_v56, 5  ;;  %v1942_v55 = vshrl.u32 %v4352_v43, 16 }
  0xc6   : > { %4316 = vmatmul.msk.bf16.gmra.mxu2 %vm715_vm4, %v1247_v63  ;;  %v1911_v39 = vor.u32 %v1910_v13, %v1907_v11  ;;  %v1931_v13 = vrot.slane %v1929_v34, 4 }
  0xc7   : > { %v5433_v14 = vpop.f32.mrf.mxu0 }
  0xc8   : > { %v5437_v18 = vpop.f32.mrf.mxu3  ;;  %v1912_v58 = vrot.slane %v1911_v39, 4 }
  0xca   : > { %v5442_v62 = vpop.f32.mrf.mxu1  ;;  %v1917_v48 = vsel %vm5071_vm3, %v1912_v58, %v1916_v2  ;;  %v1934_v2 = vrot.slane %v1932_v51, 5  ;;  %v4355_v51 = vld [vmem:[%s5059_s19 + $0x7c] sm:$0xf] }
  0xcb   : > { %4445 = vmatmul.msk.bf16.gmra.mxu3 %vm715_vm4, %v4711_v54  ;;  %v5445_v33 = vpop.f32.mrf.mxu2  ;;  %v4350_v54 = vld [vmem:[%s5059_s19 + $0x68] sm:$0x1]  ;;  %v2136_v60 = vunpack.c.l.b16 %v1917_v48 }
  0xcc   : > { %v1924_v27 = vshll.u32 %v4350_v54, 16  ;;  %v1944_v54 = vrot.slane %v1942_v55, 4  ;;  %v1161_v55 = vrot.slane %v4807_v52, 5 }
  0xcf   : > { %v5452_v4 = vpop.f32.mrf.mxu0 }
  0xd0   : > { %4462 = vmatmul.msk.bf16.gmra.mxu0 %vm715_vm4, %v2159_v37  ;;  %v5455_v25 = vpop.f32.mrf.mxu3  ;;  %v1926_v37 = vrot.slane %v1924_v27, 5  ;;  %v4698_v27 = vld [vmem:[%s5059_s19 + $0x60] sm:$0xff] }
  0xd1   : > { %4284 = vmatmul.msk.bf16.gmra.mxu1 %vm715_vm4, %v4696_v40  ;;  %v1249_v40 = vpack.c.b16 %v1225_v20, %v1224_v8  ;;  %v1945_v8 = vor.u32 %v1944_v54, %v1940_v16  ;;  %v1948_v20 = vshll.u32 %v4353_v21, 16  ;;  %v4714_v54 = vld [vmem:[%s5059_s19 + $0x6c] sm:$0xff] }
  0xd2   : > { %v5465_v53 = vpop.f32.mrf.mxu1 }
  0xd3   : > { %v1950_v48 = vrot.slane %v1948_v20, 5 }
  0xd6   : > { %v5467_v63 = vpop.f32.mrf.mxu2  ;;  %4317 = vmatmul.msk.bf16.gmra.mxu2 %vm715_vm4, %v1248_v50  ;;  %v1927_v50 = vsel %vm5071_vm3, %v1922_v35, %v1926_v37 }
  0xd7   : > { %v2137_v32 = vunpack.c.l.b16 %v1927_v50  ;;  %v4354_v50 = vld [vmem:[%s5059_s19 + $0x78] sm:$0xf] }
  0xd8   : > { %v1953_v57 = vshrl.u32 %v4354_v50, 16 }
  0xd9   : > { %v5473_v17 = vpop.f32.mrf.mxu0  ;;  %v2161_v39 = vpack.c.b16 %v2137_v32, %v2136_v60 }
  0xda   : > { %v5476_v49 = vpop.f32.mrf.mxu3 }
  0xdb   : > { %4446 = vmatmul.msk.bf16.gmra.mxu3 %vm715_vm4, %v4712_v3  ;;  %v4806_v3 = vld [vmem:[%s5059_s19 + $0x60] sm:$0xf] }
  0xdc   : > { %v4302_v6 = vrot.slane %v4806_v3, 9 }
  0xde   : > { %v5484_v29 = vpop.f32.mrf.mxu1  ;;  %v5486_v44 = vpop.f32.mrf.mxu2  ;;  %v1155_v26 = vsel %vm5273_vm7, %v4302_v6, %v1154_v47  ;;  %v1946_v47 = vrot.slane %v1945_v8, 4  ;;  %v1962_v6 = vshll.u32 %v4355_v51, 16 }
  0xdf   : > { %v1226_v37 = vunpack.c.l.b16 %v1155_v26  ;;  %v4809_v26 = vld [vmem:[%s5059_s19 + $0x6c] sm:$0xf] }
  0xe0   : > { %4463 = vmatmul.msk.bf16.gmra.mxu0 %vm715_vm4, %v2160_v22  ;;  %v1158_v22 = vsel %vm5273_vm7, %v1156_v7, %v1157_v59  ;;  %v1956_v59 = vshll.u32 %v4354_v50, 16  ;;  %v1951_v3 = vsel %vm5071_vm3, %v1946_v47, %v1950_v48  ;;  %v1966_v7 = vshrl.u32 %v4355_v51, 16  ;;  %v4699_v51 = vld [vmem:[%s5059_s19 + $0x6c] sm:$0xff] }
  0xe1   : > { %4285 = vmatmul.msk.bf16.gmra.mxu1 %vm715_vm4, %v4697_v28  ;;  %v5492_v45 = vpop.f32.mrf.mxu0  ;;  %v1935_v28 = vor.u32 %v1934_v2, %v1931_v13  ;;  %v4808_v13 = vld [vmem:[%s5059_s19 + $0x74] sm:$0x1] }
  0xe2   : > { %v5495_v30 = vpop.f32.mrf.mxu3  ;;  %v1164_v2 = vrot.slane %v4808_v13, 5  ;;  %v1958_v8 = vrot.slane %v1956_v59, 5 }
  0xe3   : > { %v1936_v19 = vrot.slane %v1935_v28, 4  ;;  %v1955_v28 = vrot.slane %v1953_v57, 4 }
  0xe5   : > { %v1959_v50 = vor.u32 %v1958_v8, %v1955_v28 }
  0xe6   : > { %4318 = vmatmul.msk.bf16.gmra.mxu2 %vm715_vm4, %v1249_v40  ;;  %v5502_v56 = vpop.f32.mrf.mxu1  ;;  %v1227_v40 = vunpack.c.l.b16 %v1158_v22  ;;  %v4303_v22 = vrot.slane %v4809_v26, 9 }
  0xe8   : > { %v1250_v34 = vpack.c.b16 %v1227_v40, %v1226_v37  ;;  %v1968_v37 = vrot.slane %v1966_v7, 4  ;;  %v1162_v47 = vsel %vm5273_vm7, %v4303_v22, %v1161_v55 }
  0xe9   : > { %v5507_v11 = vpop.f32.mrf.mxu2 }
  0xeb   : > { %4447 = vmatmul.msk.bf16.gmra.mxu3 %vm715_vm4, %v4713_v1  ;;  %v1941_v1 = vsel %vm5071_vm3, %v1936_v19, %v1940_v16  ;;  %v4356_v19 = vld [vmem:[%s5059_s19 + $0x80] sm:$0x1] }
  0xec   : > { %v2138_v16 = vunpack.c.l.b16 %v1941_v1  ;;  %v1972_v57 = vshll.u32 %v4356_v19, 16 }
  0xed   : > { %v5515_v23 = vpop.f32.mrf.mxu0 }
  0xee   : > { %v5518_v58 = vpop.f32.mrf.mxu3  ;;  %v997_v35 = vpop.f32.mrf.mxu1 }
  0xef   : > { %v998_v41 = vadd.f32 %v997_v35, %v5390_v15  ;;  %v1964_v35 = vrot.slane %v1962_v6, 5 }
  0xf0   : > { %4464 = vmatmul.msk.bf16.gmra.mxu0 %vm715_vm4, %v2161_v39  ;;  %v1163_v39 = vrot.slane %v1161_v55, 4  ;;  %v1960_v55 = vrot.slane %v1959_v50, 4 }
  0xf1   : > { %v5522_v43 = vpop.f32.mrf.mxu2  ;;  %4286 = vmatmul.msk.bf16.gmra.mxu1 %vm715_vm4, %v4698_v27  ;;  %v2139_v27 = vunpack.c.l.b16 %v1951_v3  ;;  %v1969_v52 = vor.u32 %v1968_v37, %v1964_v35 }
  0xf3   : > { %v2162_v48 = vpack.c.b16 %v2139_v27, %v2138_v16  ;;  %v1970_v13 = vrot.slane %v1969_v52, 4  ;;  %v4358_v16 = vld [vmem:[%s5059_s19 + $0x88] sm:$0xf]  ;;  %v4810_v27 = vld [vmem:[%s5059_s19 + $0x7c] sm:$0xf] }
  0xf4   : > { %v1168_v28 = vrot.slane %v4810_v27, 5  ;;  %v1986_v19 = vshll.u32 %v4358_v16, 16 }
  0xf5   : > { %v5528_v15 = vpop.f32.mrf.mxu0 }
  0xf6   : > { %v5534_v60 = vpop.f32.mrf.mxu3  ;;  %4319 = vmatmul.msk.bf16.gmra.mxu2 %vm715_vm4, %v1250_v34  ;;  %v999_v32 = vpop.f32.mrf.mxu1 }
  0xf7   : > { %v1000_v21 = vadd.f32 %v999_v32, %v5415_v9  ;;  %v1165_v9 = vsel %vm5273_vm7, %v1163_v39, %v1164_v2  ;;  %v1974_v2 = vrot.slane %v1972_v57, 5 }
  0xf8   : > { %v1229_v3 = vunpack.c.l.b16 %v1165_v9  ;;  %v4811_v9 = vld [vmem:[%s5059_s19 + $0x80] sm:$0x1] }
  0xf9   : > { %v1318_v20 = vpop.f32.mrf.mxu2  ;;  %v1975_v37 = vsel %vm5071_vm3, %v1970_v13, %v1974_v2 }
  0xfa   : > { %v1398_v40 = vadd.f32 %v1318_v20, %v998_v41  ;;  %v1228_v41 = vunpack.c.l.b16 %v1162_v47  ;;  %v1990_v47 = vshrl.u32 %v4358_v16, 16 }
  0xfb   : > { %4448 = vmatmul.msk.bf16.gmra.mxu3 %vm715_vm4, %v4714_v54  ;;  %v4357_v54 = vld [vmem:[%s5059_s19 + $0x84] sm:$0xf] }
  0xfc   : > { %v1251_v39 = vpack.c.b16 %v1229_v3, %v1228_v41  ;;  %v1977_v8 = vshrl.u32 %v4357_v54, 16  ;;  %v2141_v41 = vunpack.c.l.b16 %v1975_v37  ;;  %v1992_v13 = vrot.slane %v1990_v47, 4 }
  0xfd   : > { %v2230_v34 = vpop.f32.mrf.mxu0 }
  0xfe   : > { %v1624_v59 = vpop.f32.mrf.mxu3  ;;  %v1002_v1 = vpop.f32.mrf.mxu1  ;;  %v1979_v3 = vrot.slane %v1977_v8, 4 }
  0xff   : > { %v1704_v6 = vadd.f32 %v1624_v59, %v1398_v40  ;;  %v1003_v7 = vadd.f32 %v1002_v1, %v5433_v14  ;;  %v1965_v14 = vsel %vm5071_vm3, %v1960_v55, %v1964_v35  ;;  %v1980_v40 = vshll.u32 %v4357_v54, 16  ;;  %v4812_v35 = vld [vmem:[%s5059_s19 + $0x78] sm:$0xf] }
 0x100   : > { %4465 = vmatmul.msk.bf16.gmra.mxu0 %vm715_vm4, %v2162_v48  ;;  %v1171_v48 = vrot.slane %v4811_v9, 5  ;;  %v4304_v57 = vrot.slane %v4812_v35, 9  ;;  %v1170_v59 = vrot.slane %v1168_v28, 4  ;;  %v2140_v1 = vunpack.c.l.b16 %v1965_v14  ;;  %v4700_v14 = vld [vmem:[%s5059_s19 + $0x78] sm:$0xff] }
 0x101   : > { %v1320_v32 = vpop.f32.mrf.mxu2  ;;  %4287 = vmatmul.msk.bf16.gmra.mxu1 %vm715_vm4, %v4699_v51  ;;  %v5552_v26 = vadd.f32 %v2230_v34, %v1704_v6  ;;  %v4715_v51 = vld [vmem:[%s5059_s19 + $0x78] sm:$0xff]  ;;  %v1982_v55 = vrot.slane %v1980_v40, 5 }
 0x102   : > { %v1399_v22 = vadd.f32 %v1320_v32, %v1000_v21  ;;  %v1988_v32 = vrot.slane %v1986_v19, 5  ;;  %v2163_v16 = vpack.c.b16 %v2141_v41, %v2140_v1  ;;  %v4361_v1 = vld [vmem:[%s5059_s19 + $0x94] sm:$0xf]  ;;  %v4813_v41 = vld [vmem:[%s5059_s19 + $0x88] sm:$0xf] }
 0x103   : > { %v1983_v8 = vor.u32 %v1982_v55, %v1979_v3  ;;  %v1175_v3 = vrot.slane %v4813_v41, 5 }
 0x104   : > { %v1993_v37 = vor.u32 %v1992_v13, %v1988_v32 }
 0x105   : > { %v2232_v20 = vpop.f32.mrf.mxu0 }
 0x106   : > { %v1626_v21 = vpop.f32.mrf.mxu3  ;;  %4320 = vmatmul.msk.bf16.gmra.mxu2 %vm715_vm4, %v1251_v39  ;;  %v1004_v50 = vpop.f32.mrf.mxu1  ;;  %v4359_v39 = vld [vmem:[%s5059_s19 + $0x8c] sm:$0x1] }
 0x107   : > { %v1705_v34 = vadd.f32 %v1626_v21, %v1399_v22  ;;  %v1005_v52 = vadd.f32 %v1004_v50, %v5452_v4  ;;  %v1169_v4 = vsel %vm5273_vm7, %v4304_v57, %v1168_v28  ;;  %v1172_v22 = vsel %vm5273_vm7, %v1170_v59, %v1171_v48 }
 0x108   : > { %v1996_v40 = vshll.u32 %v4359_v39, 16  ;;  %v1231_v47 = vunpack.c.l.b16 %v1172_v22  ;;  %v1984_v48 = vrot.slane %v1983_v8, 4  ;;  %v1994_v50 = vrot.slane %v1993_v37, 4  ;;  %v4814_v22 = vld [vmem:[%s5059_s19 + $0x8c] sm:$0x1]  ;;  %v4716_v8 = vld [vmem:[%s5059_s19 + $0x84] sm:$0xff] }
 0x109   : > { %v1323_v6 = vpop.f32.mrf.mxu2  ;;  %v5565_v2 = vadd.f32 %v2232_v20, %v1705_v34  ;;  %v2010_v39 = vshll.u32 %v4361_v1, 16 }
 0x10a   : > { %v1400_v54 = vadd.f32 %v1323_v6, %v1003_v7  ;;  %v1230_v7 = vunpack.c.l.b16 %v1169_v4  ;;  %v1998_v34 = vrot.slane %v1996_v40, 5  ;;  %v1989_v13 = vsel %vm5071_vm3, %v1984_v48, %v1988_v32  ;;  %v4815_v40 = vld [vmem:[%s5059_s19 + $0x84] sm:$0xf] }
 0x10b   : > { %4449 = vmatmul.msk.bf16.gmra.mxu3 %vm715_vm4, %v4715_v51  ;;  %v4360_v51 = vld [vmem:[%s5059_s19 + $0x90] sm:$0xf]  ;;  %v2014_v4 = vshrl.u32 %v4361_v1, 16  ;;  %v2142_v32 = vunpack.c.l.b16 %v1989_v13  ;;  %v2012_v48 = vrot.slane %v2010_v39, 5 }
 0x10c   : > { %v1252_v59 = vpack.c.b16 %v1231_v47, %v1230_v7  ;;  %v2004_v6 = vshll.u32 %v4360_v51, 16 }
 0x10d   : > { %v2235_v27 = vpop.f32.mrf.mxu0 }
 0x10e   : > { %v1629_v19 = vpop.f32.mrf.mxu3  ;;  %v1007_v20 = vpop.f32.mrf.mxu1 }
 0x10f   : > { %v1706_v9 = vadd.f32 %v1629_v19, %v1400_v54  ;;  %v1008_v21 = vadd.f32 %v1007_v20, %v5473_v17  ;;  %v2001_v17 = vshrl.u32 %v4360_v51, 16  ;;  %v1999_v54 = vsel %vm5071_vm3, %v1994_v50, %v1998_v34 }
 0x110   : > { %4466 = vmatmul.msk.bf16.gmra.mxu0 %vm715_vm4, %v2163_v16  ;;  %v1178_v16 = vrot.slane %v4814_v22, 5  ;;  %v4305_v19 = vrot.slane %v4815_v40, 9  ;;  %v1177_v20 = vrot.slane %v1175_v3, 4  ;;  %v2143_v7 = vunpack.c.l.b16 %v1999_v54 }
 0x111   : > { %v1325_v28 = vpop.f32.mrf.mxu2  ;;  %4288 = vmatmul.msk.bf16.gmra.mxu1 %vm715_vm4, %v4700_v14  ;;  %v5578_v35 = vadd.f32 %v2235_v27, %v1706_v9  ;;  %v2003_v47 = vrot.slane %v2001_v17, 4  ;;  %v2006_v9 = vrot.slane %v2004_v6, 5  ;;  %v2016_v50 = vrot.slane %v2014_v4, 4  ;;  %v4701_v17 = vld [vmem:[%s5059_s19 + $0x84] sm:$0xff] }
 0x112   : > { %v1401_v57 = vadd.f32 %v1325_v28, %v1005_v52  ;;  %v2164_v1 = vpack.c.b16 %v2143_v7, %v2142_v32  ;;  %v4364_v32 = vld [vmem:[%s5059_s19 + $0xa0] sm:$0xf]  ;;  %v4816_v7 = vld [vmem:[%s5059_s19 + $0x94] sm:$0xf] }
 0x113   : > { %v2007_v41 = vor.u32 %v2006_v9, %v2003_v47  ;;  %v2017_v6 = vor.u32 %v2016_v50, %v2012_v48  ;;  %v1182_v47 = vrot.slane %v4816_v7, 5 }
 0x115   : > { %v2237_v55 = vpop.f32.mrf.mxu0 }
 0x116   : > { %v1631_v52 = vpop.f32.mrf.mxu3  ;;  %4321 = vmatmul.msk.bf16.gmra.mxu2 %vm715_vm4, %v1252_v59  ;;  %v1009_v27 = vpop.f32.mrf.mxu1  ;;  %v4362_v59 = vld [vmem:[%s5059_s19 + $0x98] sm:$0x1] }
 0x117   : > { %v1707_v14 = vadd.f32 %v1631_v52, %v1401_v57  ;;  %v1010_v37 = vadd.f32 %v1009_v27, %v5492_v45  ;;  %v1176_v45 = vsel %vm5273_vm7, %v4305_v19, %v1175_v3  ;;  %v1179_v57 = vsel %vm5273_vm7, %v1177_v20, %v1178_v16 }
 0x118   : > { %v2020_v54 = vshll.u32 %v4362_v59, 16  ;;  %v1233_v4 = vunpack.c.l.b16 %v1179_v57  ;;  %v2008_v3 = vrot.slane %v2007_v41, 4  ;;  %v2018_v27 = vrot.slane %v2017_v6, 4  ;;  %v4817_v57 = vld [vmem:[%s5059_s19 + $0x98] sm:$0x1] }
 0x119   : > { %v1328_v28 = vpop.f32.mrf.mxu2  ;;  %v5591_v34 = vadd.f32 %v2237_v55, %v1707_v14  ;;  %v2034_v59 = vshll.u32 %v4364_v32, 16 }
 0x11a   : > { %v1402_v51 = vadd.f32 %v1328_v28, %v1008_v21  ;;  %v1232_v21 = vunpack.c.l.b16 %v1176_v45  ;;  %v2022_v14 = vrot.slane %v2020_v54, 5  ;;  %v2038_v45 = vshrl.u32 %v4364_v32, 16 }
 0x11b   : > { %4450 = vmatmul.msk.bf16.gmra.mxu3 %vm715_vm4, %v4716_v8  ;;  %v4363_v8 = vld [vmem:[%s5059_s19 + $0x9c] sm:$0xf] }
 0x11c   : > { %v1253_v20 = vpack.c.b16 %v1233_v4, %v1232_v21  ;;  %v2025_v9 = vshrl.u32 %v4363_v8, 16  ;;  %v2023_v50 = vsel %vm5071_vm3, %v2018_v27, %v2022_v14  ;;  %v2040_v27 = vrot.slane %v2038_v45, 4 }
 0x11d   : > { %v2240_v13 = vpop.f32.mrf.mxu0  ;;  %v2145_v21 = vunpack.c.l.b16 %v2023_v50 }
 0x11e   : > { %v1634_v39 = vpop.f32.mrf.mxu3  ;;  %v1012_v55 = vpop.f32.mrf.mxu1  ;;  %v2027_v4 = vrot.slane %v2025_v9, 4 }
 0x11f   : > { %v1708_v22 = vadd.f32 %v1634_v39, %v1402_v51  ;;  %v1013_v52 = vadd.f32 %v1012_v55, %v5515_v23  ;;  %v2013_v23 = vsel %vm5071_vm3, %v2008_v3, %v2012_v48  ;;  %v2028_v51 = vshll.u32 %v4363_v8, 16  ;;  %v4818_v48 = vld [vmem:[%s5059_s19 + $0x90] sm:$0xf] }
 0x120   : > { %4467 = vmatmul.msk.bf16.gmra.mxu0 %vm715_vm4, %v2164_v1  ;;  %v1185_v1 = vrot.slane %v4817_v57, 5  ;;  %v4306_v54 = vrot.slane %v4818_v48, 9  ;;  %v1184_v39 = vrot.slane %v1182_v47, 4  ;;  %v2144_v55 = vunpack.c.l.b16 %v2013_v23  ;;  %v4702_v23 = vld [vmem:[%s5059_s19 + $0x90] sm:$0xff] }
 0x121   : > { %v1330_v16 = vpop.f32.mrf.mxu2  ;;  %4289 = vmatmul.msk.bf16.gmra.mxu1 %vm715_vm4, %v4701_v17  ;;  %v5604_v40 = vadd.f32 %v2240_v13, %v1708_v22  ;;  %v4717_v17 = vld [vmem:[%s5059_s19 + $0x90] sm:$0xff]  ;;  %v2030_v3 = vrot.slane %v2028_v51, 5 }
 0x122   : > { %v1403_v19 = vadd.f32 %v1330_v16, %v1010_v37  ;;  %v2036_v16 = vrot.slane %v2034_v59, 5  ;;  %v2165_v32 = vpack.c.b16 %v2145_v21, %v2144_v55  ;;  %v4819_v21 = vld [vmem:[%s5059_s19 + $0xa0] sm:$0xf] }
 0x123   : > { %v2031_v9 = vor.u32 %v2030_v3, %v2027_v4  ;;  %v1189_v4 = vrot.slane %v4819_v21, 5 }
 0x124   : > { %v2041_v50 = vor.u32 %v2040_v27, %v2036_v16 }
 0x125   : > { %v2242_v28 = vpop.f32.mrf.mxu0 }
 0x126   : > { %v1636_v37 = vpop.f32.mrf.mxu3  ;;  %4322 = vmatmul.msk.bf16.gmra.mxu2 %vm715_vm4, %v1253_v20  ;;  %v1014_v41 = vpop.f32.mrf.mxu1  ;;  %v4365_v20 = vld [vmem:[%s5059_s19 + $0xa4] sm:$0x1] }
 0x127   : > { %v1709_v13 = vadd.f32 %v1636_v37, %v1403_v19  ;;  %v1015_v6 = vadd.f32 %v1014_v41, %v5528_v15  ;;  %v1183_v15 = vsel %vm5273_vm7, %v4306_v54, %v1182_v47  ;;  %v1186_v19 = vsel %vm5273_vm7, %v1184_v39, %v1185_v1  ;;  %v4366_v37 = vld [vmem:[%s5059_s19 + $0xa8] sm:$0xf]  ;;  %v4367_v39 = vld [vmem:[%s5059_s19 + $0xac] sm:$0xf] }
 0x128   : > { %v2044_v51 = vshll.u32 %v4365_v20, 16  ;;  %v1235_v45 = vunpack.c.l.b16 %v1186_v19  ;;  %v2032_v1 = vrot.slane %v2031_v9, 4  ;;  %v2042_v41 = vrot.slane %v2041_v50, 4  ;;  %v4820_v19 = vld [vmem:[%s5059_s19 + $0xa4] sm:$0x1]  ;;  %v4718_v50 = vld [vmem:[%s5059_s19 + $0x9c] sm:$0xff] }
 0x129   : > { %v1333_v22 = vpop.f32.mrf.mxu2  ;;  %v5617_v14 = vadd.f32 %v2242_v28, %v1709_v13  ;;  %v2049_v55 = vshrl.u32 %v4366_v37, 16  ;;  %v2058_v20 = vshll.u32 %v4367_v39, 16 }
 0x12a   : > { %v1404_v8 = vadd.f32 %v1333_v22, %v1013_v52  ;;  %v1234_v52 = vunpack.c.l.b16 %v1183_v15  ;;  %v2046_v13 = vrot.slane %v2044_v51, 5  ;;  %v2052_v22 = vshll.u32 %v4366_v37, 16  ;;  %v4821_v51 = vld [vmem:[%s5059_s19 + $0x9c] sm:$0xf] }
 0x12b   : > { %4451 = vmatmul.msk.bf16.gmra.mxu3 %vm715_vm4, %v4717_v17  ;;  %v2037_v27 = vsel %vm5071_vm3, %v2032_v1, %v2036_v16  ;;  %v2062_v15 = vshrl.u32 %v4367_v39, 16  ;;  %v2060_v1 = vrot.slane %v2058_v20, 5  ;;  %v4368_v39 = vld [vmem:[%s5059_s19 + $0xb0] sm:$0x1] }
 0x12c   : > { %v1254_v54 = vpack.c.b16 %v1235_v45, %v1234_v52  ;;  %v1191_v52 = vrot.slane %v1189_v4, 4  ;;  %v2054_v45 = vrot.slane %v2052_v22, 5  ;;  %v4703_v22 = vld [vmem:[%s5059_s19 + $0x9c] sm:$0xff] }
 0x12d   : > { %v2245_v7 = vpop.f32.mrf.mxu0 }
 0x12e   : > { %v1639_v28 = vpop.f32.mrf.mxu3  ;;  %v1017_v59 = vpop.f32.mrf.mxu1 }
 0x12f   : > { %v1710_v57 = vadd.f32 %v1639_v28, %v1404_v8  ;;  %v2047_v8 = vsel %vm5071_vm3, %v2042_v41, %v2046_v13  ;;  %v4307_v28 = vrot.slane %v4821_v51, 9  ;;  %v1018_v16 = vadd.f32 %v1017_v59, %v5371_v42 }
 0x130   : > { %4468 = vmatmul.msk.bf16.gmra.mxu0 %vm715_vm4, %v2165_v32  ;;  %v1192_v32 = vrot.slane %v4820_v19, 5  ;;  %v2147_v37 = vunpack.c.l.b16 %v2047_v8  ;;  %v2064_v41 = vrot.slane %v2062_v15, 4  ;;  %v2068_v8 = vshll.u32 %v4368_v39, 16 }
 0x131   : > { %v1335_v47 = vpop.f32.mrf.mxu2  ;;  %4290 = vmatmul.msk.bf16.gmra.mxu1 %vm715_vm4, %v4702_v23  ;;  %v5629_v17 = vadd.f32 %v2245_v7, %v1710_v57  ;;  %v2051_v23 = vrot.slane %v2049_v55, 4  ;;  %v2146_v57 = vunpack.c.l.b16 %v2037_v27 }
 0x132   : > { %v1405_v48 = vadd.f32 %v1335_v47, %v1015_v6  ;;  %v1193_v55 = vsel %vm5273_vm7, %v1191_v52, %v1192_v32  ;;  %v2065_v27 = vor.u32 %v2064_v41, %v2060_v1  ;;  %v2070_v51 = vrot.slane %v2068_v8, 5  ;;  %v4719_v8 = vld [vmem:[%s5059_s19 + $0xa8] sm:$0xff] }
 0x133   : > { %v2055_v21 = vor.u32 %v2054_v45, %v2051_v23  ;;  %v2166_v42 = vpack.c.b16 %v2147_v37, %v2146_v57  ;;  %v1237_v19 = vunpack.c.l.b16 %v1193_v55  ;;  %v4823_v55 = vld [vmem:[%s5059_s19 + $0xb0] sm:$0x1] }
 0x134   : > { %v2066_v23 = vrot.slane %v2065_v27, 4 }
 0x135   : > { %v2247_v3 = vpop.f32.mrf.mxu0 }
 0x136   : > { %v1641_v6 = vpop.f32.mrf.mxu3  ;;  %4323 = vmatmul.msk.bf16.gmra.mxu2 %vm715_vm4, %v1254_v54  ;;  %v1019_v7 = vpop.f32.mrf.mxu1 }
 0x137   : > { %v1711_v9 = vadd.f32 %v1641_v6, %v1405_v48  ;;  %v1190_v48 = vsel %vm5273_vm7, %v4307_v28, %v1189_v4  ;;  %v1020_v4 = vadd.f32 %v1019_v7, %v5384_v10  ;;  %v4370_v28 = vld [vmem:[%s5059_s19 + $0xb8] sm:$0xf] }
 0x138   : > { %v1236_v15 = vunpack.c.l.b16 %v1190_v48  ;;  %v2082_v7 = vshll.u32 %v4370_v28, 16  ;;  %v2071_v48 = vsel %vm5071_vm3, %v2066_v23, %v2070_v51  ;;  %v4371_v51 = vld [vmem:[%s5059_s19 + $0xbc] sm:$0x1] }
 0x139   : > { %v1338_v47 = vpop.f32.mrf.mxu2  ;;  %v5642_v13 = vadd.f32 %v2247_v3, %v1711_v9  ;;  %v2056_v9 = vrot.slane %v2055_v21, 4  ;;  %v1199_v21 = vrot.slane %v4823_v55, 5 }
 0x13a   : > { %v1406_v54 = vadd.f32 %v1338_v47, %v1018_v16  ;;  %v1255_v16 = vpack.c.b16 %v1237_v19, %v1236_v15  ;;  %v4822_v47 = vld [vmem:[%s5059_s19 + $0xac] sm:$0xf] }
 0x13b   : > { %4452 = vmatmul.msk.bf16.gmra.mxu3 %vm715_vm4, %v4718_v50  ;;  %v4369_v50 = vld [vmem:[%s5059_s19 + $0xb4] sm:$0xf]  ;;  %v2061_v37 = vsel %vm5071_vm3, %v2056_v9, %v2060_v1  ;;  %v1196_v41 = vrot.slane %v4822_v47, 5  ;;  %v2092_v47 = vshll.u32 %v4371_v51, 16 }
 0x13c   : > { %v2073_v57 = vshrl.u32 %v4369_v50, 16  ;;  %v2076_v10 = vshll.u32 %v4369_v50, 16  ;;  %v2149_v50 = vunpack.c.l.b16 %v2071_v48 }
 0x13d   : > { %v2250_v59 = vpop.f32.mrf.mxu0  ;;  %v1198_v19 = vrot.slane %v1196_v41, 4 }
 0x13e   : > { %v1644_v3 = vpop.f32.mrf.mxu3  ;;  %v1022_v20 = vpop.f32.mrf.mxu1  ;;  %v2075_v1 = vrot.slane %v2073_v57, 4 }
 0x13f   : > { %v1712_v6 = vadd.f32 %v1644_v3, %v1406_v54  ;;  %v2086_v54 = vshrl.u32 %v4370_v28, 16  ;;  %v4824_v3 = vld [vmem:[%s5059_s19 + $0xa8] sm:$0xf]  ;;  %v1023_v9 = vadd.f32 %v1022_v20, %v5403_v31  ;;  %v1200_v57 = vsel %vm5273_vm7, %v1198_v19, %v1199_v21  ;;  %v4373_v19 = vld [vmem:[%s5059_s19 + $0xc4] sm:$0xf] }
 0x140   : > { %4469 = vmatmul.msk.bf16.gmra.mxu0 %vm715_vm4, %v2166_v42  ;;  %v4308_v15 = vrot.slane %v4824_v3, 9  ;;  %v1239_v55 = vunpack.c.l.b16 %v1200_v57  ;;  %v2110_v57 = vshrl.u32 %v4373_v19, 16 }
 0x141   : > { %v1340_v32 = vpop.f32.mrf.mxu2  ;;  %4291 = vmatmul.msk.bf16.gmra.mxu1 %vm715_vm4, %v4703_v22  ;;  %v5656_v52 = vadd.f32 %v2250_v59, %v1712_v6  ;;  %v2148_v59 = vunpack.c.l.b16 %v2061_v37  ;;  %v2078_v6 = vrot.slane %v2076_v10, 5 }
 0x142   : > { %v1407_v45 = vadd.f32 %v1340_v32, %v1020_v4  ;;  %v2084_v4 = vrot.slane %v2082_v7, 5  ;;  %v2088_v32 = vrot.slane %v2086_v54, 4  ;;  %v4704_v7 = vld [vmem:[%s5059_s19 + $0xa8] sm:$0xff] }
 0x143   : > { %v2079_v37 = vor.u32 %v2078_v6, %v2075_v1  ;;  %v2167_v31 = vpack.c.b16 %v2149_v50, %v2148_v59  ;;  %v2094_v1 = vrot.slane %v2092_v47, 5  ;;  %v4372_v59 = vld [vmem:[%s5059_s19 + $0xc0] sm:$0xf]  ;;  %v4826_v50 = vld [vmem:[%s5059_s19 + $0xb8] sm:$0xf] }
 0x144   : > { %v2089_v20 = vor.u32 %v2088_v32, %v2084_v4  ;;  %v1203_v32 = vrot.slane %v4826_v50, 5  ;;  %v2100_v51 = vshll.u32 %v4372_v59, 16  ;;  %v4828_v47 = vld [vmem:[%s5059_s19 + $0x14] sm:$0x1] }
 0x145   : > { %v2252_v39 = vpop.f32.mrf.mxu0 }
 0x146   : > { %v1646_v42 = vpop.f32.mrf.mxu3  ;;  %4324 = vmatmul.msk.bf16.gmra.mxu2 %vm715_vm4, %v1255_v16  ;;  %v1024_v22 = vpop.f32.mrf.mxu1  ;;  %v2090_v21 = vrot.slane %v2089_v20, 4 }
 0x147   : > { %v1713_v27 = vadd.f32 %v1646_v42, %v1407_v45  ;;  %v1197_v45 = vsel %vm5273_vm7, %v4308_v15, %v1196_v41  ;;  %v1025_v41 = vadd.f32 %v1024_v22, %v5423_v61  ;;  %v2097_v22 = vshrl.u32 %v4372_v59, 16  ;;  %v4720_v59 = vld [vmem:[%s5059_s19 + $0xb4] sm:$0xff] }
 0x148   : > { %v1238_v48 = vunpack.c.l.b16 %v1197_v45  ;;  %v2106_v45 = vshll.u32 %v4373_v19, 16  ;;  %v2102_v19 = vrot.slane %v2100_v51, 5  ;;  %v5707_v51 = vld [vmem:[%s5059_s19 + $0x18] sm:$0xf] }
 0x149   : > { %v1343_v23 = vpop.f32.mrf.mxu2  ;;  %v5669_v28 = vadd.f32 %v2252_v39, %v1713_v27  ;;  %v2080_v27 = vrot.slane %v2079_v37, 4  ;;  %v4827_v37 = vld [vmem:[%s5059_s19 + $0xc] sm:$0xf] }
 0x14a   : > { %v1408_v16 = vadd.f32 %v1343_v23, %v1023_v9  ;;  %v1256_v9 = vpack.c.b16 %v1239_v55, %v1238_v48  ;;  %v4829_v48 = vld [vmem:[%s5059_s19 + $0xb4] sm:$0xf]  ;;  %v4830_v55 = vld [vmem:[%s5059_s19 + $0xbc] sm:$0x1] }
 0x14b   : > { %4453 = vmatmul.msk.bf16.gmra.mxu3 %vm715_vm4, %v4719_v8  ;;  %v4825_v8 = vld [vmem:[%s5059_s19 + $0x10] sm:$0xf]  ;;  %v2085_v61 = vsel %vm5071_vm3, %v2080_v27, %v2084_v4 }
 0x14c   : > { %v2360_v3 = vrot.slane %v4825_v8, 5  ;;  %v2150_v27 = vunpack.c.l.b16 %v2085_v61 }
 0x14d   : > { %v2255_v10 = vpop.f32.mrf.mxu0 }
 0x14e   : > { %v1649_v54 = vpop.f32.mrf.mxu3  ;;  %v1027_v39 = vpop.f32.mrf.mxu1  ;;  %v2362_v20 = vrot.slane %v2360_v3, 4 }
 0x14f   : > { %v1714_v42 = vadd.f32 %v1649_v54, %v1408_v16  ;;  %v2095_v16 = vsel %vm5071_vm3, %v2090_v21, %v2094_v1  ;;  %v1205_v21 = vrot.slane %v1203_v32, 4  ;;  %v1028_v50 = vadd.f32 %v1027_v39, %v5442_v62 }
 0x150   : > { %4470 = vmatmul.msk.bf16.gmra.mxu0 %vm715_vm4, %v2167_v31  ;;  %v4473_v31 = vrot.slane %v4827_v37, 9  ;;  %v2151_v8 = vunpack.c.l.b16 %v2095_v16  ;;  %v2108_v37 = vrot.slane %v2106_v45, 5  ;;  %v5711_v45 = vld [vmem:[%s5059_s19 + $0x1c] sm:$0xf] }
 0x151   : > { %v1345_v15 = vpop.f32.mrf.mxu2  ;;  %4292 = vmatmul.msk.bf16.gmra.mxu1 %vm715_vm4, %v4704_v7  ;;  %v5684_v23 = vadd.f32 %v2255_v10, %v1714_v42  ;;  %v2363_v7 = vrot.slane %v4828_v47, 5  ;;  %v4309_v10 = vrot.slane %v4829_v48, 9  ;;  %v1206_v42 = vrot.slane %v4830_v55, 5 }
 0x152   : > { %v1409_v6 = vadd.f32 %v1345_v15, %v1025_v41  ;;  %v2099_v15 = vrot.slane %v2097_v22, 4  ;;  %v2112_v47 = vrot.slane %v2110_v57, 4  ;;  %v2168_v16 = vpack.c.b16 %v2151_v8, %v2150_v27 }
 0x153   : > { %6543 = vst [vmem:[#allocation5_spill] sm:$0xff] %v5684_v23  ;;  %v1204_v55 = vsel %vm5273_vm7, %v4309_v10, %v1203_v32  ;;  %v4374_v23 = vld [vmem:[%s5059_s19 + $0xc8] sm:$0x1]  ;;  %v1207_v22 = vsel %vm5273_vm7, %v1205_v21, %v1206_v42  ;;  %v2999_v21 = vshrl.u32 %v5707_v51, 16  ;;  %v3008_v27 = vshll.u32 %v5711_v45, 16 }
 0x154   : > { %v2103_v32 = vor.u32 %v2102_v19, %v2099_v15  ;;  %v2113_v57 = vor.u32 %v2112_v47, %v2108_v37  ;;  %v1241_v42 = vunpack.c.l.b16 %v1207_v22  ;;  %v3012_v8 = vshrl.u32 %v5711_v45, 16 }
 0x155   : > { %v2257_v54 = vpop.f32.mrf.mxu0 }
 0x156   : > { %v1651_v4 = vpop.f32.mrf.mxu3  ;;  %4325 = vmatmul.msk.bf16.gmra.mxu2 %vm715_vm4, %v1256_v9  ;;  %v1029_v41 = vpop.f32.mrf.mxu1  ;;  %v2361_v9 = vsel %vm5273_vm7, %v4473_v31, %v2360_v3  ;;  %v2116_v3 = vshll.u32 %v4374_v23, 16  ;;  %v2114_v15 = vrot.slane %v2113_v57, 4 }
 0x157   : > { %v1715_v1 = vadd.f32 %v1651_v4, %v1409_v6  ;;  %v2364_v6 = vsel %vm5273_vm7, %v2362_v20, %v2363_v7  ;;  %v2472_v62 = vunpack.c.l.b16 %v2361_v9  ;;  %v4705_v7 = vld [vmem:[%s5059_s19 + $0xb4] sm:$0xff]  ;;  %v1240_v4 = vunpack.c.l.b16 %v1204_v55 }
 0x158   : > { %v2473_v39 = vunpack.c.l.b16 %v2364_v6  ;;  %v2118_v55 = vrot.slane %v2116_v3, 5  ;;  %v3001_v9 = vrot.slane %v2999_v21, 4 }
 0x159   : > { %v1348_v48 = vpop.f32.mrf.mxu2  ;;  %v5715_v10 = vadd.f32 %v2257_v54, %v1715_v1  ;;  %v1030_v54 = vadd.f32 %v1029_v41, %v5465_v53  ;;  %v2104_v1 = vrot.slane %v2103_v32, 4  ;;  %v1257_v47 = vpack.c.b16 %v1241_v42, %v1240_v4 }
 0x15a   : > { %v1410_v61 = vadd.f32 %v1348_v48, %v1028_v50  ;;  %v5713_v31 = vpack.c.b16 %v2473_v39, %v2472_v62  ;;  %v3002_v50 = vshll.u32 %v5707_v51, 16  ;;  %v3010_v62 = vrot.slane %v3008_v27, 5 }
 0x15b   : > { %4454 = vmatmul.msk.bf16.gmra.mxu3 %vm715_vm4, %v4720_v59  ;;  %6544 = vst [vmem:[#allocation6_spill] sm:$0xff] %v5715_v10  ;;  %v3014_v39 = vrot.slane %v3012_v8, 4  ;;  %v2109_v53 = vsel %vm5071_vm3, %v2104_v1, %v2108_v37  ;;  %v2119_v41 = vsel %vm5071_vm3, %v2114_v15, %v2118_v55  ;;  %v5737_v1 = vld [vmem:[%s5059_s19 + $0x24] sm:$0xf] }
 0x15c   : > { %v3004_v6 = vrot.slane %v3002_v50, 5  ;;  %v2152_v21 = vunpack.c.l.b16 %v2109_v53  ;;  %v2153_v50 = vunpack.c.l.b16 %v2119_v41  ;;  %v4652_v41 = vrot.slane %v5707_v51, 9 }
 0x15d   : > { %v2260_v20 = vpop.f32.mrf.mxu0  ;;  %v3015_v3 = vor.u32 %v3014_v39, %v3010_v62 }
 0x15e   : > { %v1654_v48 = vpop.f32.mrf.mxu3  ;;  %v1032_v59 = vpop.f32.mrf.mxu1  ;;  %v3005_v57 = vor.u32 %v3004_v6, %v3001_v9  ;;  %v2169_v15 = vpack.c.b16 %v2153_v50, %v2152_v21  ;;  %v4833_v50 = vld [vmem:[%s5059_s19 + $0x18] sm:$0xf] }
 0x15f   : > { %v1716_v23 = vadd.f32 %v1654_v48, %v1410_v61  ;;  %v4508_v61 = vld [vmem:[%s5059_s19 + $0x20] sm:$0x1]  ;;  %v1033_v42 = vadd.f32 %v1032_v59, %v5484_v29  ;;  %v4831_v29 = vld [vmem:[%s5059_s19 + $0x1c] sm:$0xf] }
 0x160   : > { %4471 = vmatmul.msk.bf16.gmra.mxu0 %vm715_vm4, %v2168_v16  ;;  %v3006_v8 = vrot.slane %v3005_v57, 4  ;;  %v2367_v59 = vrot.slane %v4831_v29, 5 }
 0x161   : > { %v1350_v19 = vpop.f32.mrf.mxu2  ;;  %4293 = vmatmul.msk.bf16.gmra.mxu1 %vm715_vm4, %v4705_v7  ;;  %v5725_v10 = vadd.f32 %v2260_v20, %v1716_v23  ;;  %v3018_v7 = vshll.u32 %v4508_v61, 16  ;;  %v4721_v20 = vld [vmem:[%s5059_s19 + $0xc0] sm:$0xff]  ;;  %v3016_v23 = vrot.slane %v3015_v3, 4 }
 0x162   : > { %v1411_v22 = vadd.f32 %v1350_v19, %v1030_v54  ;;  %v3622_v19 = vrot.slane %v5711_v45, 5  ;;  %v3011_v39 = vsel %vm5071_vm3, %v3006_v8, %v3010_v62  ;;  %v3023_v45 = vshrl.u32 %v5737_v1, 16 }
 0x163   : > { %v3020_v54 = vrot.slane %v3018_v7, 5  ;;  %v3384_v51 = vunpack.c.l.b16 %v3011_v39 }
 0x164   : > { %v3624_v7 = vrot.slane %v3622_v19, 4 }
 0x165   : > { %v2262_v48 = vpop.f32.mrf.mxu0  ;;  %v3021_v53 = vsel %vm5071_vm3, %v3016_v23, %v3020_v54  ;;  %v4722_v23 = vld [vmem:[%s5059_s19 + $0x18] sm:$0xff] }
 0x166   : > { %v1656_v16 = vpop.f32.mrf.mxu3  ;;  %4326 = vmatmul.msk.bf16.gmra.mxu2 %vm715_vm4, %v1257_v47  ;;  %v1034_v32 = vpop.f32.mrf.mxu1  ;;  %v5741_v47 = vld [vmem:[%s5059_s19 + $0x28] sm:$0xf]  ;;  %v3385_v54 = vunpack.c.l.b16 %v3021_v53 }
 0x167   : > { %v1717_v4 = vadd.f32 %v1656_v16, %v1411_v22  ;;  %v3032_v57 = vshll.u32 %v5741_v47, 16  ;;  %v3036_v3 = vshrl.u32 %v5741_v47, 16  ;;  %v1035_v62 = vadd.f32 %v1034_v32, %v5502_v56 }
 0x169   : > { %v1353_v37 = vpop.f32.mrf.mxu2  ;;  %v5743_v55 = vadd.f32 %v2262_v48, %v1717_v4  ;;  %v3026_v48 = vshll.u32 %v5737_v1, 16  ;;  %v3625_v4 = vrot.slane %v4508_v61, 5  ;;  %v3025_v61 = vrot.slane %v3023_v45, 4 }
 0x16a   : > { %v1412_v27 = vadd.f32 %v1353_v37, %v1033_v42  ;;  %v4474_v37 = vrot.slane %v4833_v50, 9  ;;  %v5766_v29 = vrot.slane %v3032_v57, 5 }
 0x16b   : > { %4455 = vmatmul.msk.bf16.gmra.mxu3 %vm715_vm4, %v4721_v20  ;;  %v4832_v20 = vld [vmem:[%s5059_s19 + $0x20] sm:$0x1]  ;;  %v3028_v32 = vrot.slane %v3026_v48, 5 }
 0x16c   : > { %v2370_v42 = vrot.slane %v4832_v20, 5  ;;  %v2368_v20 = vsel %vm5273_vm7, %v4474_v37, %v2367_v59  ;;  %v5782_v37 = vld [vmem:[%s5059_s19 + $0x30] sm:$0xf] }
 0x16d   : > { %v2265_v9 = vpop.f32.mrf.mxu0  ;;  %v3029_v57 = vor.u32 %v3028_v32, %v3025_v61  ;;  %v3047_v32 = vshrl.u32 %v5782_v37, 16 }
 0x16e   : > { %v1659_v6 = vpop.f32.mrf.mxu3  ;;  %v1037_v22 = vpop.f32.mrf.mxu1 }
 0x16f   : > { %v1718_v16 = vadd.f32 %v1659_v6, %v1412_v27  ;;  %v2369_v27 = vrot.slane %v2367_v59, 4  ;;  %v3038_v6 = vrot.slane %v3036_v3, 4  ;;  %v1038_v59 = vadd.f32 %v1037_v22, %v5386_v12 }
 0x170   : > { %4472 = vmatmul.msk.bf16.gmra.mxu0 %vm715_vm4, %v2169_v15  ;;  %v3623_v15 = vsel %vm5273_vm7, %v4652_v41, %v3622_v19  ;;  %v3629_v12 = vrot.slane %v5741_v47, 5  ;;  %v4653_v47 = vrot.slane %v5737_v1, 9 }
 0x171   : > { %v1355_v21 = vpop.f32.mrf.mxu2  ;;  %4490 = vmatmul.msk.bf16.vlgmr.msra.gmra.mxu1 %vm715_vm4, %v5713_v31  ;;  %v5764_v56 = vadd.f32 %v2265_v9, %v1718_v16  ;;  %v3626_v31 = vsel %vm5273_vm7, %v3624_v7, %v3625_v4  ;;  %v2371_v53 = vsel %vm5273_vm7, %v2369_v27, %v2370_v42  ;;  %v3416_v9 = vpack.c.b16 %v3385_v54, %v3384_v51  ;;  %v5785_v27 = vld [vmem:[%s5059_s19 + $0x34] sm:$0xf] }
 0x172   : > { %v1413_v8 = vadd.f32 %v1355_v21, %v1035_v62  ;;  %v5775_v62 = vld [vmem:[%s5059_s19 + $0x2c] sm:$0x1]  ;;  %v3734_v41 = vunpack.c.l.b16 %v3623_v15  ;;  %v3735_v48 = vunpack.c.l.b16 %v3626_v31  ;;  %v3039_v3 = vor.u32 %v3038_v6, %v5766_v29 }
 0x173   : > { %v2474_v7 = vunpack.c.l.b16 %v2368_v20  ;;  %v2475_v4 = vunpack.c.l.b16 %v2371_v53  ;;  %v3042_v42 = vshll.u32 %v5775_v62, 16  ;;  %v3050_v6 = vshll.u32 %v5782_v37, 16 }
 0x174   : > { %v3766_v51 = vpack.c.b16 %v3735_v48, %v3734_v41  ;;  %v3056_v31 = vshll.u32 %v5785_v27, 16  ;;  %v3060_v20 = vshrl.u32 %v5785_v27, 16  ;;  %v4835_v48 = vld [vmem:[%s5059_s19 + $0x2c] sm:$0x1] }
 0x175   : > { %v2267_v39 = vpop.f32.mrf.mxu0  ;;  %v2505_v54 = vpack.c.b16 %v2475_v4, %v2474_v7  ;;  %v3044_v15 = vrot.slane %v3042_v42, 5  ;;  %v3631_v4 = vrot.slane %v3629_v12, 4  ;;  %v3052_v1 = vrot.slane %v3050_v6, 5 }
 0x176   : > { %v1661_v19 = vpop.f32.mrf.mxu3  ;;  %4619 = vmatmul.msk.bf16.vlgmr.msra.gmra.mxu2 %vm715_vm4, %v4722_v23  ;;  %v1039_v45 = vpop.f32.mrf.mxu1  ;;  %v3040_v23 = vrot.slane %v3039_v3, 4 }
 0x177   : > { %v1719_v16 = vadd.f32 %v1661_v19, %v1413_v8  ;;  %v3030_v8 = vrot.slane %v3029_v57, 4  ;;  %v2377_v57 = vrot.slane %v4835_v48, 5 }
 0x178   : > { %v3045_v7 = vsel %vm5071_vm3, %v3040_v23, %v3044_v15  ;;  %v3630_v15 = vsel %vm5273_vm7, %v4653_v47, %v3629_v12 }
 0x179   : > { %v1358_v21 = vpop.f32.mrf.mxu2  ;;  %v5789_v22 = vadd.f32 %v2267_v39, %v1719_v16  ;;  %v3632_v39 = vrot.slane %v5775_v62, 5  ;;  %v1040_v16 = vadd.f32 %v1039_v45, %v5407_v38  ;;  %v3062_v62 = vrot.slane %v3060_v20, 4 }
 0x17a   : > { %v1414_v50 = vadd.f32 %v1358_v21, %v1038_v59  ;;  %v3035_v59 = vsel %vm5071_vm3, %v3030_v8, %v5766_v29  ;;  %v3049_v21 = vrot.slane %v3047_v32, 4  ;;  %v3387_v8 = vunpack.c.l.b16 %v3045_v7 }
 0x17b   : > { %4636 = vmatmul.msk.bf16.vlgmr.msra.gmra.mxu3 %vm715_vm4, %v3416_v9  ;;  %6545 = vst [vmem:[#allocation7_spill] sm:$0xff] %v5789_v22  ;;  %v4834_v9 = vld [vmem:[%s5059_s19 + $0x28] sm:$0xf]  ;;  %v3386_v29 = vunpack.c.l.b16 %v3035_v59  ;;  %v5812_v22 = vld [vmem:[%s5059_s19 + $0x38] sm:$0x1] }
 0x17c   : > { %v2374_v41 = vrot.slane %v4834_v9, 5  ;;  %v4836_v9 = vld [vmem:[%s5059_s19 + $0x24] sm:$0xf]  ;;  %v3053_v32 = vor.u32 %v3052_v1, %v3049_v21 }
 0x17d   : > { %v2270_v61 = vpop.f32.mrf.mxu0  ;;  %v4475_v38 = vrot.slane %v4836_v9, 9  ;;  %v3417_v12 = vpack.c.b16 %v3387_v8, %v3386_v29  ;;  %v4837_v29 = vld [vmem:[%s5059_s19 + $0x34] sm:$0xf] }
 0x17e   : > { %v1664_v53 = vpop.f32.mrf.mxu3  ;;  %v1042_v19 = vpop.f32.mrf.mxu1  ;;  %v2376_v45 = vrot.slane %v2374_v41, 4  ;;  %v2381_v8 = vrot.slane %v4837_v29, 5 }
 0x17f   : > { %v1720_v3 = vadd.f32 %v1664_v53, %v1414_v50  ;;  %v3058_v50 = vrot.slane %v3056_v31, 5  ;;  %v1043_v47 = vadd.f32 %v1042_v19, %v5426_v0 }
 0x180   : > { %4669 = vmatmul.msk.bf16.vlgmr.msra.gmra.mxu0 %vm715_vm4, %v3766_v51  ;;  %v4723_v51 = vld [vmem:[%s5059_s19 + $0x24] sm:$0xff]  ;;  %v2378_v20 = vsel %vm5273_vm7, %v2376_v45, %v2377_v57  ;;  %v5827_v57 = vld [vmem:[%s5059_s19 + $0x3c] sm:$0xf] }
 0x181   : > { %v1360_v42 = vpop.f32.mrf.mxu2  ;;  %4491 = vmatmul.msk.bf16.gmra.mxu1 %vm715_vm4, %v2505_v54  ;;  %v5809_v48 = vadd.f32 %v2270_v61, %v1720_v3  ;;  %v3633_v54 = vsel %vm5273_vm7, %v3631_v4, %v3632_v39  ;;  %v2375_v61 = vsel %vm5273_vm7, %v4475_v38, %v2374_v41  ;;  %v3063_v3 = vor.u32 %v3062_v62, %v3058_v50  ;;  %v5831_v38 = vld [vmem:[%s5059_s19 + $0x40] sm:$0xf] }
 0x182   : > { %v1415_v53 = vadd.f32 %v1360_v42, %v1040_v16  ;;  %v3066_v16 = vshll.u32 %v5812_v22, 16  ;;  %v3736_v39 = vunpack.c.l.b16 %v3630_v15  ;;  %v3737_v7 = vunpack.c.l.b16 %v3633_v54 }
 0x183   : > { %v2476_v42 = vunpack.c.l.b16 %v2375_v61  ;;  %v2477_v21 = vunpack.c.l.b16 %v2378_v20  ;;  %v3054_v41 = vrot.slane %v3053_v32, 4  ;;  %v3071_v61 = vshrl.u32 %v5827_v57, 16 }
 0x184   : > { %v3068_v9 = vrot.slane %v3066_v16, 5  ;;  %v3767_v62 = vpack.c.b16 %v3737_v7, %v3736_v39  ;;  %v3074_v20 = vshll.u32 %v5827_v57, 16  ;;  %v3084_v16 = vshrl.u32 %v5831_v38, 16 }
 0x185   : > { %v2272_v23 = vpop.f32.mrf.mxu0  ;;  %v2506_v45 = vpack.c.b16 %v2477_v21, %v2476_v42  ;;  %v3059_v32 = vsel %vm5071_vm3, %v3054_v41, %v3058_v50  ;;  %v2383_v21 = vrot.slane %v2381_v8, 4  ;;  %v4724_v41 = vld [vmem:[%s5059_s19 + $0x30] sm:$0xff] }
 0x186   : > { %v1666_v6 = vpop.f32.mrf.mxu3  ;;  %4620 = vmatmul.msk.bf16.gmra.mxu2 %vm715_vm4, %v4723_v51  ;;  %v1044_v31 = vpop.f32.mrf.mxu1  ;;  %v3064_v51 = vrot.slane %v3063_v3, 4  ;;  %v3080_v3 = vshll.u32 %v5831_v38, 16  ;;  %v3388_v7 = vunpack.c.l.b16 %v3059_v32  ;;  %v3086_v29 = vrot.slane %v3084_v16, 4 }
 0x187   : > { %v1721_v59 = vadd.f32 %v1666_v6, %v1415_v53  ;;  %v3636_v53 = vrot.slane %v5785_v27, 5  ;;  %v4654_v27 = vrot.slane %v5782_v37, 9  ;;  %v1045_v50 = vadd.f32 %v1044_v31, %v5445_v33 }
 0x188   : > { %v3069_v6 = vsel %vm5071_vm3, %v3064_v51, %v3068_v9  ;;  %v3073_v31 = vrot.slane %v3071_v61, 4 }
 0x189   : > { %v1363_v4 = vpop.f32.mrf.mxu2  ;;  %v5833_v0 = vadd.f32 %v2272_v23, %v1721_v59  ;;  %v3638_v59 = vrot.slane %v3636_v53, 4  ;;  %v3389_v51 = vunpack.c.l.b16 %v3069_v6  ;;  %v3637_v9 = vsel %vm5273_vm7, %v4654_v27, %v3636_v53 }
 0x18a   : > { %v1416_v1 = vadd.f32 %v1363_v4, %v1043_v47  ;;  %v4838_v47 = vld [vmem:[%s5059_s19 + $0x38] sm:$0x1]  ;;  %v4839_v4 = vld [vmem:[%s5059_s19 + $0x30] sm:$0xf]  ;;  %v3738_v27 = vunpack.c.l.b16 %v3637_v9 }
 0x18b   : > { %4637 = vmatmul.msk.bf16.gmra.mxu3 %vm715_vm4, %v3417_v12  ;;  %v3639_v12 = vrot.slane %v5812_v22, 5  ;;  %v2384_v39 = vrot.slane %v4838_v47, 5  ;;  %v4476_v42 = vrot.slane %v4839_v4, 9  ;;  %v3076_v22 = vrot.slane %v3074_v20, 5  ;;  %v5872_v4 = vld [vmem:[%s5059_s19 + $0x48] sm:$0xf] }
 0x18d   : > { %v2275_v19 = vpop.f32.mrf.mxu0  ;;  %v2382_v32 = vsel %vm5273_vm7, %v4476_v42, %v2381_v8  ;;  %v2385_v6 = vsel %vm5273_vm7, %v2383_v21, %v2384_v39  ;;  %v5875_v42 = vld [vmem:[%s5059_s19 + $0x4c] sm:$0xf] }
 0x18e   : > { %v1669_v15 = vpop.f32.mrf.mxu3  ;;  %v1047_v54 = vpop.f32.mrf.mxu1 }
 0x18f   : > { %v1722_v23 = vadd.f32 %v1669_v15, %v1416_v1  ;;  %v1048_v8 = vadd.f32 %v1047_v54, %v5467_v63  ;;  %v3643_v63 = vrot.slane %v5831_v38, 5  ;;  %v4655_v38 = vrot.slane %v5827_v57, 9 }
 0x190   : > { %4670 = vmatmul.msk.bf16.gmra.mxu0 %vm715_vm4, %v3767_v62  ;;  %v5856_v62 = vrot.slane %v3080_v3, 5  ;;  %v3077_v3 = vor.u32 %v3076_v22, %v3073_v31  ;;  %v3095_v31 = vshrl.u32 %v5872_v4, 16  ;;  %v3098_v22 = vshll.u32 %v5872_v4, 16 }
 0x191   : > { %v1365_v37 = vpop.f32.mrf.mxu2  ;;  %4492 = vmatmul.msk.bf16.gmra.mxu1 %vm715_vm4, %v2506_v45  ;;  %v5854_v33 = vadd.f32 %v2275_v19, %v1722_v23  ;;  %v3640_v45 = vsel %vm5273_vm7, %v3638_v59, %v3639_v12  ;;  %v3418_v19 = vpack.c.b16 %v3389_v51, %v3388_v7  ;;  %v2478_v59 = vunpack.c.l.b16 %v2382_v32 }
 0x192   : > { %v1417_v1 = vadd.f32 %v1365_v37, %v1045_v50  ;;  %v5865_v50 = vld [vmem:[%s5059_s19 + $0x44] sm:$0x1]  ;;  %v3739_v20 = vunpack.c.l.b16 %v3640_v45  ;;  %v3087_v16 = vor.u32 %v3086_v29, %v5856_v62  ;;  %v2479_v12 = vunpack.c.l.b16 %v2385_v6 }
 0x193   : > { %v3090_v47 = vshll.u32 %v5865_v50, 16  ;;  %v3078_v21 = vrot.slane %v3077_v3, 4  ;;  %v3104_v29 = vshll.u32 %v5875_v42, 16  ;;  %v3108_v45 = vshrl.u32 %v5875_v42, 16 }
 0x194   : > { %v3768_v7 = vpack.c.b16 %v3739_v20, %v3738_v27  ;;  %v4841_v27 = vld [vmem:[%s5059_s19 + $0x44] sm:$0x1]  ;;  %v3100_v57 = vrot.slane %v3098_v22, 5 }
 0x195   : > { %v2277_v15 = vpop.f32.mrf.mxu0  ;;  %v3092_v51 = vrot.slane %v3090_v47, 5  ;;  %v2391_v20 = vrot.slane %v4841_v27, 5  ;;  %v3097_v47 = vrot.slane %v3095_v31, 4  ;;  %v5902_v27 = vld [vmem:[%s5059_s19 + $0x50] sm:$0x1] }
 0x196   : > { %v1671_v53 = vpop.f32.mrf.mxu3  ;;  %4621 = vmatmul.msk.bf16.gmra.mxu2 %vm715_vm4, %v4724_v41  ;;  %v1049_v61 = vpop.f32.mrf.mxu1  ;;  %v2507_v41 = vpack.c.b16 %v2479_v12, %v2478_v59  ;;  %v3645_v59 = vrot.slane %v3643_v63, 4 }
 0x197   : > { %v1723_v23 = vadd.f32 %v1671_v53, %v1417_v1  ;;  %v3088_v1 = vrot.slane %v3087_v16, 4  ;;  %v4840_v53 = vld [vmem:[%s5059_s19 + $0x40] sm:$0xf]  ;;  %v3083_v16 = vsel %vm5071_vm3, %v3078_v21, %v5856_v62  ;;  %v3101_v31 = vor.u32 %v3100_v57, %v3097_v47 }
 0x198   : > { %v3390_v62 = vunpack.c.l.b16 %v3083_v16 }
 0x199   : > { %v1368_v39 = vpop.f32.mrf.mxu2  ;;  %v5879_v54 = vadd.f32 %v2277_v15, %v1723_v23  ;;  %v3646_v15 = vrot.slane %v5865_v50, 5  ;;  %v1050_v23 = vadd.f32 %v1049_v61, %v5486_v44  ;;  %v3110_v50 = vrot.slane %v3108_v45, 4 }
 0x19a   : > { %v1418_v37 = vadd.f32 %v1368_v39, %v1048_v8  ;;  %v3093_v8 = vsel %vm5071_vm3, %v3088_v1, %v3092_v51  ;;  %v3106_v39 = vrot.slane %v3104_v29, 5  ;;  %v3644_v51 = vsel %vm5273_vm7, %v4655_v38, %v3643_v63 }
 0x19b   : > { %4638 = vmatmul.msk.bf16.gmra.mxu3 %vm715_vm4, %v3418_v19  ;;  %v2388_v19 = vrot.slane %v4840_v53, 5  ;;  %v3391_v21 = vunpack.c.l.b16 %v3093_v8 }
 0x19d   : > { %v2280_v9 = vpop.f32.mrf.mxu0  ;;  %v2390_v61 = vrot.slane %v2388_v19, 4  ;;  %v3419_v63 = vpack.c.b16 %v3391_v21, %v3390_v62  ;;  %v4843_v62 = vld [vmem:[%s5059_s19 + $0x4c] sm:$0xf] }
 0x19e   : > { %v1674_v32 = vpop.f32.mrf.mxu3  ;;  %v1052_v6 = vpop.f32.mrf.mxu1  ;;  %v2395_v21 = vrot.slane %v4843_v62, 5 }
 0x19f   : > { %v1724_v3 = vadd.f32 %v1674_v32, %v1418_v37  ;;  %v4842_v32 = vld [vmem:[%s5059_s19 + $0x3c] sm:$0xf]  ;;  %v2392_v45 = vsel %vm5273_vm7, %v2390_v61, %v2391_v20  ;;  %v1053_v38 = vadd.f32 %v1052_v6, %v5507_v11  ;;  %v5917_v20 = vld [vmem:[%s5059_s19 + $0x54] sm:$0xf] }
 0x1a0   : > { %4671 = vmatmul.msk.bf16.gmra.mxu0 %vm715_vm4, %v3768_v7  ;;  %v4725_v7 = vld [vmem:[%s5059_s19 + $0x3c] sm:$0xff]  ;;  %v4477_v44 = vrot.slane %v4842_v32, 9  ;;  %v2481_v47 = vunpack.c.l.b16 %v2392_v45  ;;  %v3122_v45 = vshll.u32 %v5917_v20, 16 }
 0x1a1   : > { %v1370_v12 = vpop.f32.mrf.mxu2  ;;  %4493 = vmatmul.msk.bf16.gmra.mxu1 %vm715_vm4, %v2507_v41  ;;  %v5899_v53 = vadd.f32 %v2280_v9, %v1724_v3  ;;  %v3647_v41 = vsel %vm5273_vm7, %v3645_v59, %v3646_v15  ;;  %v3111_v3 = vor.u32 %v3110_v50, %v3106_v39  ;;  %v3740_v15 = vunpack.c.l.b16 %v3644_v51 }
 0x1a2   : > { %v1419_v37 = vadd.f32 %v1370_v12, %v1050_v23  ;;  %v2389_v9 = vsel %vm5273_vm7, %v4477_v44, %v2388_v19  ;;  %v3114_v23 = vshll.u32 %v5902_v27, 16  ;;  %v3741_v8 = vunpack.c.l.b16 %v3647_v41  ;;  %v5921_v44 = vld [vmem:[%s5059_s19 + $0x58] sm:$0xf] }
 0x1a3   : > { %v2480_v12 = vunpack.c.l.b16 %v2389_v9  ;;  %v3102_v19 = vrot.slane %v3101_v31, 4  ;;  %v3119_v9 = vshrl.u32 %v5917_v20, 16 }
 0x1a4   : > { %v3116_v32 = vrot.slane %v3114_v23, 5  ;;  %v3769_v50 = vpack.c.b16 %v3741_v8, %v3740_v15  ;;  %v3132_v23 = vshrl.u32 %v5921_v44, 16 }
 0x1a5   : > { %v2282_v1 = vpop.f32.mrf.mxu0  ;;  %v2508_v61 = vpack.c.b16 %v2481_v47, %v2480_v12  ;;  %v3107_v31 = vsel %vm5071_vm3, %v3102_v19, %v3106_v39  ;;  %v2397_v47 = vrot.slane %v2395_v21, 4  ;;  %v4726_v19 = vld [vmem:[%s5059_s19 + $0x48] sm:$0xff] }
 0x1a6   : > { %v1676_v22 = vpop.f32.mrf.mxu3  ;;  %4622 = vmatmul.msk.bf16.gmra.mxu2 %vm715_vm4, %v4725_v7  ;;  %v1054_v29 = vpop.f32.mrf.mxu1  ;;  %v3112_v7 = vrot.slane %v3111_v3, 4  ;;  %v3128_v3 = vshll.u32 %v5921_v44, 16  ;;  %v3392_v8 = vunpack.c.l.b16 %v3107_v31  ;;  %v3134_v62 = vrot.slane %v3132_v23, 4 }
 0x1a7   : > { %v1725_v16 = vadd.f32 %v1676_v22, %v1419_v37  ;;  %v3650_v37 = vrot.slane %v5875_v42, 5  ;;  %v4656_v42 = vrot.slane %v5872_v4, 9  ;;  %v1055_v39 = vadd.f32 %v1054_v29, %v5522_v43 }
 0x1a8   : > { %v3117_v22 = vsel %vm5071_vm3, %v3112_v7, %v3116_v32  ;;  %v3121_v29 = vrot.slane %v3119_v9, 4 }
 0x1a9   : > { %v1373_v59 = vpop.f32.mrf.mxu2  ;;  %v5923_v11 = vadd.f32 %v2282_v1, %v1725_v16  ;;  %v3652_v16 = vrot.slane %v3650_v37, 4  ;;  %v3393_v7 = vunpack.c.l.b16 %v3117_v22  ;;  %v3651_v32 = vsel %vm5273_vm7, %v4656_v42, %v3650_v37 }
 0x1aa   : > { %v1420_v57 = vadd.f32 %v1373_v59, %v1053_v38  ;;  %v4844_v38 = vld [vmem:[%s5059_s19 + $0x50] sm:$0x1]  ;;  %v4845_v59 = vld [vmem:[%s5059_s19 + $0x48] sm:$0xf]  ;;  %v3742_v42 = vunpack.c.l.b16 %v3651_v32 }
 0x1ab   : > { %4639 = vmatmul.msk.bf16.gmra.mxu3 %vm715_vm4, %v3419_v63  ;;  %v3653_v63 = vrot.slane %v5902_v27, 5  ;;  %v2398_v15 = vrot.slane %v4844_v38, 5  ;;  %v4478_v12 = vrot.slane %v4845_v59, 9  ;;  %v3124_v27 = vrot.slane %v3122_v45, 5  ;;  %v5962_v59 = vld [vmem:[%s5059_s19 + $0x60] sm:$0xf] }
 0x1ad   : > { %v2285_v6 = vpop.f32.mrf.mxu0  ;;  %v2396_v31 = vsel %vm5273_vm7, %v4478_v12, %v2395_v21  ;;  %v2399_v22 = vsel %vm5273_vm7, %v2397_v47, %v2398_v15  ;;  %v5965_v12 = vld [vmem:[%s5059_s19 + $0x64] sm:$0xf] }
 0x1ae   : > { %v1679_v51 = vpop.f32.mrf.mxu3  ;;  %v1057_v41 = vpop.f32.mrf.mxu1 }
 0x1af   : > { %v1726_v1 = vadd.f32 %v1679_v51, %v1420_v57  ;;  %v1058_v21 = vadd.f32 %v1057_v41, %v5394_v5  ;;  %v3657_v5 = vrot.slane %v5921_v44, 5  ;;  %v4657_v44 = vrot.slane %v5917_v20, 9 }
 0x1b0   : > { %4672 = vmatmul.msk.bf16.gmra.mxu0 %vm715_vm4, %v3769_v50  ;;  %v5946_v50 = vrot.slane %v3128_v3, 5  ;;  %v3125_v3 = vor.u32 %v3124_v27, %v3121_v29  ;;  %v3143_v29 = vshrl.u32 %v5962_v59, 16  ;;  %v3146_v27 = vshll.u32 %v5962_v59, 16 }
 0x1b1   : > { %v1375_v4 = vpop.f32.mrf.mxu2  ;;  %4494 = vmatmul.msk.bf16.gmra.mxu1 %vm715_vm4, %v2508_v61  ;;  %v5944_v43 = vadd.f32 %v2285_v6, %v1726_v1  ;;  %v3654_v61 = vsel %vm5273_vm7, %v3652_v16, %v3653_v63  ;;  %v3420_v6 = vpack.c.b16 %v3393_v7, %v3392_v8  ;;  %v2482_v16 = vunpack.c.l.b16 %v2396_v31 }
 0x1b2   : > { %v1421_v57 = vadd.f32 %v1375_v4, %v1055_v39  ;;  %v5955_v39 = vld [vmem:[%s5059_s19 + $0x5c] sm:$0x1]  ;;  %v3743_v45 = vunpack.c.l.b16 %v3654_v61  ;;  %v3135_v23 = vor.u32 %v3134_v62, %v5946_v50  ;;  %v2483_v63 = vunpack.c.l.b16 %v2399_v22 }
 0x1b3   : > { %v3138_v38 = vshll.u32 %v5955_v39, 16  ;;  %v3126_v47 = vrot.slane %v3125_v3, 4  ;;  %v3152_v62 = vshll.u32 %v5965_v12, 16  ;;  %v3156_v61 = vshrl.u32 %v5965_v12, 16 }
 0x1b4   : > { %v3770_v8 = vpack.c.b16 %v3743_v45, %v3742_v42  ;;  %v4847_v42 = vld [vmem:[%s5059_s19 + $0x5c] sm:$0x1]  ;;  %v3148_v20 = vrot.slane %v3146_v27, 5 }
 0x1b5   : > { %v2287_v51 = vpop.f32.mrf.mxu0  ;;  %v3140_v7 = vrot.slane %v3138_v38, 5  ;;  %v2405_v45 = vrot.slane %v4847_v42, 5  ;;  %v3145_v38 = vrot.slane %v3143_v29, 4  ;;  %v5992_v42 = vld [vmem:[%s5059_s19 + $0x68] sm:$0x1] }
 0x1b6   : > { %v1681_v37 = vpop.f32.mrf.mxu3  ;;  %4623 = vmatmul.msk.bf16.gmra.mxu2 %vm715_vm4, %v4726_v19  ;;  %v1059_v9 = vpop.f32.mrf.mxu1  ;;  %v2509_v19 = vpack.c.b16 %v2483_v63, %v2482_v16  ;;  %v3659_v16 = vrot.slane %v3657_v5, 4 }
 0x1b7   : > { %v1727_v1 = vadd.f32 %v1681_v37, %v1421_v57  ;;  %v3136_v57 = vrot.slane %v3135_v23, 4  ;;  %v4846_v37 = vld [vmem:[%s5059_s19 + $0x58] sm:$0xf]  ;;  %v3131_v23 = vsel %vm5071_vm3, %v3126_v47, %v5946_v50  ;;  %v3149_v29 = vor.u32 %v3148_v20, %v3145_v38 }
 0x1b8   : > { %v3394_v50 = vunpack.c.l.b16 %v3131_v23 }
 0x1b9   : > { %v1378_v15 = vpop.f32.mrf.mxu2  ;;  %v5969_v41 = vadd.f32 %v2287_v51, %v1727_v1  ;;  %v3660_v51 = vrot.slane %v5955_v39, 5  ;;  %v1060_v1 = vadd.f32 %v1059_v9, %v5417_v24  ;;  %v3158_v39 = vrot.slane %v3156_v61, 4 }
 0x1ba   : > { %v1422_v4 = vadd.f32 %v1378_v15, %v1058_v21  ;;  %v3141_v21 = vsel %vm5071_vm3, %v3136_v57, %v3140_v7  ;;  %v3154_v15 = vrot.slane %v3152_v62, 5  ;;  %v3658_v7 = vsel %vm5273_vm7, %v4657_v44, %v3657_v5 }
 0x1bb   : > { %4640 = vmatmul.msk.bf16.gmra.mxu3 %vm715_vm4, %v3420_v6  ;;  %v2402_v6 = vrot.slane %v4846_v37, 5  ;;  %v3395_v47 = vunpack.c.l.b16 %v3141_v21  ;;  %v3744_v23 = vunpack.c.l.b16 %v3658_v7 }
 0x1bd   : > { %v2290_v32 = vpop.f32.mrf.mxu0  ;;  %v2404_v9 = vrot.slane %v2402_v6, 4  ;;  %v3421_v44 = vpack.c.b16 %v3395_v47, %v3394_v50 }
 0x1be   : > { %v1684_v31 = vpop.f32.mrf.mxu3  ;;  %v1062_v22 = vpop.f32.mrf.mxu1 }
 0x1bf   : > { %v1728_v3 = vadd.f32 %v1684_v31, %v1422_v4  ;;  %v4848_v31 = vld [vmem:[%s5059_s19 + $0x54] sm:$0xf]  ;;  %v2406_v61 = vsel %vm5273_vm7, %v2404_v9, %v2405_v45  ;;  %v6007_v45 = vld [vmem:[%s5059_s19 + $0x6c] sm:$0xf]  ;;  %v3664_v9 = vrot.slane %v5965_v12, 5 }
 0x1c0   : > { %4673 = vmatmul.msk.bf16.gmra.mxu0 %vm715_vm4, %v3770_v8  ;;  %v4727_v8 = vld [vmem:[%s5059_s19 + $0x54] sm:$0xff]  ;;  %v4479_v24 = vrot.slane %v4848_v31, 9  ;;  %v2485_v38 = vunpack.c.l.b16 %v2406_v61 }
 0x1c1   : > { %v1380_v63 = vpop.f32.mrf.mxu2  ;;  %4495 = vmatmul.msk.bf16.gmra.mxu1 %vm715_vm4, %v2509_v19  ;;  %v5989_v37 = vadd.f32 %v2290_v32, %v1728_v3  ;;  %v3661_v19 = vsel %vm5273_vm7, %v3659_v16, %v3660_v51  ;;  %v3159_v3 = vor.u32 %v3158_v39, %v3154_v15  ;;  %v1063_v51 = vadd.f32 %v1062_v22, %v5437_v18 }
 0x1c2   : > { %v1423_v4 = vadd.f32 %v1380_v63, %v1060_v1  ;;  %v2403_v32 = vsel %vm5273_vm7, %v4479_v24, %v2402_v6  ;;  %v3162_v1 = vshll.u32 %v5992_v42, 16  ;;  %v3745_v21 = vunpack.c.l.b16 %v3661_v19  ;;  %v6010_v24 = vld [vmem:[%s5059_s19 + $0x70] sm:$0xf] }
 0x1c3   : > { %v2484_v63 = vunpack.c.l.b16 %v2403_v32  ;;  %v3150_v6 = vrot.slane %v3149_v29, 4  ;;  %v4849_v29 = vld [vmem:[%s5059_s19 + $0x64] sm:$0xf]  ;;  %v3167_v32 = vshrl.u32 %v6007_v45, 16  ;;  %v3180_v12 = vshrl.u32 %v6010_v24, 16 }
 0x1c4   : > { %v3164_v31 = vrot.slane %v3162_v1, 5  ;;  %v3771_v39 = vpack.c.b16 %v3745_v21, %v3744_v23  ;;  %v4850_v1 = vld [vmem:[%s5059_s19 + $0x68] sm:$0x1] }
 0x1c5   : > { %v2292_v57 = vpop.f32.mrf.mxu0  ;;  %v2510_v22 = vpack.c.b16 %v2485_v38, %v2484_v63  ;;  %v3155_v7 = vsel %vm5071_vm3, %v3150_v6, %v3154_v15  ;;  %v3667_v63 = vrot.slane %v5992_v42, 5  ;;  %v4851_v6 = vld [vmem:[%s5059_s19 + $0x60] sm:$0xf] }
 0x1c6   : > { %v1686_v27 = vpop.f32.mrf.mxu3  ;;  %4624 = vmatmul.msk.bf16.gmra.mxu2 %vm715_vm4, %v4727_v8  ;;  %v1064_v62 = vpop.f32.mrf.mxu1  ;;  %v3160_v8 = vrot.slane %v3159_v3, 4  ;;  %v3176_v3 = vshll.u32 %v6010_v24, 16  ;;  %v3396_v23 = vunpack.c.l.b16 %v3155_v7 }
 0x1c7   : > { %v1729_v5 = vadd.f32 %v1686_v27, %v1423_v4  ;;  %v2409_v27 = vrot.slane %v4849_v29, 5  ;;  %v1065_v15 = vadd.f32 %v1064_v62, %v5455_v25  ;;  %v6035_v29 = vld [vmem:[%s5059_s19 + $0x74] sm:$0x1] }
 0x1c8   : > { %v3165_v19 = vsel %vm5071_vm3, %v3160_v8, %v3164_v31  ;;  %v4480_v8 = vrot.slane %v4851_v6, 9  ;;  %v3178_v62 = vrot.slane %v3176_v3, 5 }
 0x1c9   : > { %v1383_v16 = vpop.f32.mrf.mxu2  ;;  %v6012_v4 = vadd.f32 %v2292_v57, %v1729_v5  ;;  %v3170_v57 = vshll.u32 %v6007_v45, 16  ;;  %v2412_v5 = vrot.slane %v4850_v1, 5  ;;  %v3397_v21 = vunpack.c.l.b16 %v3165_v19 }
 0x1ca   : > { %v1424_v20 = vadd.f32 %v1383_v16, %v1063_v51  ;;  %v3666_v16 = vrot.slane %v3664_v9, 4  ;;  %v2411_v31 = vrot.slane %v2409_v27, 4 }
 0x1cb   : > { %4641 = vmatmul.msk.bf16.gmra.mxu3 %vm715_vm4, %v3421_v44  ;;  %v4658_v44 = vrot.slane %v5962_v59, 9  ;;  %v3172_v25 = vrot.slane %v3170_v57, 5  ;;  %v3182_v59 = vrot.slane %v3180_v12, 4  ;;  %v3422_v19 = vpack.c.b16 %v3397_v21, %v3396_v23 }
 0x1cc   : > { %v3668_v42 = vsel %vm5273_vm7, %v3666_v16, %v3667_v63 }
 0x1cd   : > { %v2295_v18 = vpop.f32.mrf.mxu0  ;;  %v3183_v12 = vor.u32 %v3182_v59, %v3178_v62 }
 0x1ce   : > { %v1689_v50 = vpop.f32.mrf.mxu3  ;;  %v1067_v47 = vpop.f32.mrf.mxu1 }
 0x1cf   : > { %v1730_v61 = vadd.f32 %v1689_v50, %v1424_v20  ;;  %v4728_v20 = vld [vmem:[%s5059_s19 + $0x60] sm:$0xff] }
 0x1d0   : > { %4674 = vmatmul.msk.bf16.gmra.mxu0 %vm715_vm4, %v3771_v39  ;;  %v3169_v39 = vrot.slane %v3167_v32, 4  ;;  %v2410_v32 = vsel %vm5273_vm7, %v4480_v8, %v2409_v27  ;;  %v3671_v8 = vrot.slane %v6010_v24, 5 }
 0x1d1   : > { %v1385_v51 = vpop.f32.mrf.mxu2  ;;  %4496 = vmatmul.msk.bf16.gmra.mxu1 %vm715_vm4, %v2510_v22  ;;  %v6032_v50 = vadd.f32 %v2295_v18, %v1730_v61  ;;  %v3665_v22 = vsel %vm5273_vm7, %v4658_v44, %v3664_v9  ;;  %v2413_v61 = vsel %vm5273_vm7, %v2411_v31, %v2412_v5  ;;  %v3186_v9 = vshll.u32 %v6035_v29, 16 }
 0x1d2   : > { %v1425_v38 = vadd.f32 %v1385_v51, %v1065_v15  ;;  %v3173_v3 = vor.u32 %v3172_v25, %v3169_v39  ;;  %v1068_v15 = vadd.f32 %v1067_v47, %v5476_v49  ;;  %v3746_v44 = vunpack.c.l.b16 %v3665_v22  ;;  %v6056_v39 = vld [vmem:[%s5059_s19 + $0x7c] sm:$0xf] }
 0x1d3   : > { %v3747_v51 = vunpack.c.l.b16 %v3668_v42  ;;  %v2486_v63 = vunpack.c.l.b16 %v2410_v32  ;;  %v2487_v23 = vunpack.c.l.b16 %v2413_v61  ;;  %v3184_v5 = vrot.slane %v3183_v12, 4 }
 0x1d4   : > { %v3174_v27 = vrot.slane %v3173_v3, 4  ;;  %v3673_v12 = vrot.slane %v3671_v8, 4 }
 0x1d5   : > { %v2297_v1 = vpop.f32.mrf.mxu0  ;;  %v3772_v6 = vpack.c.b16 %v3747_v51, %v3746_v44  ;;  %v2511_v47 = vpack.c.b16 %v2487_v23, %v2486_v63  ;;  %v4853_v44 = vld [vmem:[%s5059_s19 + $0x6c] sm:$0xf] }
 0x1d6   : > { %v1691_v7 = vpop.f32.mrf.mxu3  ;;  %4625 = vmatmul.msk.bf16.gmra.mxu2 %vm715_vm4, %v4728_v20  ;;  %v1069_v18 = vpop.f32.mrf.mxu1  ;;  %v6049_v20 = vld [vmem:[%s5059_s19 + $0x78] sm:$0xf]  ;;  %v3179_v24 = vsel %vm5071_vm3, %v3174_v27, %v3178_v62  ;;  %v4481_v62 = vrot.slane %v4853_v44, 9  ;;  %v4729_v23 = vld [vmem:[%s5059_s19 + $0x6c] sm:$0xff] }
 0x1d7   : > { %v1731_v57 = vadd.f32 %v1691_v7, %v1425_v38  ;;  %v3188_v38 = vrot.slane %v3186_v9, 5  ;;  %v3191_v25 = vshrl.u32 %v6049_v20, 16  ;;  %v3194_v59 = vshll.u32 %v6049_v20, 16 }
 0x1d8   : > { %v4659_v7 = vrot.slane %v6007_v45, 9  ;;  %v1070_v3 = vadd.f32 %v1069_v18, %v5495_v30  ;;  %v3200_v45 = vshll.u32 %v6056_v39, 16  ;;  %v3204_v9 = vshrl.u32 %v6056_v39, 16 }
 0x1d9   : > { %v1388_v16 = vpop.f32.mrf.mxu2  ;;  %v6053_v31 = vadd.f32 %v2297_v1, %v1731_v57  ;;  %v3189_v1 = vsel %vm5071_vm3, %v3184_v5, %v3188_v38  ;;  %v3674_v57 = vrot.slane %v6035_v29, 5  ;;  %v3193_v51 = vrot.slane %v3191_v25, 4  ;;  %v4532_v25 = vld [vmem:[%s5059_s19 + $0x80] sm:$0x1] }
 0x1da   : > { %v1426_v21 = vadd.f32 %v1388_v16, %v1068_v15  ;;  %v3196_v16 = vrot.slane %v3194_v59, 5  ;;  %v3398_v30 = vunpack.c.l.b16 %v3179_v24  ;;  %v3399_v18 = vunpack.c.l.b16 %v3189_v1 }
 0x1db   : > { %4642 = vmatmul.msk.bf16.gmra.mxu3 %vm715_vm4, %v3422_v19  ;;  %v4852_v19 = vld [vmem:[%s5059_s19 + $0x70] sm:$0xf]  ;;  %v3672_v38 = vsel %vm5273_vm7, %v4659_v7, %v3671_v8 }
 0x1dc   : > { %v2416_v32 = vrot.slane %v4852_v19, 5  ;;  %v3197_v59 = vor.u32 %v3196_v16, %v3193_v51  ;;  %v3423_v7 = vpack.c.b16 %v3399_v18, %v3398_v30  ;;  %v3748_v24 = vunpack.c.l.b16 %v3672_v38 }
 0x1dd   : > { %v2300_v49 = vpop.f32.mrf.mxu0 }
 0x1de   : > { %v1694_v22 = vpop.f32.mrf.mxu3  ;;  %v1072_v42 = vpop.f32.mrf.mxu1  ;;  %v2418_v29 = vrot.slane %v2416_v32, 4  ;;  %v3198_v16 = vrot.slane %v3197_v59, 4 }
 0x1df   : > { %v1732_v61 = vadd.f32 %v1694_v22, %v1426_v21  ;;  %v4854_v21 = vld [vmem:[%s5059_s19 + $0x74] sm:$0x1]  ;;  %v3206_v22 = vrot.slane %v3204_v9, 4 }
 0x1e0   : > { %4675 = vmatmul.msk.bf16.gmra.mxu0 %vm715_vm4, %v3772_v6  ;;  %v2419_v27 = vrot.slane %v4854_v21, 5  ;;  %v3675_v6 = vsel %vm5273_vm7, %v3673_v12, %v3674_v57  ;;  %v1073_v57 = vadd.f32 %v1072_v42, %v5518_v58  ;;  %v6089_v21 = vld [vmem:[%s5059_s19 + $0x84] sm:$0xf]  ;;  %v6095_v58 = vld [vmem:[%s5059_s19 + $0x88] sm:$0xf] }
 0x1e1   : > { %v1390_v15 = vpop.f32.mrf.mxu2  ;;  %4497 = vmatmul.msk.bf16.gmra.mxu1 %vm715_vm4, %v2511_v47  ;;  %v6075_v5 = vadd.f32 %v2300_v49, %v1732_v61  ;;  %v3202_v47 = vrot.slane %v3200_v45, 5  ;;  %v2417_v49 = vsel %vm5273_vm7, %v4481_v62, %v2416_v32  ;;  %v3749_v1 = vunpack.c.l.b16 %v3675_v6 }
 0x1e2   : > { %v1427_v63 = vadd.f32 %v1390_v15, %v1070_v3  ;;  %v2420_v61 = vsel %vm5273_vm7, %v2418_v29, %v2419_v27  ;;  %v3210_v45 = vshll.u32 %v4532_v25, 16  ;;  %v2488_v44 = vunpack.c.l.b16 %v2417_v49  ;;  %v4855_v49 = vld [vmem:[%s5059_s19 + $0x7c] sm:$0xf] }
 0x1e3   : > { %v3207_v12 = vor.u32 %v3206_v22, %v3202_v47  ;;  %v2489_v51 = vunpack.c.l.b16 %v2420_v61  ;;  %v3773_v32 = vpack.c.b16 %v3749_v1, %v3748_v24  ;;  %v3678_v62 = vrot.slane %v6056_v39, 5 }
 0x1e4   : > { %v3212_v29 = vrot.slane %v3210_v45, 5  ;;  %v4660_v27 = vrot.slane %v6049_v20, 9  ;;  %v3203_v38 = vsel %vm5071_vm3, %v3198_v16, %v3202_v47  ;;  %v3215_v6 = vshrl.u32 %v6089_v21, 16  ;;  %v4730_v16 = vld [vmem:[%s5059_s19 + $0x78] sm:$0xff] }
 0x1e5   : > { %v2302_v19 = vpop.f32.mrf.mxu0  ;;  %v2512_v18 = vpack.c.b16 %v2489_v51, %v2488_v44  ;;  %v3218_v22 = vshll.u32 %v6089_v21, 16  ;;  %v2423_v61 = vrot.slane %v4855_v49, 5  ;;  %v3400_v1 = vunpack.c.l.b16 %v3203_v38 }
 0x1e6   : > { %v1696_v3 = vpop.f32.mrf.mxu3  ;;  %4626 = vmatmul.msk.bf16.gmra.mxu2 %vm715_vm4, %v4729_v23  ;;  %v1074_v15 = vpop.f32.mrf.mxu1 }
 0x1e7   : > { %v1733_v8 = vadd.f32 %v1696_v3, %v1427_v63  ;;  %v3208_v63 = vrot.slane %v3207_v12, 4  ;;  %v3681_v3 = vrot.slane %v4532_v25, 5  ;;  %v1075_v47 = vadd.f32 %v1074_v15, %v5534_v60  ;;  %v4856_v12 = vld [vmem:[%s5059_s19 + $0x78] sm:$0xf] }
 0x1e8   : > { %v3679_v25 = vsel %vm5273_vm7, %v4660_v27, %v3678_v62  ;;  %v4482_v45 = vrot.slane %v4856_v12, 9  ;;  %v3220_v44 = vrot.slane %v3218_v22, 5 }
 0x1e9   : > { %v1393_v9 = vpop.f32.mrf.mxu2  ;;  %v6097_v42 = vadd.f32 %v2302_v19, %v1733_v8  ;;  %v3224_v19 = vshll.u32 %v6095_v58, 16  ;;  %v3228_v8 = vshrl.u32 %v6095_v58, 16  ;;  %v3213_v24 = vsel %vm5071_vm3, %v3208_v63, %v3212_v29 }
 0x1ea   : > { %v1428_v23 = vadd.f32 %v1393_v9, %v1073_v57  ;;  %v3217_v9 = vrot.slane %v3215_v6, 4  ;;  %v3401_v63 = vunpack.c.l.b16 %v3213_v24  ;;  %v3750_v27 = vunpack.c.l.b16 %v3679_v25 }
 0x1eb   : > { %4643 = vmatmul.msk.bf16.gmra.mxu3 %vm715_vm4, %v3423_v7  ;;  %v3680_v7 = vrot.slane %v3678_v62, 4  ;;  %v3230_v38 = vrot.slane %v3228_v8, 4  ;;  %v3685_v24 = vrot.slane %v6095_v58, 5  ;;  %v4661_v58 = vrot.slane %v6089_v21, 9 }
 0x1ed   : > { %v2305_v30 = vpop.f32.mrf.mxu0  ;;  %v3682_v29 = vsel %vm5273_vm7, %v3680_v7, %v3681_v3  ;;  %v3221_v3 = vor.u32 %v3220_v44, %v3217_v9 }
 0x1ee   : > { %v1699_v59 = vpop.f32.mrf.mxu3  ;;  %v2580_v39 = vpop.f32.mrf.mxu1  ;;  %v3751_v6 = vunpack.c.l.b16 %v3682_v29 }
 0x1ef   : > { %v1734_v20 = vadd.f32 %v1699_v59, %v1428_v23  ;;  %v2425_v23 = vrot.slane %v2423_v61, 4  ;;  %v4535_v59 = vld [vmem:[%s5059_s19 + $0x8c] sm:$0x1] }
 0x1f0   : > { %4676 = vmatmul.msk.bf16.gmra.mxu0 %vm715_vm4, %v3773_v32  ;;  %v4857_v32 = vld [vmem:[%s5059_s19 + $0x80] sm:$0x1]  ;;  %v3774_v29 = vpack.c.b16 %v3751_v6, %v3750_v27 }
 0x1f1   : > { %v1395_v57 = vpop.f32.mrf.mxu2  ;;  %4498 = vmatmul.msk.bf16.gmra.mxu1 %vm715_vm4, %v2512_v18  ;;  %v2426_v60 = vrot.slane %v4857_v32, 5  ;;  %v6116_v15 = vadd.f32 %v2305_v30, %v1734_v20  ;;  %v6120_v18 = vrot.slane %v3224_v19, 5  ;;  %v2424_v30 = vsel %vm5273_vm7, %v4482_v45, %v2423_v61  ;;  %v6132_v32 = vld [vmem:[%s5059_s19 + $0x90] sm:$0xf]  ;;  %v6135_v45 = vld [vmem:[%s5059_s19 + $0x94] sm:$0xf] }
 0x1f2   : > { %v1429_v51 = vadd.f32 %v1395_v57, %v1075_v47  ;;  %v3424_v19 = vpack.c.b16 %v3401_v63, %v3400_v1  ;;  %v3234_v47 = vshll.u32 %v4535_v59, 16  ;;  %v2660_v57 = vadd.f32 %v2580_v39, %v5552_v26 }
 0x1f3   : > { %v2427_v20 = vsel %vm5273_vm7, %v2425_v23, %v2426_v60  ;;  %v3231_v8 = vor.u32 %v3230_v38, %v6120_v18  ;;  %v2490_v12 = vunpack.c.l.b16 %v2424_v30  ;;  %v3222_v61 = vrot.slane %v3221_v3, 4  ;;  %v4858_v30 = vld [vmem:[%s5059_s19 + $0x88] sm:$0xf] }
 0x1f4   : > { %v3236_v44 = vrot.slane %v3234_v47, 5  ;;  %v3688_v26 = vrot.slane %v4535_v59, 5  ;;  %v3239_v39 = vshrl.u32 %v6132_v32, 16  ;;  %v3242_v38 = vshll.u32 %v6132_v32, 16 }
 0x1f5   : > { %v2307_v62 = vpop.f32.mrf.mxu0  ;;  %v3232_v9 = vrot.slane %v3231_v8, 4  ;;  %v3248_v27 = vshll.u32 %v6135_v45, 16  ;;  %v3252_v21 = vshrl.u32 %v6135_v45, 16  ;;  %v3227_v3 = vsel %vm5071_vm3, %v3222_v61, %v6120_v18  ;;  %v4859_v61 = vld [vmem:[%s5059_s19 + $0x84] sm:$0xf] }
 0x1f6   : > { %v1701_v49 = vpop.f32.mrf.mxu3  ;;  %4627 = vmatmul.msk.bf16.gmra.mxu2 %vm715_vm4, %v4730_v16  ;;  %v2582_v22 = vpop.f32.mrf.mxu1  ;;  %v2491_v16 = vunpack.c.l.b16 %v2427_v20  ;;  %v2430_v20 = vrot.slane %v4858_v30, 5  ;;  %v3241_v47 = vrot.slane %v3239_v39, 4  ;;  %v3402_v39 = vunpack.c.l.b16 %v3227_v3 }
 0x1f7   : > { %v1735_v7 = vadd.f32 %v1701_v49, %v1429_v51  ;;  %v3687_v51 = vrot.slane %v3685_v24, 4 }
 0x1f8   : > { %v2513_v63 = vpack.c.b16 %v2491_v16, %v2490_v12  ;;  %v3244_v12 = vrot.slane %v3242_v38, 5  ;;  %v6166_v16 = vrot.slane %v3248_v27, 5 }
 0x1f9   : > { %v2886_v25 = vpop.f32.mrf.mxu2  ;;  %v6140_v23 = vadd.f32 %v2307_v62, %v1735_v7  ;;  %v6150_v62 = vld [vmem:[%s6535_s2] ss:$0 sm:$0xff]  ;;  %v3237_v7 = vsel %vm5071_vm3, %v3232_v9, %v3236_v44  ;;  %v3689_v8 = vsel %vm5273_vm7, %v3687_v51, %v3688_v26  ;;  %v4860_v9 = vld [vmem:[%s5059_s19 + $0x8c] sm:$0x1] }
 0x1fa   : > { %v2966_v1 = vadd.f32 %v2886_v25, %v2660_v57  ;;  %v2661_v25 = vadd.f32 %v2582_v22, %v5565_v2  ;;  %v2433_v44 = vrot.slane %v4860_v9, 5  ;;  %v6173_v2 = vld [vmem:[%s5059_s19 + $0x98] sm:$0x1]  ;;  %v3753_v38 = vunpack.c.l.b16 %v3689_v8 }
 0x1fb   : > { %4644 = vmatmul.msk.bf16.gmra.mxu3 %vm715_vm4, %v3424_v19  ;;  %v3686_v19 = vsel %vm5273_vm7, %v4661_v58, %v3685_v24  ;;  %v2432_v24 = vrot.slane %v2430_v20, 4  ;;  %v3254_v58 = vrot.slane %v3252_v21, 4  ;;  %v3245_v3 = vor.u32 %v3244_v12, %v3241_v47 }
 0x1fd   : > { %v3842_v60 = vpop.f32.mrf.mxu0  ;;  %v3246_v12 = vrot.slane %v3245_v3, 4  ;;  %v4861_v3 = vld [vmem:[%s5059_s19 + $0x94] sm:$0xf] }
 0x1fe   : > { %v3492_v49 = vpop.f32.mrf.mxu3  ;;  %v2585_v6 = vpop.f32.mrf.mxu1 }
 0x1ff   : > { %v3572_v59 = vadd.f32 %v3492_v49, %v2966_v1  ;;  %v4483_v1 = vrot.slane %v4859_v61, 9 }
 0x200   : > { %4677 = vmatmul.msk.bf16.gmra.mxu0 %vm715_vm4, %v3774_v29  ;;  %v4731_v29 = vld [vmem:[%s5059_s19 + $0x84] sm:$0xff] }
 0x201   : > { %v3922_v57 = vadd.f32 %v3842_v60, %v3572_v59  ;;  %v2888_v18 = vpop.f32.mrf.mxu2  ;;  %4499 = vmatmul.msk.bf16.gmra.mxu1 %vm715_vm4, %v2513_v63  ;;  %v3403_v60 = vunpack.c.l.b16 %v3237_v7  ;;  %v3752_v63 = vunpack.c.l.b16 %v3686_v19  ;;  %v2431_v21 = vsel %vm5273_vm7, %v4483_v1, %v2430_v20  ;;  %v6187_v1 = vld [vmem:[%s5059_s19 + $0x9c] sm:$0xf] }
 0x202   : > { %v2967_v26 = vadd.f32 %v2888_v18, %v2661_v25  ;;  %v2434_v59 = vsel %vm5273_vm7, %v2432_v24, %v2433_v44  ;;  %v3255_v7 = vor.u32 %v3254_v58, %v6166_v16  ;;  %v2662_v18 = vadd.f32 %v2585_v6, %v5578_v35  ;;  %v6190_v24 = vld [vmem:[%s5059_s19 + $0xa0] sm:$0xf] }
 0x203   : > { %v3958_v51 = vadd.f32 %v6150_v62, %v3922_v57  ;;  %v3425_v8 = vpack.c.b16 %v3403_v60, %v3402_v39  ;;  %v3258_v57 = vshll.u32 %v6173_v2, 16  ;;  %v2492_v61 = vunpack.c.l.b16 %v2431_v21 }
 0x204   : > { %v2493_v20 = vunpack.c.l.b16 %v2434_v59  ;;  %v3775_v47 = vpack.c.b16 %v3753_v38, %v3752_v63  ;;  %v3256_v9 = vrot.slane %v3255_v7, 4  ;;  %v3692_v35 = vrot.slane %v6135_v45, 5 }
 0x205   : > { %v3990_v22 = vmax.f32 %v3958_v51, 0.0  ;;  %v3844_v49 = vpop.f32.mrf.mxu0  ;;  %v3260_v51 = vrot.slane %v3258_v57, 5  ;;  %v3263_v6 = vshrl.u32 %v6187_v1, 16  ;;  %v3272_v39 = vshll.u32 %v6190_v24, 16 }
 0x206   : > { %v3494_v27 = vpop.f32.mrf.mxu3  ;;  %4628 = vmatmul.msk.bf16.gmra.mxu2 %vm715_vm4, %v4731_v29  ;;  %v2587_v30 = vpop.f32.mrf.mxu1  ;;  %v3276_v60 = vshrl.u32 %v6190_v24, 16  ;;  %v2514_v63 = vpack.c.b16 %v2493_v20, %v2492_v61  ;;  %v4662_v21 = vrot.slane %v6132_v32, 9  ;;  %v3695_v59 = vrot.slane %v6173_v2, 5 }
 0x207   : > { %4022 = vst [vmem:[%s6181_s9] sm:$0xff] %v3990_v22  ;;  %v3573_v19 = vadd.f32 %v3494_v27, %v2967_v26  ;;  %v3266_v26 = vshll.u32 %v6187_v1, 16  ;;  %v2437_v45 = vrot.slane %v4861_v3, 5  ;;  %v3694_v57 = vrot.slane %v3692_v35, 4 }
 0x208   : > { %v3265_v32 = vrot.slane %v3263_v6, 4  ;;  %v2663_v61 = vadd.f32 %v2587_v30, %v5591_v34  ;;  %v3693_v34 = vsel %vm5273_vm7, %v4662_v21, %v3692_v35 }
 0x209   : > { %v3923_v25 = vadd.f32 %v3844_v49, %v3573_v19  ;;  %v2891_v29 = vpop.f32.mrf.mxu2  ;;  %v3251_v19 = vsel %vm5071_vm3, %v3246_v12, %v6166_v16  ;;  %v3268_v2 = vrot.slane %v3266_v26, 5  ;;  %v4732_v16 = vld [vmem:[%s5059_s19 + $0x90] sm:$0xff]  ;;  %v3696_v30 = vsel %vm5273_vm7, %v3694_v57, %v3695_v59 }
 0x20a   : > { %v2968_v58 = vadd.f32 %v2891_v29, %v2662_v18  ;;  %v3278_v18 = vrot.slane %v3276_v60, 4  ;;  %v3404_v12 = vunpack.c.l.b16 %v3251_v19  ;;  %v3754_v57 = vunpack.c.l.b16 %v3693_v34 }
 0x20b   : > { %v3959_v44 = vadd.f32 %v6150_v62, %v3923_v25  ;;  %4645 = vmatmul.msk.bf16.gmra.mxu3 %vm715_vm4, %v3425_v8  ;;  %v3261_v8 = vsel %vm5071_vm3, %v3256_v9, %v3260_v51  ;;  %v6209_v25 = vrot.slane %v3272_v39, 5  ;;  %v4862_v9 = vld [vmem:[%s5059_s19 + $0x90] sm:$0xf]  ;;  %v2439_v51 = vrot.slane %v2437_v45, 4 }
 0x20c   : > { %v3405_v39 = vunpack.c.l.b16 %v3261_v8  ;;  %v3269_v60 = vor.u32 %v3268_v2, %v3265_v32  ;;  %v3755_v32 = vunpack.c.l.b16 %v3696_v30 }
 0x20d   : > { %v3991_v22 = vmax.f32 %v3959_v44, 0.0  ;;  %v3847_v49 = vpop.f32.mrf.mxu0  ;;  %v6214_v44 = vld [vmem:[%s5059_s19 + $0xa4] sm:$0x1] }
 0x20e   : > { %v3497_v38 = vpop.f32.mrf.mxu3  ;;  %v2590_v27 = vpop.f32.mrf.mxu1  ;;  %v3426_v59 = vpack.c.b16 %v3405_v39, %v3404_v12  ;;  %v3270_v2 = vrot.slane %v3269_v60, 4  ;;  %v3776_v12 = vpack.c.b16 %v3755_v32, %v3754_v57  ;;  %v3702_v60 = vrot.slane %v6214_v44, 5 }
 0x20f   : > { %4023 = vst [vmem:[%s6181_s9 + $0x8] sm:$0xff] %v3991_v22  ;;  %v3574_v7 = vadd.f32 %v3497_v38, %v2968_v58  ;;  %v4484_v58 = vrot.slane %v4862_v9, 9  ;;  %v4863_v22 = vld [vmem:[%s5059_s19 + $0x98] sm:$0x1] }
 0x210   : > { %4678 = vmatmul.msk.bf16.gmra.mxu0 %vm715_vm4, %v3775_v47  ;;  %v2440_v47 = vrot.slane %v4863_v22, 5  ;;  %v6235_v22 = vld [vmem:[%s5059_s19 + $0xa8] sm:$0xf] }
 0x211   : > { %v3924_v29 = vadd.f32 %v3847_v49, %v3574_v7  ;;  %v2893_v20 = vpop.f32.mrf.mxu2  ;;  %4500 = vmatmul.msk.bf16.gmra.mxu1 %vm715_vm4, %v2514_v63  ;;  %v3279_v49 = vor.u32 %v3278_v18, %v6209_v25  ;;  %v3282_v63 = vshll.u32 %v6214_v44, 16  ;;  %v2438_v8 = vsel %vm5273_vm7, %v4484_v58, %v2437_v45 }
 0x212   : > { %v2969_v26 = vadd.f32 %v2893_v20, %v2663_v61  ;;  %v2441_v35 = vsel %vm5273_vm7, %v2439_v51, %v2440_v47  ;;  %v3699_v61 = vrot.slane %v6190_v24, 5  ;;  %v2494_v45 = vunpack.c.l.b16 %v2438_v8 }
 0x213   : > { %v3960_v6 = vadd.f32 %v6150_v62, %v3924_v29  ;;  %v3280_v18 = vrot.slane %v3279_v49, 4  ;;  %v3284_v29 = vrot.slane %v3282_v63, 5  ;;  %v2495_v58 = vunpack.c.l.b16 %v2441_v35 }
 0x214   : > { %v3275_v24 = vsel %vm5071_vm3, %v3270_v2, %v6209_v25  ;;  %v3287_v49 = vshrl.u32 %v6235_v22, 16  ;;  %v3290_v25 = vshll.u32 %v6235_v22, 16 }
 0x215   : > { %v3992_v38 = vmax.f32 %v3960_v6, 0.0  ;;  %v3849_v3 = vpop.f32.mrf.mxu0  ;;  %v3701_v6 = vrot.slane %v3699_v61, 4  ;;  %v2515_v30 = vpack.c.b16 %v2495_v58, %v2494_v45  ;;  %v3406_v44 = vunpack.c.l.b16 %v3275_v24  ;;  %v4866_v58 = vld [vmem:[%s5059_s19 + $0xa4] sm:$0x1]  ;;  %v6269_v24 = vld [vmem:[%s5059_s19 + $0xb0] sm:$0x1] }
 0x216   : > { %v3499_v7 = vpop.f32.mrf.mxu3  ;;  %4629 = vmatmul.msk.bf16.gmra.mxu2 %vm715_vm4, %v4732_v16  ;;  %v2592_v19 = vpop.f32.mrf.mxu1  ;;  %v2664_v16 = vadd.f32 %v2590_v27, %v5604_v40  ;;  %v3285_v40 = vsel %vm5071_vm3, %v3280_v18, %v3284_v29  ;;  %v4663_v27 = vrot.slane %v6187_v1, 9  ;;  %v3289_v29 = vrot.slane %v3287_v49, 4 }
 0x217   : > { %4024 = vst [vmem:[%s6181_s9 + $0x10] sm:$0xff] %v3992_v38  ;;  %v3575_v21 = vadd.f32 %v3499_v7, %v2969_v26  ;;  %v6246_v26 = vld [vmem:[%s5059_s19 + $0xac] sm:$0xf]  ;;  %v2665_v32 = vadd.f32 %v2592_v19, %v5617_v14  ;;  %v3703_v18 = vsel %vm5273_vm7, %v3701_v6, %v3702_v60 }
 0x218   : > { %v3296_v8 = vshll.u32 %v6246_v26, 16  ;;  %v3300_v35 = vshrl.u32 %v6246_v26, 16 }
 0x219   : > { %v3925_v20 = vadd.f32 %v3849_v3, %v3575_v21  ;;  %v2896_v9 = vpop.f32.mrf.mxu2  ;;  %v4864_v3 = vld [vmem:[%s5059_s19 + $0xa0] sm:$0xf]  ;;  %v3407_v21 = vunpack.c.l.b16 %v3285_v40 }
 0x21a   : > { %v2970_v47 = vadd.f32 %v2896_v9, %v2664_v16  ;;  %v2444_v7 = vrot.slane %v4864_v3, 5  ;;  %v4865_v16 = vld [vmem:[%s5059_s19 + $0x9c] sm:$0xf]  ;;  %v6266_v14 = vrot.slane %v3296_v8, 5  ;;  %v3302_v19 = vrot.slane %v3300_v35, 4 }
 0x21b   : > { %v3961_v51 = vadd.f32 %v6150_v62, %v3925_v20  ;;  %4646 = vmatmul.msk.bf16.gmra.mxu3 %vm715_vm4, %v3426_v59  ;;  %v3700_v59 = vsel %vm5273_vm7, %v4663_v27, %v3699_v61  ;;  %v4733_v20 = vld [vmem:[%s5059_s19 + $0x9c] sm:$0xff]  ;;  %v4485_v9 = vrot.slane %v4865_v16, 9  ;;  %v3306_v8 = vshll.u32 %v6269_v24, 16 }
 0x21c   : > { %v2446_v45 = vrot.slane %v2444_v7, 4  ;;  %v3756_v6 = vunpack.c.l.b16 %v3700_v59 }
 0x21d   : > { %v3993_v39 = vmax.f32 %v3961_v51, 0.0  ;;  %v3852_v34 = vpop.f32.mrf.mxu0  ;;  %v2447_v51 = vrot.slane %v4866_v58, 5  ;;  %v2445_v60 = vsel %vm5273_vm7, %v4485_v9, %v2444_v7  ;;  %v6284_v7 = vld [vmem:[%s5059_s19 + $0xb8] sm:$0xf]  ;;  %v3308_v9 = vrot.slane %v3306_v8, 5 }
 0x21e   : > { %v3502_v63 = vpop.f32.mrf.mxu3  ;;  %v2595_v38 = vpop.f32.mrf.mxu1  ;;  %v3324_v58 = vshrl.u32 %v6284_v7, 16 }
 0x21f   : > { %4025 = vst [vmem:[%s6181_s9 + $0x18] sm:$0xff] %v3993_v39  ;;  %v3576_v1 = vadd.f32 %v3502_v63, %v2970_v47  ;;  %v2448_v49 = vsel %vm5273_vm7, %v2446_v45, %v2447_v51  ;;  %v2666_v59 = vadd.f32 %v2595_v38, %v5629_v17  ;;  %v3320_v45 = vshll.u32 %v6284_v7, 16 }
 0x220   : > { %4679 = vmatmul.msk.bf16.gmra.mxu0 %vm715_vm4, %v3776_v12  ;;  %v3292_v12 = vrot.slane %v3290_v25, 5  ;;  %v3427_v25 = vpack.c.b16 %v3407_v21, %v3406_v44 }
 0x221   : > { %v3926_v57 = vadd.f32 %v3852_v34, %v3576_v1  ;;  %v2898_v2 = vpop.f32.mrf.mxu2  ;;  %4501 = vmatmul.msk.bf16.gmra.mxu1 %vm715_vm4, %v2515_v30  ;;  %v3757_v34 = vunpack.c.l.b16 %v3703_v18  ;;  %v3303_v1 = vor.u32 %v3302_v19, %v6266_v14  ;;  %v6281_v18 = vld [vmem:[%s5059_s19 + $0xb4] sm:$0xf] }
 0x222   : > { %v2971_v47 = vadd.f32 %v2898_v2, %v2665_v32  ;;  %v3293_v63 = vor.u32 %v3292_v12, %v3289_v29  ;;  %v2496_v32 = vunpack.c.l.b16 %v2445_v60  ;;  %v2497_v2 = vunpack.c.l.b16 %v2448_v49 }
 0x223   : > { %v3962_v61 = vadd.f32 %v6150_v62, %v3926_v57  ;;  %v3304_v21 = vrot.slane %v3303_v1, 4  ;;  %v3311_v17 = vshrl.u32 %v6281_v18, 16  ;;  %v3314_v38 = vshll.u32 %v6281_v18, 16 }
 0x224   : > { %v3294_v16 = vrot.slane %v3293_v63, 4  ;;  %v4664_v49 = vrot.slane %v6235_v22, 9  ;;  %v4734_v22 = vld [vmem:[%s5059_s19 + $0xa8] sm:$0xff] }
 0x225   : > { %v3994_v40 = vmax.f32 %v3962_v61, 0.0  ;;  %v3854_v27 = vpop.f32.mrf.mxu0  ;;  %v2516_v61 = vpack.c.b16 %v2497_v2, %v2496_v32  ;;  %v3309_v60 = vsel %vm5071_vm3, %v3304_v21, %v3308_v9  ;;  %v3316_v63 = vrot.slane %v3314_v38, 5  ;;  %v4868_v32 = vld [vmem:[%s5059_s19 + $0xa8] sm:$0xf] }
 0x226   : > { %v3504_v39 = vpop.f32.mrf.mxu3  ;;  %4630 = vmatmul.msk.bf16.gmra.mxu2 %vm715_vm4, %v4733_v20  ;;  %v2597_v30 = vpop.f32.mrf.mxu1  ;;  %v3777_v20 = vpack.c.b16 %v3757_v34, %v3756_v6  ;;  %v3299_v34 = vsel %vm5071_vm3, %v3294_v16, %v6266_v14  ;;  %v4486_v2 = vrot.slane %v4868_v32, 9  ;;  %v4869_v16 = vld [vmem:[%s5059_s19 + $0xb0] sm:$0x1] }
 0x227   : > { %4026 = vst [vmem:[%s6181_s9 + $0x20] sm:$0xff] %v3994_v40  ;;  %v3577_v3 = vadd.f32 %v3504_v39, %v2971_v47  ;;  %v3706_v47 = vrot.slane %v6246_v26, 5  ;;  %v3313_v26 = vrot.slane %v3311_v17, 4  ;;  %v2667_v8 = vadd.f32 %v2597_v30, %v5642_v13 }
 0x228   : > { %v3408_v9 = vunpack.c.l.b16 %v3299_v34  ;;  %v3409_v13 = vunpack.c.l.b16 %v3309_v60 }
 0x229   : > { %v3927_v35 = vadd.f32 %v3854_v27, %v3577_v3  ;;  %v2901_v57 = vpop.f32.mrf.mxu2  ;;  %v4867_v27 = vld [vmem:[%s5059_s19 + $0xac] sm:$0xf]  ;;  %v6302_v3 = vrot.slane %v3320_v45, 5  ;;  %v3708_v14 = vrot.slane %v3706_v47, 4  ;;  %v3707_v30 = vsel %vm5273_vm7, %v4664_v49, %v3706_v47 }
 0x22a   : > { %v2972_v44 = vadd.f32 %v2901_v57, %v2666_v59  ;;  %v2451_v6 = vrot.slane %v4867_v27, 5  ;;  %v3709_v59 = vrot.slane %v6269_v24, 5  ;;  %v6308_v57 = vld [vmem:[%s5059_s19 + $0xbc] sm:$0x1]  ;;  %v3317_v17 = vor.u32 %v3316_v63, %v3313_v26 }
 0x22b   : > { %v3963_v29 = vadd.f32 %v6150_v62, %v3927_v35  ;;  %4647 = vmatmul.msk.bf16.gmra.mxu3 %vm715_vm4, %v3427_v25  ;;  %v3326_v25 = vrot.slane %v3324_v58, 4  ;;  %v3330_v38 = vshll.u32 %v6308_v57, 16  ;;  %v3758_v34 = vunpack.c.l.b16 %v3707_v30  ;;  %v4870_v30 = vld [vmem:[%s5059_s19 + $0xb8] sm:$0xf] }
 0x22c   : > { %v3318_v49 = vrot.slane %v3317_v17, 4  ;;  %v2458_v17 = vrot.slane %v4870_v30, 5 }
 0x22d   : > { %v3995_v51 = vmax.f32 %v3963_v29, 0.0  ;;  %v3857_v12 = vpop.f32.mrf.mxu0  ;;  %v2454_v29 = vrot.slane %v4869_v16, 5  ;;  %v3327_v24 = vor.u32 %v3326_v25, %v6302_v3  ;;  %v3332_v63 = vrot.slane %v3330_v38, 5 }
 0x22e   : > { %v3507_v19 = vpop.f32.mrf.mxu3  ;;  %v2600_v40 = vpop.f32.mrf.mxu1 }
 0x22f   : > { %4027 = vst [vmem:[%s6181_s9 + $0x28] sm:$0xff] %v3995_v51  ;;  %v3578_v39 = vadd.f32 %v3507_v19, %v2972_v44  ;;  %v3710_v51 = vsel %vm5273_vm7, %v3708_v14, %v3709_v59  ;;  %v2452_v19 = vsel %vm5273_vm7, %v4486_v2, %v2451_v6  ;;  %v3328_v26 = vrot.slane %v3327_v24, 4 }
 0x230   : > { %4680 = vmatmul.msk.bf16.gmra.mxu0 %vm715_vm4, %v3777_v20  ;;  %v2453_v20 = vrot.slane %v2451_v6, 4  ;;  %v3759_v60 = vunpack.c.l.b16 %v3710_v51  ;;  %v6328_v6 = vld [vmem:[%s5059_s19 + $0xc0] sm:$0xf]  ;;  %v3323_v2 = vsel %vm5071_vm3, %v3318_v49, %v6302_v3  ;;  %v4665_v51 = vrot.slane %v6281_v18, 9  ;;  %v4871_v49 = vld [vmem:[%s5059_s19 + $0xb4] sm:$0xf] }
 0x231   : > { %v3928_v1 = vadd.f32 %v3857_v12, %v3578_v39  ;;  %v2903_v35 = vpop.f32.mrf.mxu2  ;;  %4502 = vmatmul.msk.bf16.gmra.mxu1 %vm715_vm4, %v2516_v61  ;;  %v3428_v39 = vpack.c.b16 %v3409_v13, %v3408_v9  ;;  %v3338_v24 = vshll.u32 %v6328_v6, 16 }
 0x232   : > { %v2973_v21 = vadd.f32 %v2903_v35, %v2667_v8  ;;  %v2455_v47 = vsel %vm5273_vm7, %v2453_v20, %v2454_v29  ;;  %v2498_v35 = vunpack.c.l.b16 %v2452_v19  ;;  %v3778_v32 = vpack.c.b16 %v3759_v60, %v3758_v34  ;;  %v4735_v60 = vld [vmem:[%s5059_s19 + $0xb4] sm:$0xff] }
 0x233   : > { %v3964_v44 = vadd.f32 %v6150_v62, %v3928_v1  ;;  %v2668_v1 = vadd.f32 %v2600_v40, %v5656_v52  ;;  %v2499_v14 = vunpack.c.l.b16 %v2455_v47  ;;  %v3713_v20 = vrot.slane %v6284_v7, 5  ;;  %v6337_v52 = vld [vmem:[%s5059_s19 + $0xc4] sm:$0xf] }
 0x234   : > { %v3344_v3 = vshll.u32 %v6337_v52, 16  ;;  %v3348_v38 = vshrl.u32 %v6337_v52, 16 }
 0x235   : > { %v3996_v45 = vmax.f32 %v3964_v44, 0.0  ;;  %v3859_v58 = vpop.f32.mrf.mxu0  ;;  %v2517_v29 = vpack.c.b16 %v2499_v14, %v2498_v35  ;;  %v3333_v44 = vsel %vm5071_vm3, %v3328_v26, %v3332_v63  ;;  %v4487_v26 = vrot.slane %v4871_v49, 9 }
 0x236   : > { %v3509_v12 = vpop.f32.mrf.mxu3  ;;  %4631 = vmatmul.msk.bf16.gmra.mxu2 %vm715_vm4, %v4734_v22  ;;  %v2602_v61 = vpop.f32.mrf.mxu1  ;;  %v2460_v63 = vrot.slane %v2458_v17, 4  ;;  %v3346_v14 = vrot.slane %v3344_v3, 5 }
 0x237   : > { %4028 = vst [vmem:[%s6181_s9 + $0x30] sm:$0xff] %v3996_v45  ;;  %v3579_v27 = vadd.f32 %v3509_v12, %v2973_v21  ;;  %v3335_v21 = vshrl.u32 %v6328_v6, 16  ;;  %v3410_v45 = vunpack.c.l.b16 %v3323_v2  ;;  %v3715_v12 = vrot.slane %v3713_v20, 4 }
 0x238   : > { %v2669_v47 = vadd.f32 %v2602_v61, %v5669_v28  ;;  %v3350_v28 = vrot.slane %v3348_v38, 4  ;;  %v6357_v61 = vld [vmem:[%s5059_s19 + $0xc8] sm:$0x1]  ;;  %v6546_v38 = vld [vmem:[#allocation5_spill] sm:$0xff] }
 0x239   : > { %v3929_v25 = vadd.f32 %v3859_v58, %v3579_v27  ;;  %v2906_v8 = vpop.f32.mrf.mxu2  ;;  %v3411_v58 = vunpack.c.l.b16 %v3333_v44  ;;  %v3337_v34 = vrot.slane %v3335_v21, 4 }
 0x23a   : > { %v2974_v22 = vadd.f32 %v2906_v8, %v2668_v1  ;;  %v3340_v8 = vrot.slane %v3338_v24, 5  ;;  %v3351_v30 = vor.u32 %v3350_v28, %v3346_v14 }
 0x23b   : > { %v3965_v59 = vadd.f32 %v6150_v62, %v3929_v25  ;;  %4648 = vmatmul.msk.bf16.gmra.mxu3 %vm715_vm4, %v3428_v39  ;;  %v3716_v39 = vrot.slane %v6308_v57, 5  ;;  %v4872_v25 = vld [vmem:[%s5059_s19 + $0xbc] sm:$0x1]  ;;  %v3714_v57 = vsel %vm5273_vm7, %v4665_v51, %v3713_v20  ;;  %v3354_v20 = vshll.u32 %v6357_v61, 16 }
 0x23c   : > { %v2461_v1 = vrot.slane %v4872_v25, 5  ;;  %v3341_v44 = vor.u32 %v3340_v8, %v3337_v34  ;;  %v3760_v24 = vunpack.c.l.b16 %v3714_v57  ;;  %v6378_v25 = vld [vmem:[%s5059_s19 + $0xd0] sm:$0xf] }
 0x23d   : > { %v3997_v40 = vmax.f32 %v3965_v59, 0.0  ;;  %v3862_v16 = vpop.f32.mrf.mxu0 }
 0x23e   : > { %v3512_v9 = vpop.f32.mrf.mxu3  ;;  %v2605_v13 = vpop.f32.mrf.mxu1 }
 0x23f   : > { %4029 = vst [vmem:[%s6181_s9 + $0x38] sm:$0xff] %v3997_v40  ;;  %v3580_v7 = vadd.f32 %v3512_v9, %v2974_v22  ;;  %v3429_v9 = vpack.c.b16 %v3411_v58, %v3410_v45  ;;  %v2670_v51 = vadd.f32 %v2605_v13, %v6546_v38  ;;  %v3352_v58 = vrot.slane %v3351_v30, 4  ;;  %v4736_v30 = vld [vmem:[%s5059_s19 + $0xc0] sm:$0xff]  ;;  %v4875_v38 = vld [vmem:[%s5059_s19 + $0xc8] sm:$0x1] }
 0x240   : > { %4681 = vmatmul.msk.bf16.gmra.mxu0 %vm715_vm4, %v3778_v32  ;;  %v3717_v32 = vsel %vm5273_vm7, %v3715_v12, %v3716_v39  ;;  %v3356_v39 = vrot.slane %v3354_v20, 5  ;;  %v3720_v13 = vrot.slane %v6337_v52, 5  ;;  %v4666_v52 = vrot.slane %v6328_v6, 9 }
 0x241   : > { %v3930_v19 = vadd.f32 %v3862_v16, %v3580_v7  ;;  %v2908_v27 = vpop.f32.mrf.mxu2  ;;  %4503 = vmatmul.msk.bf16.gmra.mxu1 %vm715_vm4, %v2517_v29  ;;  %v2459_v16 = vsel %vm5273_vm7, %v4487_v26, %v2458_v17  ;;  %v2462_v29 = vsel %vm5273_vm7, %v2460_v63, %v2461_v1  ;;  %v3761_v7 = vunpack.c.l.b16 %v3717_v32  ;;  %v6375_v63 = vld [vmem:[%s5059_s19 + $0xcc] sm:$0xf] }
 0x242   : > { %v2975_v35 = vadd.f32 %v2908_v27, %v2669_v47  ;;  %v2501_v17 = vunpack.c.l.b16 %v2462_v29  ;;  %v3342_v47 = vrot.slane %v3341_v44, 4  ;;  %v3359_v57 = vshrl.u32 %v6375_v63, 16  ;;  %v6547_v44 = vld [vmem:[#allocation6_spill] sm:$0xff] }
 0x243   : > { %v3966_v18 = vadd.f32 %v6150_v62, %v3930_v19  ;;  %v2500_v19 = vunpack.c.l.b16 %v2459_v16  ;;  %v3779_v34 = vpack.c.b16 %v3761_v7, %v3760_v24  ;;  %v3362_v32 = vshll.u32 %v6375_v63, 16  ;;  %v4874_v24 = vld [vmem:[%s5059_s19 + $0xc0] sm:$0xf] }
 0x244   : > { %v3372_v16 = vshrl.u32 %v6378_v25, 16  ;;  %v3723_v6 = vrot.slane %v6357_v61, 5  ;;  %v4488_v7 = vrot.slane %v4874_v24, 9 }
 0x245   : > { %v3998_v59 = vmax.f32 %v3966_v18, 0.0  ;;  %v3864_v22 = vpop.f32.mrf.mxu0  ;;  %v2518_v26 = vpack.c.b16 %v2501_v17, %v2500_v19  ;;  %v4873_v18 = vld [vmem:[%s5059_s19 + $0xc4] sm:$0xf] }
 0x246   : > { %v3514_v2 = vpop.f32.mrf.mxu3  ;;  %4632 = vmatmul.msk.bf16.gmra.mxu2 %vm715_vm4, %v4735_v60  ;;  %v2607_v40 = vpop.f32.mrf.mxu1  ;;  %v3374_v61 = vrot.slane %v3372_v16, 4 }
 0x247   : > { %4030 = vst [vmem:[%s6181_s9 + $0x40] sm:$0xff] %v3998_v59  ;;  %v3581_v21 = vadd.f32 %v3514_v2, %v2975_v35  ;;  %v2465_v35 = vrot.slane %v4873_v18, 5  ;;  %v3347_v59 = vsel %vm5071_vm3, %v3342_v47, %v3346_v14  ;;  %v3368_v2 = vshll.u32 %v6378_v25, 16 }
 0x248   : > { %v2671_v14 = vadd.f32 %v2607_v40, %v6547_v44  ;;  %v3412_v20 = vunpack.c.l.b16 %v3347_v59  ;;  %v3721_v40 = vsel %vm5273_vm7, %v4666_v52, %v3720_v13  ;;  %v3361_v47 = vrot.slane %v3359_v57, 4 }
 0x249   : > { %v3931_v3 = vadd.f32 %v3864_v22, %v3581_v21  ;;  %v2911_v12 = vpop.f32.mrf.mxu2  ;;  %v3357_v22 = vsel %vm5071_vm3, %v3352_v58, %v3356_v39  ;;  %v3762_v59 = vunpack.c.l.b16 %v3721_v40 }
 0x24a   : > { %v2976_v45 = vadd.f32 %v2911_v12, %v2670_v51  ;;  %v2468_v51 = vrot.slane %v4875_v38, 5  ;;  %v3413_v17 = vunpack.c.l.b16 %v3357_v22  ;;  %v3727_v38 = vrot.slane %v6378_v25, 5 }
 0x24b   : > { %v3967_v27 = vadd.f32 %v6150_v62, %v3931_v3  ;;  %4649 = vmatmul.msk.bf16.gmra.mxu3 %vm715_vm4, %v3429_v9  ;;  %v3722_v9 = vrot.slane %v3720_v13, 4  ;;  %v2467_v3 = vrot.slane %v2465_v35, 4 }
 0x24c   : > { %v3729_v25 = vrot.slane %v3727_v38, 4 }
 0x24d   : > { %v3999_v60 = vmax.f32 %v3967_v27, 0.0  ;;  %v3867_v49 = vpop.f32.mrf.mxu0  ;;  %v3364_v27 = vrot.slane %v3362_v32, 5  ;;  %v2469_v13 = vsel %vm5273_vm7, %v2467_v3, %v2468_v51 }
 0x24e   : > { %v3517_v1 = vpop.f32.mrf.mxu3  ;;  %v2610_v8 = vpop.f32.mrf.mxu1 }
 0x24f   : > { %4031 = vst [vmem:[%s6181_s9 + $0x48] sm:$0xff] %v3999_v60  ;;  %v3582_v28 = vadd.f32 %v3517_v1, %v2976_v45  ;;  %v3370_v45 = vrot.slane %v3368_v2, 5  ;;  %v4553_v60 = vld [vmem:[%s5059_s19 + $0xd4] sm:$0x1]  ;;  %v2466_v1 = vsel %vm5273_vm7, %v4488_v7, %v2465_v35  ;;  %v3365_v52 = vor.u32 %v3364_v27, %v3361_v47 }
 0x250   : > { %4682 = vmatmul.msk.bf16.gmra.mxu0 %vm715_vm4, %v3779_v34  ;;  %v3724_v34 = vsel %vm5273_vm7, %v3722_v9, %v3723_v6  ;;  %v3378_v32 = vshll.u32 %v4553_v60, 16  ;;  %v2672_v16 = vadd.f32 %v2610_v8, %v5725_v10  ;;  %v2502_v44 = vunpack.c.l.b16 %v2466_v1 }
 0x251   : > { %v3932_v29 = vadd.f32 %v3867_v49, %v3582_v28  ;;  %v2913_v21 = vpop.f32.mrf.mxu2  ;;  %4504 = vmatmul.msk.bf16.gmra.mxu1 %vm715_vm4, %v2518_v26  ;;  %v3430_v28 = vpack.c.b16 %v3413_v17, %v3412_v20  ;;  %v3763_v22 = vunpack.c.l.b16 %v3724_v34  ;;  %v3375_v57 = vor.u32 %v3374_v61, %v3370_v45 }
 0x252   : > { %v2977_v19 = vadd.f32 %v2913_v21, %v2671_v14  ;;  %v2503_v14 = vunpack.c.l.b16 %v2469_v13  ;;  %v3366_v6 = vrot.slane %v3365_v52, 4  ;;  %v3380_v20 = vrot.slane %v3378_v32, 5 }
 0x253   : > { %v3968_v12 = vadd.f32 %v6150_v62, %v3932_v29  ;;  %v3780_v9 = vpack.c.b16 %v3763_v22, %v3762_v59  ;;  %v4667_v17 = vrot.slane %v6375_v63, 9  ;;  %v3730_v61 = vrot.slane %v4553_v60, 5 }
 0x254   : > { %v2519_v3 = vpack.c.b16 %v2503_v14, %v2502_v44 }
 0x255   : > { %v4000_v58 = vmax.f32 %v3968_v12, 0.0  ;;  %v3869_v39 = vpop.f32.mrf.mxu0  ;;  %v3371_v12 = vsel %vm5071_vm3, %v3366_v6, %v3370_v45  ;;  %v3728_v63 = vsel %vm5273_vm7, %v4667_v17, %v3727_v38 }
 0x256   : > { %v3519_v49 = vpop.f32.mrf.mxu3  ;;  %4633 = vmatmul.msk.bf16.gmra.mxu2 %vm715_vm4, %v4736_v30  ;;  %v2612_v26 = vpop.f32.mrf.mxu1  ;;  %v3376_v30 = vrot.slane %v3375_v57, 4 }
 0x257   : > { %4032 = vst [vmem:[%s6181_s9 + $0x50] sm:$0xff] %v4000_v58  ;;  %v3583_v18 = vadd.f32 %v3519_v49, %v2977_v19  ;;  %v2673_v47 = vadd.f32 %v2612_v26, %v5743_v55  ;;  %v4737_v58 = vld [vmem:[%s5059_s19 + $0xcc] sm:$0xff]  ;;  %v3414_v49 = vunpack.c.l.b16 %v3371_v12  ;;  %v3731_v55 = vsel %vm5273_vm7, %v3729_v25, %v3730_v61 }
 0x258   : > { %v3381_v19 = vsel %vm5071_vm3, %v3376_v30, %v3380_v20  ;;  %v3765_v59 = vunpack.c.l.b16 %v3731_v55 }
 0x259   : > { %v3933_v2 = vadd.f32 %v3869_v39, %v3583_v18  ;;  %v2916_v29 = vpop.f32.mrf.mxu2  ;;  %v3415_v45 = vunpack.c.l.b16 %v3381_v19 }
 0x25a   : > { %v2978_v21 = vadd.f32 %v2916_v29, %v2672_v16 }
 0x25b   : > { %v3969_v35 = vadd.f32 %v6150_v62, %v3933_v2  ;;  %4650 = vmatmul.msk.bf16.gmra.mxu3 %vm715_vm4, %v3430_v28  ;;  %v3431_v18 = vpack.c.b16 %v3415_v45, %v3414_v49  ;;  %v3764_v28 = vunpack.c.l.b16 %v3728_v63 }
 0x25d   : > { %v4001_v24 = vmax.f32 %v3969_v35, 0.0  ;;  %v3872_v7 = vpop.f32.mrf.mxu0  ;;  %v3781_v2 = vpack.c.b16 %v3765_v59, %v3764_v28 }
 0x25e   : > { %v3522_v10 = vpop.f32.mrf.mxu3  ;;  %v2615_v8 = vpop.f32.mrf.mxu1 }
 0x25f   : > { %4033 = vst [vmem:[%s6181_s9 + $0x58] sm:$0xff] %v4001_v24  ;;  %v3584_v51 = vadd.f32 %v3522_v10, %v2978_v21  ;;  %v2674_v52 = vadd.f32 %v2615_v8, %v5764_v56 }
 0x260   : > { %4683 = vmatmul.msk.bf16.gmra.mxu0 %vm715_vm4, %v3780_v9  ;;  %v6548_v9 = vld [vmem:[#allocation7_spill] sm:$0xff] }
 0x261   : > { %v3934_v40 = vadd.f32 %v3872_v7, %v3584_v51  ;;  %v2918_v27 = vpop.f32.mrf.mxu2  ;;  %4505 = vmatmul.msk.bf16.gmra.mxu1 %vm715_vm4, %v2519_v3 }
 0x262   : > { %v2979_v34 = vadd.f32 %v2918_v27, %v2673_v47 }
 0x263   : > { %v3970_v39 = vadd.f32 %v6150_v62, %v3934_v40 }
 0x265   : > { %v4002_v1 = vmax.f32 %v3970_v39, 0.0  ;;  %v3874_v36 = vpop.f32.mrf.mxu0 }
 0x266   : > { %v3524_v26 = vpop.f32.mrf.mxu3  ;;  %4634 = vmatmul.msk.bf16.gmra.mxu2 %vm715_vm4, %v4737_v58  ;;  %v2617_v13 = vpop.f32.mrf.mxu1 }
 0x267   : > { %4034 = vst [vmem:[%s6181_s9 + $0x60] sm:$0xff] %v4002_v1  ;;  %v3585_v60 = vadd.f32 %v3524_v26, %v2979_v34  ;;  %v2675_v6 = vadd.f32 %v2617_v13, %v6548_v9 }
 0x269   : > { %v3935_v22 = vadd.f32 %v3874_v36, %v3585_v60  ;;  %v2921_v57 = vpop.f32.mrf.mxu2 }
 0x26a   : > { %v2980_v46 = vadd.f32 %v2921_v57, %v2674_v52 }
 0x26b   : > { %v3971_v32 = vadd.f32 %v6150_v62, %v3935_v22  ;;  %4651 = vmatmul.msk.bf16.gmra.mxu3 %vm715_vm4, %v3431_v18 }
 0x26d   : > { %v4003_v16 = vmax.f32 %v3971_v32, 0.0  ;;  %v3877_v29 = vpop.f32.mrf.mxu0 }
 0x26e   : > { %v3527_v44 = vpop.f32.mrf.mxu3  ;;  %v2620_v14 = vpop.f32.mrf.mxu1 }
 0x26f   : > { %4035 = vst [vmem:[%s6181_s9 + $0x68] sm:$0xff] %v4003_v16  ;;  %v3586_v35 = vadd.f32 %v3527_v44, %v2980_v46  ;;  %v2676_v51 = vadd.f32 %v2620_v14, %v5809_v48 }
 0x270   : > { %4684 = vmatmul.msk.bf16.gmra.mxu0 %vm715_vm4, %v3781_v2 }
 0x271   : > { %v3936_v21 = vadd.f32 %v3877_v29, %v3586_v35  ;;  %v2923_v56 = vpop.f32.mrf.mxu2 }
 0x272   : > { %v2981_v20 = vadd.f32 %v2923_v56, %v2675_v6 }
 0x273   : > { %v3972_v30 = vadd.f32 %v6150_v62, %v3936_v21 }
 0x275   : > { %v4004_v24 = vmax.f32 %v3972_v30, 0.0  ;;  %v3879_v7 = vpop.f32.mrf.mxu0 }
 0x276   : > { %v3529_v3 = vpop.f32.mrf.mxu3  ;;  %v2622_v38 = vpop.f32.mrf.mxu1 }
 0x277   : > { %4036 = vst [vmem:[%s6181_s9 + $0x70] sm:$0xff] %v4004_v24  ;;  %v3587_v10 = vadd.f32 %v3529_v3, %v2981_v20  ;;  %v2677_v39 = vadd.f32 %v2622_v38, %v5833_v0 }
 0x279   : > { %v3937_v8 = vadd.f32 %v3879_v7, %v3587_v10  ;;  %v2926_v12 = vpop.f32.mrf.mxu2 }
 0x27a   : > { %v2982_v17 = vadd.f32 %v2926_v12, %v2676_v51 }
 0x27b   : > { %v3973_v19 = vadd.f32 %v6150_v62, %v3937_v8 }
 0x27d   : > { %v4005_v40 = vmax.f32 %v3973_v19, 0.0  ;;  %v3882_v47 = vpop.f32.mrf.mxu0 }
 0x27e   : > { %v3532_v27 = vpop.f32.mrf.mxu3  ;;  %v2625_v25 = vpop.f32.mrf.mxu1 }
 0x27f   : > { %4037 = vst [vmem:[%s6181_s9 + $0x78] sm:$0xff] %v4005_v40  ;;  %v3588_v61 = vadd.f32 %v3532_v27, %v2982_v17  ;;  %v2678_v13 = vadd.f32 %v2625_v25, %v5854_v33 }
 0x281   : > { %v3938_v58 = vadd.f32 %v3882_v47, %v3588_v61  ;;  %v2928_v34 = vpop.f32.mrf.mxu2 }
 0x282   : > { %v2983_v45 = vadd.f32 %v2928_v34, %v2677_v39  ;;  %v6461_v39 = vld [vmem:[%s6535_s2] ss:$0 sm:$0xff] }
 0x283   : > { %v3974_v49 = vadd.f32 %v6150_v62, %v3938_v58 }
 0x285   : > { %v4006_v48 = vmax.f32 %v3974_v49, 0.0  ;;  %v3884_v1 = vpop.f32.mrf.mxu0 }
 0x286   : > { %v3534_v36 = vpop.f32.mrf.mxu3  ;;  %v2627_v63 = vpop.f32.mrf.mxu1 }
 0x287   : > { %4038 = vst [vmem:[%s6181_s9 + $0x80] sm:$0xff] %v4006_v48  ;;  %v3589_v55 = vadd.f32 %v3534_v36, %v2983_v45  ;;  %v2679_v46 = vadd.f32 %v2627_v63, %v5879_v54 }
 0x289   : > { %v3939_v26 = vadd.f32 %v3884_v1, %v3589_v55  ;;  %v2931_v60 = vpop.f32.mrf.mxu2 }
 0x28a   : > { %v2984_v28 = vadd.f32 %v2931_v60, %v2678_v13 }
 0x28b   : > { %v3975_v18 = vadd.f32 %v6150_v62, %v3939_v26 }
 0x28d   : > { %v4007_v0 = vmax.f32 %v3975_v18, 0.0  ;;  %v3887_v59 = vpop.f32.mrf.mxu0 }
 0x28e   : > { %v3537_v22 = vpop.f32.mrf.mxu3  ;;  %v2630_v52 = vpop.f32.mrf.mxu1 }
 0x28f   : > { %4039 = vst [vmem:[%s6181_s9 + $0x88] sm:$0xff] %v4007_v0  ;;  %v3590_v57 = vadd.f32 %v3537_v22, %v2984_v28  ;;  %v2680_v6 = vadd.f32 %v2630_v52, %v5899_v53 }
 0x291   : > { %v3940_v32 = vadd.f32 %v3887_v59, %v3590_v57  ;;  %v2933_v2 = vpop.f32.mrf.mxu2 }
 0x292   : > { %v2985_v29 = vadd.f32 %v2933_v2, %v2679_v46 }
 0x293   : > { %v3976_v16 = vadd.f32 %v6150_v62, %v3940_v32 }
 0x295   : > { %v4008_v33 = vmax.f32 %v3976_v16, 0.0  ;;  %v3889_v44 = vpop.f32.mrf.mxu0 }
 0x296   : > { %v3539_v14 = vpop.f32.mrf.mxu3  ;;  %v2632_v35 = vpop.f32.mrf.mxu1 }
 0x297   : > { %4040 = vst [vmem:[%s6181_s9 + $0x90] sm:$0xff] %v4008_v33  ;;  %v3591_v21 = vadd.f32 %v3539_v14, %v2985_v29  ;;  %v2681_v8 = vadd.f32 %v2632_v35, %v5923_v11 }
 0x299   : > { %v3941_v9 = vadd.f32 %v3889_v44, %v3591_v21  ;;  %v2936_v56 = vpop.f32.mrf.mxu2 }
 0x29a   : > { %v2986_v20 = vadd.f32 %v2936_v56, %v2680_v6 }
 0x29b   : > { %v3977_v30 = vadd.f32 %v6150_v62, %v3941_v9 }
 0x29d   : > { %v4009_v54 = vmax.f32 %v3977_v30, 0.0  ;;  %v3892_v24 = vpop.f32.mrf.mxu0 }
 0x29e   : > { %v3542_v7 = vpop.f32.mrf.mxu3  ;;  %v2635_v3 = vpop.f32.mrf.mxu1 }
 0x29f   : > { %4041 = vst [vmem:[%s6181_s9 + $0x98] sm:$0xff] %v4009_v54  ;;  %v3592_v38 = vadd.f32 %v3542_v7, %v2986_v20  ;;  %v2682_v61 = vadd.f32 %v2635_v3, %v5944_v43 }
 0x2a1   : > { %v3942_v10 = vadd.f32 %v3892_v24, %v3592_v38  ;;  %v2938_v51 = vpop.f32.mrf.mxu2 }
 0x2a2   : > { %v2987_v19 = vadd.f32 %v2938_v51, %v2681_v8 }
 0x2a3   : > { %v3978_v12 = vadd.f32 %v6150_v62, %v3942_v10 }
 0x2a5   : > { %v4010_v17 = vmax.f32 %v3978_v12, 0.0  ;;  %v3894_v53 = vpop.f32.mrf.mxu0 }
 0x2a6   : > { %v3544_v40 = vpop.f32.mrf.mxu3  ;;  %v2637_v47 = vpop.f32.mrf.mxu1 }
 0x2a7   : > { %4042 = vst [vmem:[%s6181_s9 + $0xa0] sm:$0xff] %v4010_v17  ;;  %v3593_v27 = vadd.f32 %v3544_v40, %v2987_v19  ;;  %v2683_v63 = vadd.f32 %v2637_v47, %v5969_v41 }
 0x2a9   : > { %v3943_v25 = vadd.f32 %v3894_v53, %v3593_v27  ;;  %v2941_v58 = vpop.f32.mrf.mxu2 }
 0x2aa   : > { %v2988_v62 = vadd.f32 %v2941_v58, %v2682_v61 }
 0x2ab   : > { %v3979_v11 = vadd.f32 %v6461_v39, %v3943_v25 }
 0x2ad   : > { %v4011_v34 = vmax.f32 %v3979_v11, 0.0  ;;  %v3897_v49 = vpop.f32.mrf.mxu0 }
 0x2ae   : > { %v3547_v45 = vpop.f32.mrf.mxu3  ;;  %v2640_v48 = vpop.f32.mrf.mxu1 }
 0x2af   : > { %4043 = vst [vmem:[%s6181_s9 + $0xa8] sm:$0xff] %v4011_v34  ;;  %v3594_v1 = vadd.f32 %v3547_v45, %v2988_v62  ;;  %v2684_v22 = vadd.f32 %v2640_v48, %v5989_v37 }
 0x2b1   : > { %v3944_v36 = vadd.f32 %v3897_v49, %v3594_v1  ;;  %v2943_v43 = vpop.f32.mrf.mxu2 }
 0x2b2   : > { %v2989_v26 = vadd.f32 %v2943_v43, %v2683_v63 }
 0x2b3   : > { %v3980_v55 = vadd.f32 %v6461_v39, %v3944_v36 }
 0x2b5   : > { %v4012_v13 = vmax.f32 %v3980_v55, 0.0  ;;  %v3899_v60 = vpop.f32.mrf.mxu0 }
 0x2b6   : > { %v3549_v18 = vpop.f32.mrf.mxu3  ;;  %v2642_v28 = vpop.f32.mrf.mxu1 }
 0x2b7   : > { %4044 = vst [vmem:[%s6181_s9 + $0xb0] sm:$0xff] %v4012_v13  ;;  %v3595_v0 = vadd.f32 %v3549_v18, %v2989_v26  ;;  %v2685_v44 = vadd.f32 %v2642_v28, %v6012_v4 }
 0x2b9   : > { %v3945_v59 = vadd.f32 %v3899_v60, %v3595_v0  ;;  %v2946_v52 = vpop.f32.mrf.mxu2 }
 0x2ba   : > { %v2990_v32 = vadd.f32 %v2946_v52, %v2684_v22 }
 0x2bb   : > { %v3981_v57 = vadd.f32 %v6461_v39, %v3945_v59 }
 0x2bd   : > { %v4013_v41 = vmax.f32 %v3981_v57, 0.0  ;;  %v3902_v46 = vpop.f32.mrf.mxu0 }
 0x2be   : > { %v3552_v2 = vpop.f32.mrf.mxu3  ;;  %v2645_v16 = vpop.f32.mrf.mxu1 }
 0x2bf   : > { %4045 = vst [vmem:[%s6181_s9 + $0xb8] sm:$0xff] %v4013_v41  ;;  %v3596_v29 = vadd.f32 %v3552_v2, %v2990_v32  ;;  %v2686_v54 = vadd.f32 %v2645_v16, %v6032_v50 }
 0x2c1   : > { %v3946_v33 = vadd.f32 %v3902_v46, %v3596_v29  ;;  %v2948_v14 = vpop.f32.mrf.mxu2 }
 0x2c2   : > { %v2991_v21 = vadd.f32 %v2948_v14, %v2685_v44 }
 0x2c3   : > { %v3982_v35 = vadd.f32 %v6461_v39, %v3946_v33 }
 0x2c5   : > { %v4014_v37 = vmax.f32 %v3982_v35, 0.0  ;;  %v3904_v9 = vpop.f32.mrf.mxu0 }
 0x2c6   : > { %v3554_v6 = vpop.f32.mrf.mxu3  ;;  %v2647_v56 = vpop.f32.mrf.mxu1 }
 0x2c7   : > { %4046 = vst [vmem:[%s6181_s9 + $0xc0] sm:$0xff] %v4014_v37  ;;  %v3597_v30 = vadd.f32 %v3554_v6, %v2991_v21  ;;  %v2687_v19 = vadd.f32 %v2647_v56, %v6053_v31 }
 0x2c9   : > { %v3947_v20 = vadd.f32 %v3904_v9, %v3597_v30  ;;  %v2951_v24 = vpop.f32.mrf.mxu2 }
 0x2ca   : > { %v2992_v3 = vadd.f32 %v2951_v24, %v2686_v54 }
 0x2cb   : > { %v3983_v7 = vadd.f32 %v6461_v39, %v3947_v20 }
 0x2cd   : > { %v4015_v4 = vmax.f32 %v3983_v7, 0.0  ;;  %v3907_v38 = vpop.f32.mrf.mxu0 }
 0x2ce   : > { %v3557_v10 = vpop.f32.mrf.mxu3  ;;  %v2650_v51 = vpop.f32.mrf.mxu1 }
 0x2cf   : > { %4047 = vst [vmem:[%s6181_s9 + $0xc8] sm:$0xff] %v4015_v4  ;;  %v3598_v8 = vadd.f32 %v3557_v10, %v2992_v3  ;;  %v2688_v58 = vadd.f32 %v2650_v51, %v6075_v5 }
 0x2d1   : > { %v3948_v12 = vadd.f32 %v3907_v38, %v3598_v8  ;;  %v2953_v17 = vpop.f32.mrf.mxu2 }
 0x2d2   : > { %v2993_v40 = vadd.f32 %v2953_v17, %v2687_v19 }
 0x2d3   : > { %v3984_v53 = vadd.f32 %v6461_v39, %v3948_v12 }
 0x2d5   : > { %v4016_v50 = vmax.f32 %v3984_v53, 0.0  ;;  %v3909_v47 = vpop.f32.mrf.mxu0 }
 0x2d6   : > { %v3559_v27 = vpop.f32.mrf.mxu3  ;;  %v2652_v62 = vpop.f32.mrf.mxu1 }
 0x2d7   : > { %4048 = vst [vmem:[%s6181_s9 + $0xd0] sm:$0xff] %v4016_v50  ;;  %v3599_v25 = vadd.f32 %v3559_v27, %v2993_v40  ;;  %v2689_v63 = vadd.f32 %v2652_v62, %v6097_v42 }
 0x2d9   : > { %v3949_v61 = vadd.f32 %v3909_v47, %v3599_v25  ;;  %v2956_v11 = vpop.f32.mrf.mxu2 }
 0x2da   : > { %v2994_v49 = vadd.f32 %v2956_v11, %v2688_v58 }
 0x2db   : > { %v3985_v34 = vadd.f32 %v6461_v39, %v3949_v61 }
 0x2dd   : > { %v4017_v31 = vmax.f32 %v3985_v34, 0.0  ;;  %v3912_v45 = vpop.f32.mrf.mxu0 }
 0x2de   : > { %v3562_v48 = vpop.f32.mrf.mxu3  ;;  %v2655_v5 = vpop.f32.mrf.mxu1 }
 0x2df   : > { %4049 = vst [vmem:[%s6181_s9 + $0xd8] sm:$0xff] %v4017_v31  ;;  %v3600_v1 = vadd.f32 %v3562_v48, %v2994_v49  ;;  %v2690_v59 = vadd.f32 %v2655_v5, %v6116_v15 }
 0x2e1   : > { %v3950_v36 = vadd.f32 %v3912_v45, %v3600_v1  ;;  %v2958_v43 = vpop.f32.mrf.mxu2 }
 0x2e2   : > { %v2995_v26 = vadd.f32 %v2958_v43, %v2689_v63 }
 0x2e3   : > { %v3986_v55 = vadd.f32 %v6461_v39, %v3950_v36 }
 0x2e5   : > { %v4018_v13 = vmax.f32 %v3986_v55, 0.0  ;;  %v3914_v60 = vpop.f32.mrf.mxu0 }
 0x2e6   : > { %v3564_v18 = vpop.f32.mrf.mxu3  ;;  %v2657_v32 = vpop.f32.mrf.mxu1 }
 0x2e7   : > { %4050 = vst [vmem:[%s6181_s9 + $0xe0] sm:$0xff] %v4018_v13  ;;  %v3601_v28 = vadd.f32 %v3564_v18, %v2995_v26  ;;  %v2691_v29 = vadd.f32 %v2657_v32, %v6140_v23 }
 0x2e9   : > { %v3951_v0 = vadd.f32 %v3914_v60, %v3601_v28  ;;  %v2961_v22 = vpop.f32.mrf.mxu2 }
 0x2ea   : > { %v2996_v57 = vadd.f32 %v2961_v22, %v2690_v59 }
 0x2eb   : > { %v3987_v52 = vadd.f32 %v6461_v39, %v3951_v0 }
 0x2ed   : > { %v4019_v42 = vmax.f32 %v3987_v52, 0.0  ;;  %v3917_v41 = vpop.f32.mrf.mxu0 }
 0x2ee   : > { %v3567_v46 = vpop.f32.mrf.mxu3 }
 0x2ef   : > { %4051 = vst [vmem:[%s6181_s9 + $0xe8] sm:$0xff] %v4019_v42  ;;  %v3602_v2 = vadd.f32 %v3567_v46, %v2996_v57 }
 0x2f1   : > { %v3952_v16 = vadd.f32 %v3917_v41, %v3602_v2  ;;  %v2963_v33 = vpop.f32.mrf.mxu2 }
 0x2f2   : > { %v2997_v15 = vadd.f32 %v2963_v33, %v2691_v29 }
 0x2f3   : > { %v3988_v44 = vadd.f32 %v6461_v39, %v3952_v16 }
 0x2f5   : > { %v4020_v14 = vmax.f32 %v3988_v44, 0.0  ;;  %v3919_v37 = vpop.f32.mrf.mxu0 }
 0x2f6   : > { %v3569_v35 = vpop.f32.mrf.mxu3 }
 0x2f7   : > { %4052 = vst [vmem:[%s6181_s9 + $0xf0] sm:$0xff] %v4020_v14  ;;  %v3603_v21 = vadd.f32 %v3569_v35, %v2997_v15 }
 0x2f9   : > { %v3953_v9 = vadd.f32 %v3919_v37, %v3603_v21 }
 0x2fb   : > { %v3989_v23 = vadd.f32 %v6461_v39, %v3953_v9 }
 0x2fd   : > { %v4021_v6 = vmax.f32 %v3989_v23, 0.0 }
 0x2ff   : > { %4053 = vst [vmem:[%s6181_s9 + $0xf8] sm:$0xff] %v4021_v6 }
 0x300   : > { %4904 = shalt.err (!%p4901_p5)
}
 0x301   : > { %s4957_s5 = smov 128   ;;  %s4958_s9 = smov 8  }
 0x302   : > { %4743 = dma.vmem_to_hbm [thread:$0]  (%p5019_p4), %s4072_s26, 4096, %s4074_s27, %s4055_s15, %s4957_s5, %s4957_s5, %s4958_s9  }
 0x303 PF: > { %p4749_p6 = scmp.ge.s32.totalorder %s4955_s17, 2  ;;  %s4088_s10 = sand.u32 1, %s4935_s12  }
 0x304   : > { %s4089_s11 = scalar_lea.sflag [#allocation3], %s4088_s10 }
 0x305   : > { %p4746_p7 = pnand %p4749_p6, %p5026_p8 }
 0x307   : > { %p4747_p9 = pneg %p4746_p7 }
 0x309   : > { %4930 = dma.done.wait (%p4747_p9), %s4089_s11, 4096  }
 0x30a   : > { %4932 = vsyncadd (%p4747_p9), %s4089_s11, 4294963200  ;;  %s16_s17 = sadd.s32 1, %s4955_s17   ;;  %s6549_s12 = smov %s4939_s13 }
 0x30b   : > { %p13_p10 = scmp.ge.s32.totalorder %s16_s17, 4   ;;  %s6550_s13 = smov %s4943_s14 }
 0x30c   : > { %s6551_s14 = smov %s5032_s25  ;;  %s6552_s15 = smov %s4951_s16 }
 0x30d   : > { %s6553_s16 = smov %s6555_s20  ;;  %15 = sbr.rel (!%p13_p10) target bundleno = 4 (0x4), region = 84 }
 0x312   :  { %4095 = vsyncpa [#allocation3], 1 }
 0x313   :  { %4097 = vsyncpa [#allocation3 + $0x1], 1 }

</bundles_post_ra>
